<compile_context>
chip_gen: v5e
topology: v5e:2x2
jax: 0.10.0
libtpu: 0.0.40
codegen_flags: <defaults>
</compile_context>

<pallas_src>
import functools

import jax
import jax.numpy as jnp
from jax.experimental import pallas as pl
from jax.experimental.pallas import tpu as pltpu


def _round_up(x, m):
    return ((x + m - 1) // m) * m


# --------------------------------------------------------------------------------------
# Runtime capability probes (run OUTSIDE jit; cached).
# --------------------------------------------------------------------------------------
@functools.lru_cache(maxsize=1)
def _tpu_kind():
    try:
        return jax.devices()[0].device_kind.lower()
    except Exception:
        return ""


@functools.lru_cache(maxsize=1)
def _vmem_cap_bytes():
    """Generation-aware usable-VMEM cap (~85% of physical), fallback 64 MiB."""
    try:
        info = pltpu.get_tpu_info()
        cap = getattr(info, "vmem_capacity_bytes", None)
        if cap:
            return int(int(cap) * 0.85)
    except Exception:
        pass
    return 64 * 1024 * 1024


@functools.lru_cache(maxsize=1)
def _single_buffer_supported():
    """Probe whether pipeline_mode=pl.Buffered(1) compiles on this backend."""
    if not hasattr(pl, "Buffered"):
        return False
    try:
        def k(x_ref, o_ref):
            o_ref[...] = x_ref[...] + 1.0

        fn = pl.pallas_call(
            k,
            out_shape=jax.ShapeDtypeStruct((16, 128), jnp.float32),
            grid=(2,),
            in_specs=[pl.BlockSpec((8, 128), lambda i: (0, 0),
                                   pipeline_mode=pl.Buffered(1))],
            out_specs=pl.BlockSpec((8, 128), lambda i: (i, 0)),
        )
        jax.block_until_ready(fn(jnp.zeros((8, 128), jnp.float32)))
        return True
    except Exception:
        return False


# --------------------------------------------------------------------------------------
# Recurrent Pallas kernel: h_t = GRUCell(gi_t, h_{t-1}) for a block of Tb timesteps.
# --------------------------------------------------------------------------------------
def _gru_recurrent_kernel(gi_ref, w_hh_ref, b_hn_ref, h0_ref, y_ref, h_state,
                          *, t_block, hid_p, unroll):
    """Grid = (batch_blocks, time_blocks); time axis is last (sequential carry).

    gi_ref  : (Tb, Bb, 3Hp) bf16  hoisted input projection (+ folded r/z/n biases)
    w_hh_ref: (Hp, 3Hp)    bf16   hidden->gates weights, gate order [r | z | n] (resident)
    b_hn_ref: (1, Hp)      f32    hidden bias of the n gate (must stay inside r*(...))
    h0_ref  : (Bb, Hp)     f32    initial hidden for this batch block
    y_ref   : (Tb, Bb, Hp) f32/bf16  hidden state at every step (output)
    h_state : (Bb, Hp)     f32    VMEM scratch carrying h across time blocks
    """
    tb = pl.program_id(1)

    @pl.when(tb == 0)
    def _():
        h_state[...] = h0_ref[...]

    bb = h_state.shape[0]
    # Hoisted out of the (unrolled) step loop: JAX does not CSE broadcast_in_dim.
    b_hn = jnp.broadcast_to(b_hn_ref[...], (bb, hid_p))

    def step(i, h):
        gi = gi_ref[i]                                      # (Bb, 3Hp) bf16
        gh = jnp.dot(h.astype(w_hh_ref.dtype), w_hh_ref[...],
                     preferred_element_type=jnp.float32)    # (Bb, 3Hp) f32

        i_r = gi[:, 0:hid_p].astype(jnp.float32)
        i_z = gi[:, hid_p:2 * hid_p].astype(jnp.float32)
        i_n = gi[:, 2 * hid_p:3 * hid_p].astype(jnp.float32)
        h_r = gh[:, 0:hid_p]
        h_z = gh[:, hid_p:2 * hid_p]
        h_n = gh[:, 2 * hid_p:3 * hid_p] + b_hn

        r = jax.nn.sigmoid(i_r + h_r)
        z = jax.nn.sigmoid(i_z + h_z)
        n = jnp.tanh(i_n + r * h_n)
        h_new = n + z * (h - n)                             # == (1-z)*n + z*h, one fewer VPU op

        y_ref[i] = h_new.astype(y_ref.dtype)
        return h_new

    h_final = jax.lax.fori_loop(0, t_block, step, h_state[...], unroll=unroll)
    h_state[...] = h_final


def _vmem_limit_bytes(t_block, b_block, hid_p, y_bytes, single_buffer, cap):
    w_bufs = 1 if single_buffer else 2
    w = hid_p * 3 * hid_p * 2 * w_bufs                 # resident bf16 W_hh
    gi = t_block * b_block * 3 * hid_p * 2 * 2         # bf16 gi, double-buffered
    y = t_block * b_block * hid_p * y_bytes * 2        # y block, double-buffered
    h0 = b_block * hid_p * 4 * 2
    bias = hid_p * 4 * w_bufs
    scratch = b_block * hid_p * 4
    est = w + gi + y + h0 + bias + scratch
    return int(min(cap, max(int(est * 1.25), 32 * 1024 * 1024)))


def gru_recurrent_layer(gi_tm, w_hh, b_hn, h0, *, t_block, b_block, out_dtype,
                        single_buffer, vmem_cap):
    """gi_tm: (S_pad, Bp, 3Hp) bf16; returns y_tm: (S_pad, Bp, Hp) in out_dtype."""
    s_pad, bp, three_hp = gi_tm.shape
    hid_p = w_hh.shape[0]
    assert three_hp == 3 * hid_p
    num_b = bp // b_block
    num_t = s_pad // t_block

    # Full unroll only in the small (latency-bound) regime; large tiles would blow up
    # live ranges (~6 live (Bb,3Hp) f32 temporaries per unrolled step) and spill.
    unroll = True if (b_block * hid_p <= 64 * 1024) else 2

    def resident(shape, index_map):
        # Operands whose index_map is constant: single-buffer them when supported.
        if single_buffer:
            return pl.BlockSpec(shape, index_map, pipeline_mode=pl.Buffered(1))
        return pl.BlockSpec(shape, index_map)

    grid_spec = pltpu.PrefetchScalarGridSpec(
        num_scalar_prefetch=0,
        grid=(num_b, num_t),
        in_specs=[
            pl.BlockSpec((t_block, b_block, 3 * hid_p), lambda b, t: (t, b, 0)),  # gi (streamed)
            resident((hid_p, 3 * hid_p), lambda b, t: (0, 0)),                    # W_hh (resident)
            resident((1, hid_p), lambda b, t: (0, 0)),                            # b_hn (resident)
            pl.BlockSpec((b_block, hid_p), lambda b, t: (b, 0)),                  # h0
        ],
        out_specs=pl.BlockSpec((t_block, b_block, hid_p), lambda b, t: (t, b, 0)),
        scratch_shapes=[pltpu.VMEM((b_block, hid_p), jnp.float32)],
    )

    kernel = functools.partial(_gru_recurrent_kernel, t_block=t_block, hid_p=hid_p,
                               unroll=unroll)
    y_bytes = jnp.dtype(out_dtype).itemsize

    return pl.pallas_call(
        kernel,
        out_shape=jax.ShapeDtypeStruct((s_pad, bp, hid_p), out_dtype),
        grid_spec=grid_spec,
        compiler_params=pltpu.CompilerParams(
            dimension_semantics=("parallel", "arbitrary"),   # batch parallel, time serial
            vmem_limit_bytes=_vmem_limit_bytes(t_block, b_block, hid_p, y_bytes,
                                               single_buffer, vmem_cap),
        ),
    )(gi_tm, w_hh, b_hn, h0)


# --------------------------------------------------------------------------------------
# Parameters (padded, bias-folded, bf16 weights)
# --------------------------------------------------------------------------------------
def _pad_gate_cols(w, hid, hid_p):
    """(in, 3*hid) with gates [r|z|n] -> (in, 3*hid_p), each gate zero-padded to hid_p."""
    in_dim = w.shape[0]
    out = jnp.zeros((in_dim, 3 * hid_p), w.dtype)
    for g in range(3):
        out = out.at[:, g * hid_p:g * hid_p + hid].set(w[:, g * hid:(g + 1) * hid])
    return out


def init_params(key, output_dim, emb_dim, hid_dim, n_layers):
    hid_p = _round_up(hid_dim, 128)
    bound = 1.0 / float(jnp.sqrt(jnp.float32(hid_dim)))

    params = {}
    k_emb, k_fcw, k_fcb, key = jax.random.split(key, 4)
    params["embedding"] = jax.random.normal(k_emb, (output_dim, emb_dim), jnp.float32)
    params["fc_w"] = jax.random.uniform(k_fcw, (hid_dim, output_dim), jnp.float32,
                                        -bound, bound)
    params["fc_b"] = jax.random.uniform(k_fcb, (output_dim,), jnp.float32, -bound, bound)

    layers = []
    for layer in range(n_layers):
        in_dim = emb_dim if layer == 0 else hid_dim
        in_dim_p = emb_dim if layer == 0 else hid_p
        k1, k2, k3, k4, key = jax.random.split(key, 5)

        w_ih = jax.random.uniform(k1, (in_dim, 3 * hid_dim), jnp.float32, -bound, bound)
        w_hh = jax.random.uniform(k2, (hid_dim, 3 * hid_dim), jnp.float32, -bound, bound)
        b_ih = jax.random.uniform(k3, (3 * hid_dim,), jnp.float32, -bound, bound)
        b_hh = jax.random.uniform(k4, (3 * hid_dim,), jnp.float32, -bound, bound)

        # pad gate columns to hid_p, pad input rows (for layer>0 the input is padded y)
        w_ih_p = jnp.zeros((in_dim_p, 3 * hid_p), jnp.float32)
        w_ih_p = w_ih_p.at[:in_dim].set(_pad_gate_cols(w_ih, hid_dim, hid_p))
        w_hh_p = jnp.zeros((hid_p, 3 * hid_p), jnp.float32)
        w_hh_p = w_hh_p.at[:hid_dim].set(_pad_gate_cols(w_hh, hid_dim, hid_p))

        # fold biases: r/z take b_ih+b_hh, n keeps only b_in here; b_hn stays in-kernel.
        b_gates = jnp.zeros((3 * hid_p,), jnp.float32)
        b_gates = b_gates.at[0:hid_dim].set(b_ih[0:hid_dim] + b_hh[0:hid_dim])
        b_gates = b_gates.at[hid_p:hid_p + hid_dim].set(
            b_ih[hid_dim:2 * hid_dim] + b_hh[hid_dim:2 * hid_dim])
        b_gates = b_gates.at[2 * hid_p:2 * hid_p + hid_dim].set(b_ih[2 * hid_dim:])
        b_hn = jnp.zeros((hid_p,), jnp.float32).at[:hid_dim].set(b_hh[2 * hid_dim:])

        layers.append(dict(
            w_ih=w_ih_p.astype(jnp.bfloat16),          # (in_dim_p, 3*hid_p)
            w_hh=w_hh_p.astype(jnp.bfloat16),          # (hid_p, 3*hid_p)
            b_gates=b_gates.reshape(1, 3 * hid_p),     # f32
            b_hn=b_hn.reshape(1, hid_p),               # f32
        ))
    params["layers"] = layers
    return params


# --------------------------------------------------------------------------------------
# Forward (matches DecoderGRU.forward(tgt, hidden) -> (predictions, hidden))
# --------------------------------------------------------------------------------------
@functools.partial(jax.jit,
                   static_argnames=("t_block", "single_buffer", "tpu_kind", "vmem_cap"))
def _decoder_gru_forward_impl(params, tgt, hidden, *, t_block, single_buffer,
                              tpu_kind, vmem_cap):
    B, S = tgt.shape
    n_layers, _, H = hidden.shape
    hid_p = params["layers"][0]["w_hh"].shape[0]
    V = params["fc_w"].shape[1]

    # ---- tile sizing (generation-aware) -------------------------------------------
    t_blk = max(8, min(t_block, _round_up(S, 8)))
    s_pad = _round_up(S, t_blk)

    bp8 = _round_up(B, 8)
    is_v7 = "v7" in tpu_kind
    wide_mxu = is_v7 or ("v6" in tpu_kind)
    if bp8 >= 512 and wide_mxu:
        b_block = 256                                   # fill the 256-wide MXU on v6e/v7x
    elif bp8 > 128:
        b_block = 128
    elif is_v7 and bp8 >= 16:
        b_block = _round_up(bp8, 16) // 2               # 2 batch blocks -> both v7x TCs busy
    else:
        b_block = bp8
    bp = _round_up(bp8, b_block)

    # ---- embedding lookup + time-major layout of the narrow (E-wide) tensor --------
    embedded = jnp.take(params["embedding"], tgt, axis=0)          # (B, S, E) f32
    x_tm = jnp.pad(embedded.transpose(1, 0, 2),
                   ((0, s_pad - S), (0, bp - B), (0, 0)))          # (S_pad, Bp, E)
    x_tm = x_tm.astype(jnp.bfloat16)

    y_tm = None
    finals = []
    for l, lp in enumerate(params["layers"]):
        src = x_tm if l == 0 else y_tm                              # bf16, time-major, padded
        in_dim = src.shape[-1]
        # Hoisted input projection: one big matmul per layer; gi streamed as bf16.
        gi = jnp.dot(src.reshape(s_pad * bp, in_dim), lp["w_ih"],
                     preferred_element_type=jnp.float32) + lp["b_gates"]
        gi = gi.astype(jnp.bfloat16).reshape(s_pad, bp, 3 * hid_p)

        h0 = jnp.zeros((bp, hid_p), jnp.float32).at[:B, :H].set(hidden[l])
        out_dtype = jnp.float32 if l == n_layers - 1 else jnp.bfloat16
        y_tm = gru_recurrent_layer(gi, lp["w_hh"], lp["b_hn"], h0,
                                   t_block=t_blk, b_block=b_block,
                                   out_dtype=out_dtype,
                                   single_buffer=single_buffer,
                                   vmem_cap=vmem_cap)               # (S_pad, Bp, Hp)
        finals.append(y_tm[S - 1, :B, :H].astype(jnp.float32))      # final hidden of layer

    outputs = y_tm[:S, :B, :H].transpose(1, 0, 2)                   # (B, S, H) f32

    # fc_out (plain-XLA glue: one well-shaped matmul).
    preds = jnp.dot(outputs.reshape(B * S, H), params["fc_w"],
                    preferred_element_type=jnp.float32) + params["fc_b"]
    predictions = preds.reshape(B, S, V)
    new_hidden = jnp.stack(finals, axis=0)                          # (n_layers, B, H)
    return predictions, new_hidden


def decoder_gru_forward(params, tgt, hidden, *, t_block=16):
    """Public entry point; runs the capability probes outside jit."""
    return _decoder_gru_forward_impl(
        params, tgt, hidden,
        t_block=int(t_block),
        single_buffer=_single_buffer_supported(),
        tpu_kind=_tpu_kind(),
        vmem_cap=_vmem_cap_bytes(),
    )


if __name__ == "__main__":
    output_dim = 20   # vocab size
    emb_dim = 16
    hid_dim = 32
    n_layers = 2
    batch = 2
    seq = 8

    key = jax.random.PRNGKey(0)
    k_params, k_tgt, k_hid = jax.random.split(key, 3)

    params = init_params(k_params, output_dim, emb_dim, hid_dim, n_layers)
    tgt = jax.random.randint(k_tgt, (batch, seq), 0, output_dim, dtype=jnp.int32)
    hidden = jax.random.normal(k_hid, (n_layers, batch, hid_dim), jnp.float32)

    predictions, new_hidden = decoder_gru_forward(params, tgt, hidden)
    jax.block_until_ready((predictions, new_hidden))

    assert predictions.shape == (batch, seq, output_dim), predictions.shape
    assert new_hidden.shape == (n_layers, batch, hid_dim), new_hidden.shape
    assert predictions.dtype == jnp.float32
    assert bool(jnp.all(jnp.isfinite(predictions))) and bool(jnp.all(jnp.isfinite(new_hidden)))
    print("KERNEL_OK")
</pallas_src>

<mosaic_0001>
module attributes {stable_mosaic.version = 11 : i64} {
  func.func @k(%arg0: i32, %arg1: memref<8x128xf32, #tpu.memory_space<vmem>>, %arg2: memref<8x128xf32, #tpu.memory_space<vmem>>) attributes {dimension_semantics = [#tpu.dimension_semantics<arbitrary>], iteration_bounds = array<i64: 2>, scalar_prefetch = 0 : i64, scratch_operands = 0 : i64, tpu.core_type = #tpu.core_type<tc>, window_params = [{pipeline_mode = #tpu.pipeline_mode<synchronous>, transform_indices = @transform_0, window_bounds = array<i64: 8, 128>}, {transform_indices = @transform_1, window_bounds = array<i64: 8, 128>}]} {
    %c0 = arith.constant 0 : index
    %c0_0 = arith.constant 0 : index
    %0 = vector.load %arg1[%c0, %c0_0] : memref<8x128xf32, #tpu.memory_space<vmem>>, vector<8x128xf32>
    %cst = arith.constant 1.000000e+00 : f32
    %1 = vector.broadcast %cst : f32 to vector<8x128xf32>
    %2 = arith.addf %0, %1 : vector<8x128xf32>
    %c0_1 = arith.constant 0 : index
    %c0_2 = arith.constant 0 : index
    %3 = vector.load %arg2[%c0_1, %c0_2] : memref<8x128xf32, #tpu.memory_space<vmem>>, vector<8x128xf32>
    tpu.vector_store %arg2[%c0_1, %c0_2], %2 {strides = array<i32>} : memref<8x128xf32, #tpu.memory_space<vmem>>, vector<8x128xf32>,
    return
  }
  func.func @transform_0(%arg0: i32) -> (i32, i32) {
    %c0_i32 = arith.constant 0 : i32
    %c0_i32_0 = arith.constant 0 : i32
    %c0_i32_1 = arith.constant 0 : i32
    return %c0_i32, %c0_i32_0 : i32, i32
  }
  func.func @transform_1(%arg0: i32) -> (i32, i32) {
    %c0_i32 = arith.constant 0 : i32
    %c0_i32_0 = arith.constant 0 : i32
    return %arg0, %c0_i32 : i32, i32
  }
}

module attributes {stable_mosaic.version = 11 : i64} {
  func.func @_gru_recurrent_kernel(%arg0: i32, %arg1: i32, %arg2: memref<8x8x384xbf16, #tpu.memory_space<vmem>>, %arg3: memref<128x384xbf16, #tpu.memory_space<vmem>>, %arg4: memref<1x128xf32, #tpu.memory_space<vmem>>, %arg5: memref<8x128xf32, #tpu.memory_space<vmem>>, %arg6: memref<8x8x128xf32, #tpu.memory_space<vmem>>, %arg7: memref<8x128xf32, #tpu.memory_space<vmem>>) attributes {dimension_semantics = [#tpu.dimension_semantics<parallel>, #tpu.dimension_semantics<arbitrary>], iteration_bounds = array<i64: 1, 1>, scalar_prefetch = 0 : i64, scratch_operands = 1 : i64, tpu.core_type = #tpu.core_type<tc>, window_params = [{transform_indices = @transform_0, window_bounds = array<i64: 8, 8, 384>}, {pipeline_mode = #tpu.pipeline_mode<synchronous>, transform_indices = @transform_1, window_bounds = array<i64: 128, 384>}, {pipeline_mode = #tpu.pipeline_mode<synchronous>, transform_indices = @transform_2, window_bounds = array<i64: 1, 128>}, {transform_indices = @transform_3, window_bounds = array<i64: 8, 128>}, {transform_indices = @transform_4, window_bounds = array<i64: 8, 8, 128>}]} {
    %c0_i32 = arith.constant 0 : i32
    %0 = arith.cmpi eq, %arg1, %c0_i32 : i32
    %1 = arith.extui %0 : i1 to i32
    %c0_i32_0 = arith.constant 0 : i32
    %2 = arith.cmpi ne, %1, %c0_i32_0 : i32
    scf.if %2 {
      %c0_78 = arith.constant 0 : index
      %c0_79 = arith.constant 0 : index
      %312 = vector.load %arg5[%c0_78, %c0_79] : memref<8x128xf32, #tpu.memory_space<vmem>>, vector<8x128xf32>
      %c0_80 = arith.constant 0 : index
      %c0_81 = arith.constant 0 : index
      %313 = vector.load %arg7[%c0_80, %c0_81] : memref<8x128xf32, #tpu.memory_space<vmem>>, vector<8x128xf32>
      tpu.vector_store %arg7[%c0_80, %c0_81], %312 {strides = array<i32>} : memref<8x128xf32, #tpu.memory_space<vmem>>, vector<8x128xf32>,
    } else {
    }
    %c0 = arith.constant 0 : index
    %c0_1 = arith.constant 0 : index
    %3 = vector.load %arg4[%c0, %c0_1] : memref<1x128xf32, #tpu.memory_space<vmem>>, vector<1x128xf32>
    %4 = vector.shape_cast %3 : vector<1x128xf32> to vector<1x128xf32>
    %5 = vector.broadcast %4 : vector<1x128xf32> to vector<8x128xf32>
    %c0_2 = arith.constant 0 : index
    %c0_3 = arith.constant 0 : index
    %6 = vector.load %arg7[%c0_2, %c0_3] : memref<8x128xf32, #tpu.memory_space<vmem>>, vector<8x128xf32>
    %c0_i32_4 = arith.constant 0 : i32
    %7 = arith.index_cast %c0_i32_4 : i32 to index
    %c0_5 = arith.constant 0 : index
    %c0_6 = arith.constant 0 : index
    %8 = vector.load %arg2[%7, %c0_5, %c0_6] : memref<8x8x384xbf16, #tpu.memory_space<vmem>>, vector<1x8x384xbf16>
    %9 = vector.shape_cast %8 : vector<1x8x384xbf16> to vector<8x384xbf16>
    %10 = arith.truncf %6 : vector<8x128xf32> to vector<8x128xbf16>
    %c0_7 = arith.constant 0 : index
    %c0_8 = arith.constant 0 : index
    %11 = vector.load %arg3[%c0_7, %c0_8] : memref<128x384xbf16, #tpu.memory_space<vmem>>, vector<128x384xbf16>
    %cst = arith.constant dense<0.000000e+00> : vector<8x384xf32>
    %12 = tpu.matmul %10, %11, %cst {dimension_numbers = #tpu.dot_dimension_numbers<[1], [0], [0], [1], [0, 0, 1, 1], [], []>} : vector<8x128xbf16>, vector<128x384xbf16>, vector<8x384xf32> -> vector<8x384xf32>
    %13 = vector.extract_strided_slice %9 {offsets = [0, 0], sizes = [8, 128], strides = [1, 1]} : vector<8x384xbf16> to vector<8x128xbf16>
    %14 = arith.extf %13 : vector<8x128xbf16> to vector<8x128xf32>
    %15 = vector.extract_strided_slice %9 {offsets = [0, 128], sizes = [8, 128], strides = [1, 1]} : vector<8x384xbf16> to vector<8x128xbf16>
    %16 = arith.extf %15 : vector<8x128xbf16> to vector<8x128xf32>
    %17 = vector.extract_strided_slice %9 {offsets = [0, 256], sizes = [8, 128], strides = [1, 1]} : vector<8x384xbf16> to vector<8x128xbf16>
    %18 = arith.extf %17 : vector<8x128xbf16> to vector<8x128xf32>
    %19 = vector.extract_strided_slice %12 {offsets = [0, 0], sizes = [8, 128], strides = [1, 1]} : vector<8x384xf32> to vector<8x128xf32>
    %20 = vector.extract_strided_slice %12 {offsets = [0, 128], sizes = [8, 128], strides = [1, 1]} : vector<8x384xf32> to vector<8x128xf32>
    %21 = vector.extract_strided_slice %12 {offsets = [0, 256], sizes = [8, 128], strides = [1, 1]} : vector<8x384xf32> to vector<8x128xf32>
    %22 = arith.addf %21, %5 : vector<8x128xf32>
    %23 = arith.addf %14, %19 : vector<8x128xf32>
    %24 = arith.negf %23 : vector<8x128xf32>
    %25 = math.exp %24 : vector<8x128xf32>
    %cst_9 = arith.constant 1.000000e+00 : f32
    %26 = vector.broadcast %cst_9 : f32 to vector<8x128xf32>
    %27 = arith.addf %26, %25 : vector<8x128xf32>
    %28 = arith.divf %26, %27 : vector<8x128xf32>
    %29 = arith.addf %16, %20 : vector<8x128xf32>
    %30 = arith.negf %29 : vector<8x128xf32>
    %31 = math.exp %30 : vector<8x128xf32>
    %cst_10 = arith.constant 1.000000e+00 : f32
    %32 = vector.broadcast %cst_10 : f32 to vector<8x128xf32>
    %33 = arith.addf %32, %31 : vector<8x128xf32>
    %34 = arith.divf %32, %33 : vector<8x128xf32>
    %35 = arith.mulf %28, %22 : vector<8x128xf32>
    %36 = arith.addf %18, %35 : vector<8x128xf32>
    %37 = math.tanh %36 : vector<8x128xf32>
    %38 = arith.subf %6, %37 : vector<8x128xf32>
    %39 = arith.mulf %34, %38 : vector<8x128xf32>
    %40 = arith.addf %37, %39 : vector<8x128xf32>
    %41 = arith.index_cast %c0_i32_4 : i32 to index
    %c0_11 = arith.constant 0 : index
    %c0_12 = arith.constant 0 : index
    %42 = vector.load %arg6[%41, %c0_11, %c0_12] : memref<8x8x128xf32, #tpu.memory_space<vmem>>, vector<1x8x128xf32>
    %43 = vector.shape_cast %42 : vector<1x8x128xf32> to vector<8x128xf32>
    %44 = vector.shape_cast %40 : vector<8x128xf32> to vector<1x8x128xf32>
    tpu.vector_store %arg6[%41, %c0_11, %c0_12], %44 {strides = array<i32>} : memref<8x8x128xf32, #tpu.memory_space<vmem>>, vector<1x8x128xf32>,
    %c1_i32 = arith.constant 1 : i32
    %45 = arith.index_cast %c1_i32 : i32 to index
    %c0_13 = arith.constant 0 : index
    %c0_14 = arith.constant 0 : index
    %46 = vector.load %arg2[%45, %c0_13, %c0_14] : memref<8x8x384xbf16, #tpu.memory_space<vmem>>, vector<1x8x384xbf16>
    %47 = vector.shape_cast %46 : vector<1x8x384xbf16> to vector<8x384xbf16>
    %48 = arith.truncf %40 : vector<8x128xf32> to vector<8x128xbf16>
    %c0_15 = arith.constant 0 : index
    %c0_16 = arith.constant 0 : index
    %49 = vector.load %arg3[%c0_15, %c0_16] : memref<128x384xbf16, #tpu.memory_space<vmem>>, vector<128x384xbf16>
    %cst_17 = arith.constant dense<0.000000e+00> : vector<8x384xf32>
    %50 = tpu.matmul %48, %49, %cst_17 {dimension_numbers = #tpu.dot_dimension_numbers<[1], [0], [0], [1], [0, 0, 1, 1], [], []>} : vector<8x128xbf16>, vector<128x384xbf16>, vector<8x384xf32> -> vector<8x384xf32>
    %51 = vector.extract_strided_slice %47 {offsets = [0, 0], sizes = [8, 128], strides = [1, 1]} : vector<8x384xbf16> to vector<8x128xbf16>
    %52 = arith.extf %51 : vector<8x128xbf16> to vector<8x128xf32>
    %53 = vector.extract_strided_slice %47 {offsets = [0, 128], sizes = [8, 128], strides = [1, 1]} : vector<8x384xbf16> to vector<8x128xbf16>
    %54 = arith.extf %53 : vector<8x128xbf16> to vector<8x128xf32>
    %55 = vector.extract_strided_slice %47 {offsets = [0, 256], sizes = [8, 128], strides = [1, 1]} : vector<8x384xbf16> to vector<8x128xbf16>
    %56 = arith.extf %55 : vector<8x128xbf16> to vector<8x128xf32>
    %57 = vector.extract_strided_slice %50 {offsets = [0, 0], sizes = [8, 128], strides = [1, 1]} : vector<8x384xf32> to vector<8x128xf32>
    %58 = vector.extract_strided_slice %50 {offsets = [0, 128], sizes = [8, 128], strides = [1, 1]} : vector<8x384xf32> to vector<8x128xf32>
    %59 = vector.extract_strided_slice %50 {offsets = [0, 256], sizes = [8, 128], strides = [1, 1]} : vector<8x384xf32> to vector<8x128xf32>
    %60 = arith.addf %59, %5 : vector<8x128xf32>
    %61 = arith.addf %52, %57 : vector<8x128xf32>
    %62 = arith.negf %61 : vector<8x128xf32>
    %63 = math.exp %62 : vector<8x128xf32>
    %cst_18 = arith.constant 1.000000e+00 : f32
    %64 = vector.broadcast %cst_18 : f32 to vector<8x128xf32>
    %65 = arith.addf %64, %63 : vector<8x128xf32>
    %66 = arith.divf %64, %65 : vector<8x128xf32>
    %67 = arith.addf %54, %58 : vector<8x128xf32>
    %68 = arith.negf %67 : vector<8x128xf32>
    %69 = math.exp %68 : vector<8x128xf32>
    %cst_19 = arith.constant 1.000000e+00 : f32
    %70 = vector.broadcast %cst_19 : f32 to vector<8x128xf32>
    %71 = arith.addf %70, %69 : vector<8x128xf32>
    %72 = arith.divf %70, %71 : vector<8x128xf32>
    %73 = arith.mulf %66, %60 : vector<8x128xf32>
    %74 = arith.addf %56, %73 : vector<8x128xf32>
    %75 = math.tanh %74 : vector<8x128xf32>
    %76 = arith.subf %40, %75 : vector<8x128xf32>
    %77 = arith.mulf %72, %76 : vector<8x128xf32>
    %78 = arith.addf %75, %77 : vector<8x128xf32>
    %79 = arith.index_cast %c1_i32 : i32 to index
    %c0_20 = arith.constant 0 : index
    %c0_21 = arith.constant 0 : index
    %80 = vector.load %arg6[%79, %c0_20, %c0_21] : memref<8x8x128xf32, #tpu.memory_space<vmem>>, vector<1x8x128xf32>
    %81 = vector.shape_cast %80 : vector<1x8x128xf32> to vector<8x128xf32>
    %82 = vector.shape_cast %78 : vector<8x128xf32> to vector<1x8x128xf32>
    tpu.vector_store %arg6[%79, %c0_20, %c0_21], %82 {strides = array<i32>} : memref<8x8x128xf32, #tpu.memory_space<vmem>>, vector<1x8x128xf32>,
    %c2_i32 = arith.constant 2 : i32
    %83 = arith.index_cast %c2_i32 : i32 to index
    %c0_22 = arith.constant 0 : index
    %c0_23 = arith.constant 0 : index
    %84 = vector.load %arg2[%83, %c0_22, %c0_23] : memref<8x8x384xbf16, #tpu.memory_space<vmem>>, vector<1x8x384xbf16>
    %85 = vector.shape_cast %84 : vector<1x8x384xbf16> to vector<8x384xbf16>
    %86 = arith.truncf %78 : vector<8x128xf32> to vector<8x128xbf16>
    %c0_24 = arith.constant 0 : index
    %c0_25 = arith.constant 0 : index
    %87 = vector.load %arg3[%c0_24, %c0_25] : memref<128x384xbf16, #tpu.memory_space<vmem>>, vector<128x384xbf16>
    %cst_26 = arith.constant dense<0.000000e+00> : vector<8x384xf32>
    %88 = tpu.matmul %86, %87, %cst_26 {dimension_numbers = #tpu.dot_dimension_numbers<[1], [0], [0], [1], [0, 0, 1, 1], [], []>} : vector<8x128xbf16>, vector<128x384xbf16>, vector<8x384xf32> -> vector<8x384xf32>
    %89 = vector.extract_strided_slice %85 {offsets = [0, 0], sizes = [8, 128], strides = [1, 1]} : vector<8x384xbf16> to vector<8x128xbf16>
    %90 = arith.extf %89 : vector<8x128xbf16> to vector<8x128xf32>
    %91 = vector.extract_strided_slice %85 {offsets = [0, 128], sizes = [8, 128], strides = [1, 1]} : vector<8x384xbf16> to vector<8x128xbf16>
    %92 = arith.extf %91 : vector<8x128xbf16> to vector<8x128xf32>
    %93 = vector.extract_strided_slice %85 {offsets = [0, 256], sizes = [8, 128], strides = [1, 1]} : vector<8x384xbf16> to vector<8x128xbf16>
    %94 = arith.extf %93 : vector<8x128xbf16> to vector<8x128xf32>
    %95 = vector.extract_strided_slice %88 {offsets = [0, 0], sizes = [8, 128], strides = [1, 1]} : vector<8x384xf32> to vector<8x128xf32>
    %96 = vector.extract_strided_slice %88 {offsets = [0, 128], sizes = [8, 128], strides = [1, 1]} : vector<8x384xf32> to vector<8x128xf32>
    %97 = vector.extract_strided_slice %88 {offsets = [0, 256], sizes = [8, 128], strides = [1, 1]} : vector<8x384xf32> to vector<8x128xf32>
    %98 = arith.addf %97, %5 : vector<8x128xf32>
    %99 = arith.addf %90, %95 : vector<8x128xf32>
    %100 = arith.negf %99 : vector<8x128xf32>
    %101 = math.exp %100 : vector<8x128xf32>
    %cst_27 = arith.constant 1.000000e+00 : f32
    %102 = vector.broadcast %cst_27 : f32 to vector<8x128xf32>
    %103 = arith.addf %102, %101 : vector<8x128xf32>
    %104 = arith.divf %102, %103 : vector<8x128xf32>
    %105 = arith.addf %92, %96 : vector<8x128xf32>
    %106 = arith.negf %105 : vector<8x128xf32>
    %107 = math.exp %106 : vector<8x128xf32>
    %cst_28 = arith.constant 1.000000e+00 : f32
    %108 = vector.broadcast %cst_28 : f32 to vector<8x128xf32>
    %109 = arith.addf %108, %107 : vector<8x128xf32>
    %110 = arith.divf %108, %109 : vector<8x128xf32>
    %111 = arith.mulf %104, %98 : vector<8x128xf32>
    %112 = arith.addf %94, %111 : vector<8x128xf32>
    %113 = math.tanh %112 : vector<8x128xf32>
    %114 = arith.subf %78, %113 : vector<8x128xf32>
    %115 = arith.mulf %110, %114 : vector<8x128xf32>
    %116 = arith.addf %113, %115 : vector<8x128xf32>
    %117 = arith.index_cast %c2_i32 : i32 to index
    %c0_29 = arith.constant 0 : index
    %c0_30 = arith.constant 0 : index
    %118 = vector.load %arg6[%117, %c0_29, %c0_30] : memref<8x8x128xf32, #tpu.memory_space<vmem>>, vector<1x8x128xf32>
    %119 = vector.shape_cast %118 : vector<1x8x128xf32> to vector<8x128xf32>
    %120 = vector.shape_cast %116 : vector<8x128xf32> to vector<1x8x128xf32>
    tpu.vector_store %arg6[%117, %c0_29, %c0_30], %120 {strides = array<i32>} : memref<8x8x128xf32, #tpu.memory_space<vmem>>, vector<1x8x128xf32>,
    %c3_i32 = arith.constant 3 : i32
    %121 = arith.index_cast %c3_i32 : i32 to index
    %c0_31 = arith.constant 0 : index
    %c0_32 = arith.constant 0 : index
    %122 = vector.load %arg2[%121, %c0_31, %c0_32] : memref<8x8x384xbf16, #tpu.memory_space<vmem>>, vector<1x8x384xbf16>
    %123 = vector.shape_cast %122 : vector<1x8x384xbf16> to vector<8x384xbf16>
    %124 = arith.truncf %116 : vector<8x128xf32> to vector<8x128xbf16>
    %c0_33 = arith.constant 0 : index
    %c0_34 = arith.constant 0 : index
    %125 = vector.load %arg3[%c0_33, %c0_34] : memref<128x384xbf16, #tpu.memory_space<vmem>>, vector<128x384xbf16>
    %cst_35 = arith.constant dense<0.000000e+00> : vector<8x384xf32>
    %126 = tpu.matmul %124, %125, %cst_35 {dimension_numbers = #tpu.dot_dimension_numbers<[1], [0], [0], [1], [0, 0, 1, 1], [], []>} : vector<8x128xbf16>, vector<128x384xbf16>, vector<8x384xf32> -> vector<8x384xf32>
    %127 = vector.extract_strided_slice %123 {offsets = [0, 0], sizes = [8, 128], strides = [1, 1]} : vector<8x384xbf16> to vector<8x128xbf16>
    %128 = arith.extf %127 : vector<8x128xbf16> to vector<8x128xf32>
    %129 = vector.extract_strided_slice %123 {offsets = [0, 128], sizes = [8, 128], strides = [1, 1]} : vector<8x384xbf16> to vector<8x128xbf16>
    %130 = arith.extf %129 : vector<8x128xbf16> to vector<8x128xf32>
    %131 = vector.extract_strided_slice %123 {offsets = [0, 256], sizes = [8, 128], strides = [1, 1]} : vector<8x384xbf16> to vector<8x128xbf16>
    %132 = arith.extf %131 : vector<8x128xbf16> to vector<8x128xf32>
    %133 = vector.extract_strided_slice %126 {offsets = [0, 0], sizes = [8, 128], strides = [1, 1]} : vector<8x384xf32> to vector<8x128xf32>
    %134 = vector.extract_strided_slice %126 {offsets = [0, 128], sizes = [8, 128], strides = [1, 1]} : vector<8x384xf32> to vector<8x128xf32>
    %135 = vector.extract_strided_slice %126 {offsets = [0, 256], sizes = [8, 128], strides = [1, 1]} : vector<8x384xf32> to vector<8x128xf32>
    %136 = arith.addf %135, %5 : vector<8x128xf32>
    %137 = arith.addf %128, %133 : vector<8x128xf32>
    %138 = arith.negf %137 : vector<8x128xf32>
    %139 = math.exp %138 : vector<8x128xf32>
    %cst_36 = arith.constant 1.000000e+00 : f32
    %140 = vector.broadcast %cst_36 : f32 to vector<8x128xf32>
    %141 = arith.addf %140, %139 : vector<8x128xf32>
    %142 = arith.divf %140, %141 : vector<8x128xf32>
    %143 = arith.addf %130, %134 : vector<8x128xf32>
    %144 = arith.negf %143 : vector<8x128xf32>
    %145 = math.exp %144 : vector<8x128xf32>
    %cst_37 = arith.constant 1.000000e+00 : f32
    %146 = vector.broadcast %cst_37 : f32 to vector<8x128xf32>
    %147 = arith.addf %146, %145 : vector<8x128xf32>
    %148 = arith.divf %146, %147 : vector<8x128xf32>
    %149 = arith.mulf %142, %136 : vector<8x128xf32>
    %150 = arith.addf %132, %149 : vector<8x128xf32>
    %151 = math.tanh %150 : vector<8x128xf32>
    %152 = arith.subf %116, %151 : vector<8x128xf32>
    %153 = arith.mulf %148, %152 : vector<8x128xf32>
    %154 = arith.addf %151, %153 : vector<8x128xf32>
    %155 = arith.index_cast %c3_i32 : i32 to index
    %c0_38 = arith.constant 0 : index
    %c0_39 = arith.constant 0 : index
    %156 = vector.load %arg6[%155, %c0_38, %c0_39] : memref<8x8x128xf32, #tpu.memory_space<vmem>>, vector<1x8x128xf32>
    %157 = vector.shape_cast %156 : vector<1x8x128xf32> to vector<8x128xf32>
    %158 = vector.shape_cast %154 : vector<8x128xf32> to vector<1x8x128xf32>
    tpu.vector_store %arg6[%155, %c0_38, %c0_39], %158 {strides = array<i32>} : memref<8x8x128xf32, #tpu.memory_space<vmem>>, vector<1x8x128xf32>,
    %c4_i32 = arith.constant 4 : i32
    %159 = arith.index_cast %c4_i32 : i32 to index
    %c0_40 = arith.constant 0 : index
    %c0_41 = arith.constant 0 : index
    %160 = vector.load %arg2[%159, %c0_40, %c0_41] : memref<8x8x384xbf16, #tpu.memory_space<vmem>>, vector<1x8x384xbf16>
    %161 = vector.shape_cast %160 : vector<1x8x384xbf16> to vector<8x384xbf16>
    %162 = arith.truncf %154 : vector<8x128xf32> to vector<8x128xbf16>
    %c0_42 = arith.constant 0 : index
    %c0_43 = arith.constant 0 : index
    %163 = vector.load %arg3[%c0_42, %c0_43] : memref<128x384xbf16, #tpu.memory_space<vmem>>, vector<128x384xbf16>
    %cst_44 = arith.constant dense<0.000000e+00> : vector<8x384xf32>
    %164 = tpu.matmul %162, %163, %cst_44 {dimension_numbers = #tpu.dot_dimension_numbers<[1], [0], [0], [1], [0, 0, 1, 1], [], []>} : vector<8x128xbf16>, vector<128x384xbf16>, vector<8x384xf32> -> vector<8x384xf32>
    %165 = vector.extract_strided_slice %161 {offsets = [0, 0], sizes = [8, 128], strides = [1, 1]} : vector<8x384xbf16> to vector<8x128xbf16>
    %166 = arith.extf %165 : vector<8x128xbf16> to vector<8x128xf32>
    %167 = vector.extract_strided_slice %161 {offsets = [0, 128], sizes = [8, 128], strides = [1, 1]} : vector<8x384xbf16> to vector<8x128xbf16>
    %168 = arith.extf %167 : vector<8x128xbf16> to vector<8x128xf32>
    %169 = vector.extract_strided_slice %161 {offsets = [0, 256], sizes = [8, 128], strides = [1, 1]} : vector<8x384xbf16> to vector<8x128xbf16>
    %170 = arith.extf %169 : vector<8x128xbf16> to vector<8x128xf32>
    %171 = vector.extract_strided_slice %164 {offsets = [0, 0], sizes = [8, 128], strides = [1, 1]} : vector<8x384xf32> to vector<8x128xf32>
    %172 = vector.extract_strided_slice %164 {offsets = [0, 128], sizes = [8, 128], strides = [1, 1]} : vector<8x384xf32> to vector<8x128xf32>
    %173 = vector.extract_strided_slice %164 {offsets = [0, 256], sizes = [8, 128], strides = [1, 1]} : vector<8x384xf32> to vector<8x128xf32>
    %174 = arith.addf %173, %5 : vector<8x128xf32>
    %175 = arith.addf %166, %171 : vector<8x128xf32>
    %176 = arith.negf %175 : vector<8x128xf32>
    %177 = math.exp %176 : vector<8x128xf32>
    %cst_45 = arith.constant 1.000000e+00 : f32
    %178 = vector.broadcast %cst_45 : f32 to vector<8x128xf32>
    %179 = arith.addf %178, %177 : vector<8x128xf32>
    %180 = arith.divf %178, %179 : vector<8x128xf32>
    %181 = arith.addf %168, %172 : vector<8x128xf32>
    %182 = arith.negf %181 : vector<8x128xf32>
    %183 = math.exp %182 : vector<8x128xf32>
    %cst_46 = arith.constant 1.000000e+00 : f32
    %184 = vector.broadcast %cst_46 : f32 to vector<8x128xf32>
    %185 = arith.addf %184, %183 : vector<8x128xf32>
    %186 = arith.divf %184, %185 : vector<8x128xf32>
    %187 = arith.mulf %180, %174 : vector<8x128xf32>
    %188 = arith.addf %170, %187 : vector<8x128xf32>
    %189 = math.tanh %188 : vector<8x128xf32>
    %190 = arith.subf %154, %189 : vector<8x128xf32>
    %191 = arith.mulf %186, %190 : vector<8x128xf32>
    %192 = arith.addf %189, %191 : vector<8x128xf32>
    %193 = arith.index_cast %c4_i32 : i32 to index
    %c0_47 = arith.constant 0 : index
    %c0_48 = arith.constant 0 : index
    %194 = vector.load %arg6[%193, %c0_47, %c0_48] : memref<8x8x128xf32, #tpu.memory_space<vmem>>, vector<1x8x128xf32>
    %195 = vector.shape_cast %194 : vector<1x8x128xf32> to vector<8x128xf32>
    %196 = vector.shape_cast %192 : vector<8x128xf32> to vector<1x8x128xf32>
    tpu.vector_store %arg6[%193, %c0_47, %c0_48], %196 {strides = array<i32>} : memref<8x8x128xf32, #tpu.memory_space<vmem>>, vector<1x8x128xf32>,
    %c5_i32 = arith.constant 5 : i32
    %197 = arith.index_cast %c5_i32 : i32 to index
    %c0_49 = arith.constant 0 : index
    %c0_50 = arith.constant 0 : index
    %198 = vector.load %arg2[%197, %c0_49, %c0_50] : memref<8x8x384xbf16, #tpu.memory_space<vmem>>, vector<1x8x384xbf16>
    %199 = vector.shape_cast %198 : vector<1x8x384xbf16> to vector<8x384xbf16>
    %200 = arith.truncf %192 : vector<8x128xf32> to vector<8x128xbf16>
    %c0_51 = arith.constant 0 : index
    %c0_52 = arith.constant 0 : index
    %201 = vector.load %arg3[%c0_51, %c0_52] : memref<128x384xbf16, #tpu.memory_space<vmem>>, vector<128x384xbf16>
    %cst_53 = arith.constant dense<0.000000e+00> : vector<8x384xf32>
    %202 = tpu.matmul %200, %201, %cst_53 {dimension_numbers = #tpu.dot_dimension_numbers<[1], [0], [0], [1], [0, 0, 1, 1], [], []>} : vector<8x128xbf16>, vector<128x384xbf16>, vector<8x384xf32> -> vector<8x384xf32>
    %203 = vector.extract_strided_slice %199 {offsets = [0, 0], sizes = [8, 128], strides = [1, 1]} : vector<8x384xbf16> to vector<8x128xbf16>
    %204 = arith.extf %203 : vector<8x128xbf16> to vector<8x128xf32>
    %205 = vector.extract_strided_slice %199 {offsets = [0, 128], sizes = [8, 128], strides = [1, 1]} : vector<8x384xbf16> to vector<8x128xbf16>
    %206 = arith.extf %205 : vector<8x128xbf16> to vector<8x128xf32>
    %207 = vector.extract_strided_slice %199 {offsets = [0, 256], sizes = [8, 128], strides = [1, 1]} : vector<8x384xbf16> to vector<8x128xbf16>
    %208 = arith.extf %207 : vector<8x128xbf16> to vector<8x128xf32>
    %209 = vector.extract_strided_slice %202 {offsets = [0, 0], sizes = [8, 128], strides = [1, 1]} : vector<8x384xf32> to vector<8x128xf32>
    %210 = vector.extract_strided_slice %202 {offsets = [0, 128], sizes = [8, 128], strides = [1, 1]} : vector<8x384xf32> to vector<8x128xf32>
    %211 = vector.extract_strided_slice %202 {offsets = [0, 256], sizes = [8, 128], strides = [1, 1]} : vector<8x384xf32> to vector<8x128xf32>
    %212 = arith.addf %211, %5 : vector<8x128xf32>
    %213 = arith.addf %204, %209 : vector<8x128xf32>
    %214 = arith.negf %213 : vector<8x128xf32>
    %215 = math.exp %214 : vector<8x128xf32>
    %cst_54 = arith.constant 1.000000e+00 : f32
    %216 = vector.broadcast %cst_54 : f32 to vector<8x128xf32>
    %217 = arith.addf %216, %215 : vector<8x128xf32>
    %218 = arith.divf %216, %217 : vector<8x128xf32>
    %219 = arith.addf %206, %210 : vector<8x128xf32>
    %220 = arith.negf %219 : vector<8x128xf32>
    %221 = math.exp %220 : vector<8x128xf32>
    %cst_55 = arith.constant 1.000000e+00 : f32
    %222 = vector.broadcast %cst_55 : f32 to vector<8x128xf32>
    %223 = arith.addf %222, %221 : vector<8x128xf32>
    %224 = arith.divf %222, %223 : vector<8x128xf32>
    %225 = arith.mulf %218, %212 : vector<8x128xf32>
    %226 = arith.addf %208, %225 : vector<8x128xf32>
    %227 = math.tanh %226 : vector<8x128xf32>
    %228 = arith.subf %192, %227 : vector<8x128xf32>
    %229 = arith.mulf %224, %228 : vector<8x128xf32>
    %230 = arith.addf %227, %229 : vector<8x128xf32>
    %231 = arith.index_cast %c5_i32 : i32 to index
    %c0_56 = arith.constant 0 : index
    %c0_57 = arith.constant 0 : index
    %232 = vector.load %arg6[%231, %c0_56, %c0_57] : memref<8x8x128xf32, #tpu.memory_space<vmem>>, vector<1x8x128xf32>
    %233 = vector.shape_cast %232 : vector<1x8x128xf32> to vector<8x128xf32>
    %234 = vector.shape_cast %230 : vector<8x128xf32> to vector<1x8x128xf32>
    tpu.vector_store %arg6[%231, %c0_56, %c0_57], %234 {strides = array<i32>} : memref<8x8x128xf32, #tpu.memory_space<vmem>>, vector<1x8x128xf32>,
    %c6_i32 = arith.constant 6 : i32
    %235 = arith.index_cast %c6_i32 : i32 to index
    %c0_58 = arith.constant 0 : index
    %c0_59 = arith.constant 0 : index
    %236 = vector.load %arg2[%235, %c0_58, %c0_59] : memref<8x8x384xbf16, #tpu.memory_space<vmem>>, vector<1x8x384xbf16>
    %237 = vector.shape_cast %236 : vector<1x8x384xbf16> to vector<8x384xbf16>
    %238 = arith.truncf %230 : vector<8x128xf32> to vector<8x128xbf16>
    %c0_60 = arith.constant 0 : index
    %c0_61 = arith.constant 0 : index
    %239 = vector.load %arg3[%c0_60, %c0_61] : memref<128x384xbf16, #tpu.memory_space<vmem>>, vector<128x384xbf16>
    %cst_62 = arith.constant dense<0.000000e+00> : vector<8x384xf32>
    %240 = tpu.matmul %238, %239, %cst_62 {dimension_numbers = #tpu.dot_dimension_numbers<[1], [0], [0], [1], [0, 0, 1, 1], [], []>} : vector<8x128xbf16>, vector<128x384xbf16>, vector<8x384xf32> -> vector<8x384xf32>
    %241 = vector.extract_strided_slice %237 {offsets = [0, 0], sizes = [8, 128], strides = [1, 1]} : vector<8x384xbf16> to vector<8x128xbf16>
    %242 = arith.extf %241 : vector<8x128xbf16> to vector<8x128xf32>
    %243 = vector.extract_strided_slice %237 {offsets = [0, 128], sizes = [8, 128], strides = [1, 1]} : vector<8x384xbf16> to vector<8x128xbf16>
    %244 = arith.extf %243 : vector<8x128xbf16> to vector<8x128xf32>
    %245 = vector.extract_strided_slice %237 {offsets = [0, 256], sizes = [8, 128], strides = [1, 1]} : vector<8x384xbf16> to vector<8x128xbf16>
    %246 = arith.extf %245 : vector<8x128xbf16> to vector<8x128xf32>
    %247 = vector.extract_strided_slice %240 {offsets = [0, 0], sizes = [8, 128], strides = [1, 1]} : vector<8x384xf32> to vector<8x128xf32>
    %248 = vector.extract_strided_slice %240 {offsets = [0, 128], sizes = [8, 128], strides = [1, 1]} : vector<8x384xf32> to vector<8x128xf32>
    %249 = vector.extract_strided_slice %240 {offsets = [0, 256], sizes = [8, 128], strides = [1, 1]} : vector<8x384xf32> to vector<8x128xf32>
    %250 = arith.addf %249, %5 : vector<8x128xf32>
    %251 = arith.addf %242, %247 : vector<8x128xf32>
    %252 = arith.negf %251 : vector<8x128xf32>
    %253 = math.exp %252 : vector<8x128xf32>
    %cst_63 = arith.constant 1.000000e+00 : f32
    %254 = vector.broadcast %cst_63 : f32 to vector<8x128xf32>
    %255 = arith.addf %254, %253 : vector<8x128xf32>
    %256 = arith.divf %254, %255 : vector<8x128xf32>
    %257 = arith.addf %244, %248 : vector<8x128xf32>
    %258 = arith.negf %257 : vector<8x128xf32>
    %259 = math.exp %258 : vector<8x128xf32>
    %cst_64 = arith.constant 1.000000e+00 : f32
    %260 = vector.broadcast %cst_64 : f32 to vector<8x128xf32>
    %261 = arith.addf %260, %259 : vector<8x128xf32>
    %262 = arith.divf %260, %261 : vector<8x128xf32>
    %263 = arith.mulf %256, %250 : vector<8x128xf32>
    %264 = arith.addf %246, %263 : vector<8x128xf32>
    %265 = math.tanh %264 : vector<8x128xf32>
    %266 = arith.subf %230, %265 : vector<8x128xf32>
    %267 = arith.mulf %262, %266 : vector<8x128xf32>
    %268 = arith.addf %265, %267 : vector<8x128xf32>
    %269 = arith.index_cast %c6_i32 : i32 to index
    %c0_65 = arith.constant 0 : index
    %c0_66 = arith.constant 0 : index
    %270 = vector.load %arg6[%269, %c0_65, %c0_66] : memref<8x8x128xf32, #tpu.memory_space<vmem>>, vector<1x8x128xf32>
    %271 = vector.shape_cast %270 : vector<1x8x128xf32> to vector<8x128xf32>
    %272 = vector.shape_cast %268 : vector<8x128xf32> to vector<1x8x128xf32>
    tpu.vector_store %arg6[%269, %c0_65, %c0_66], %272 {strides = array<i32>} : memref<8x8x128xf32, #tpu.memory_space<vmem>>, vector<1x8x128xf32>,
    %c7_i32 = arith.constant 7 : i32
    %273 = arith.index_cast %c7_i32 : i32 to index
    %c0_67 = arith.constant 0 : index
    %c0_68 = arith.constant 0 : index
    %274 = vector.load %arg2[%273, %c0_67, %c0_68] : memref<8x8x384xbf16, #tpu.memory_space<vmem>>, vector<1x8x384xbf16>
    %275 = vector.shape_cast %274 : vector<1x8x384xbf16> to vector<8x384xbf16>
    %276 = arith.truncf %268 : vector<8x128xf32> to vector<8x128xbf16>
    %c0_69 = arith.constant 0 : index
    %c0_70 = arith.constant 0 : index
    %277 = vector.load %arg3[%c0_69, %c0_70] : memref<128x384xbf16, #tpu.memory_space<vmem>>, vector<128x384xbf16>
    %cst_71 = arith.constant dense<0.000000e+00> : vector<8x384xf32>
    %278 = tpu.matmul %276, %277, %cst_71 {dimension_numbers = #tpu.dot_dimension_numbers<[1], [0], [0], [1], [0, 0, 1, 1], [], []>} : vector<8x128xbf16>, vector<128x384xbf16>, vector<8x384xf32> -> vector<8x384xf32>
    %279 = vector.extract_strided_slice %275 {offsets = [0, 0], sizes = [8, 128], strides = [1, 1]} : vector<8x384xbf16> to vector<8x128xbf16>
    %280 = arith.extf %279 : vector<8x128xbf16> to vector<8x128xf32>
    %281 = vector.extract_strided_slice %275 {offsets = [0, 128], sizes = [8, 128], strides = [1, 1]} : vector<8x384xbf16> to vector<8x128xbf16>
    %282 = arith.extf %281 : vector<8x128xbf16> to vector<8x128xf32>
    %283 = vector.extract_strided_slice %275 {offsets = [0, 256], sizes = [8, 128], strides = [1, 1]} : vector<8x384xbf16> to vector<8x128xbf16>
    %284 = arith.extf %283 : vector<8x128xbf16> to vector<8x128xf32>
    %285 = vector.extract_strided_slice %278 {offsets = [0, 0], sizes = [8, 128], strides = [1, 1]} : vector<8x384xf32> to vector<8x128xf32>
    %286 = vector.extract_strided_slice %278 {offsets = [0, 128], sizes = [8, 128], strides = [1, 1]} : vector<8x384xf32> to vector<8x128xf32>
    %287 = vector.extract_strided_slice %278 {offsets = [0, 256], sizes = [8, 128], strides = [1, 1]} : vector<8x384xf32> to vector<8x128xf32>
    %288 = arith.addf %287, %5 : vector<8x128xf32>
    %289 = arith.addf %280, %285 : vector<8x128xf32>
    %290 = arith.negf %289 : vector<8x128xf32>
    %291 = math.exp %290 : vector<8x128xf32>
    %cst_72 = arith.constant 1.000000e+00 : f32
    %292 = vector.broadcast %cst_72 : f32 to vector<8x128xf32>
    %293 = arith.addf %292, %291 : vector<8x128xf32>
    %294 = arith.divf %292, %293 : vector<8x128xf32>
    %295 = arith.addf %282, %286 : vector<8x128xf32>
    %296 = arith.negf %295 : vector<8x128xf32>
    %297 = math.exp %296 : vector<8x128xf32>
    %cst_73 = arith.constant 1.000000e+00 : f32
    %298 = vector.broadcast %cst_73 : f32 to vector<8x128xf32>
    %299 = arith.addf %298, %297 : vector<8x128xf32>
    %300 = arith.divf %298, %299 : vector<8x128xf32>
    %301 = arith.mulf %294, %288 : vector<8x128xf32>
    %302 = arith.addf %284, %301 : vector<8x128xf32>
    %303 = math.tanh %302 : vector<8x128xf32>
    %304 = arith.subf %268, %303 : vector<8x128xf32>
    %305 = arith.mulf %300, %304 : vector<8x128xf32>
    %306 = arith.addf %303, %305 : vector<8x128xf32>
    %307 = arith.index_cast %c7_i32 : i32 to index
    %c0_74 = arith.constant 0 : index
    %c0_75 = arith.constant 0 : index
    %308 = vector.load %arg6[%307, %c0_74, %c0_75] : memref<8x8x128xf32, #tpu.memory_space<vmem>>, vector<1x8x128xf32>
    %309 = vector.shape_cast %308 : vector<1x8x128xf32> to vector<8x128xf32>
    %310 = vector.shape_cast %306 : vector<8x128xf32> to vector<1x8x128xf32>
    tpu.vector_store %arg6[%307, %c0_74, %c0_75], %310 {strides = array<i32>} : memref<8x8x128xf32, #tpu.memory_space<vmem>>, vector<1x8x128xf32>,
    %c8_i32 = arith.constant 8 : i32
    %c0_76 = arith.constant 0 : index
    %c0_77 = arith.constant 0 : index
    %311 = vector.load %arg7[%c0_76, %c0_77] : memref<8x128xf32, #tpu.memory_space<vmem>>, vector<8x128xf32>
    tpu.vector_store %arg7[%c0_76, %c0_77], %306 {strides = array<i32>} : memref<8x128xf32, #tpu.memory_space<vmem>>, vector<8x128xf32>,
    return
  }
  func.func @transform_0(%arg0: i32, %arg1: i32) -> (i32, i32, i32) {
    %c0_i32 = arith.constant 0 : i32
    %c0_i32_0 = arith.constant 0 : i32
    return %arg1, %arg0, %c0_i32 : i32, i32, i32
  }
  func.func @transform_1(%arg0: i32, %arg1: i32) -> (i32, i32) {
    %c0_i32 = arith.constant 0 : i32
    %c0_i32_0 = arith.constant 0 : i32
    %c0_i32_1 = arith.constant 0 : i32
    return %c0_i32, %c0_i32_0 : i32, i32
  }
  func.func @transform_2(%arg0: i32, %arg1: i32) -> (i32, i32) {
    %c0_i32 = arith.constant 0 : i32
    %c0_i32_0 = arith.constant 0 : i32
    %c0_i32_1 = arith.constant 0 : i32
    return %c0_i32, %c0_i32_0 : i32, i32
  }
  func.func @transform_3(%arg0: i32, %arg1: i32) -> (i32, i32) {
    %c0_i32 = arith.constant 0 : i32
    %c0_i32_0 = arith.constant 0 : i32
    return %arg0, %c0_i32 : i32, i32
  }
  func.func @transform_4(%arg0: i32, %arg1: i32) -> (i32, i32, i32) {
    %c0_i32 = arith.constant 0 : i32
    %c0_i32_0 = arith.constant 0 : i32
    return %arg1, %arg0, %c0_i32 : i32, i32, i32
  }
}

module attributes {stable_mosaic.version = 11 : i64} {
  func.func @_gru_recurrent_kernel(%arg0: i32, %arg1: i32, %arg2: memref<8x8x384xbf16, #tpu.memory_space<vmem>>, %arg3: memref<128x384xbf16, #tpu.memory_space<vmem>>, %arg4: memref<1x128xf32, #tpu.memory_space<vmem>>, %arg5: memref<8x128xf32, #tpu.memory_space<vmem>>, %arg6: memref<8x8x128xbf16, #tpu.memory_space<vmem>>, %arg7: memref<8x128xf32, #tpu.memory_space<vmem>>) attributes {dimension_semantics = [#tpu.dimension_semantics<parallel>, #tpu.dimension_semantics<arbitrary>], iteration_bounds = array<i64: 1, 1>, scalar_prefetch = 0 : i64, scratch_operands = 1 : i64, tpu.core_type = #tpu.core_type<tc>, window_params = [{transform_indices = @transform_0, window_bounds = array<i64: 8, 8, 384>}, {pipeline_mode = #tpu.pipeline_mode<synchronous>, transform_indices = @transform_1, window_bounds = array<i64: 128, 384>}, {pipeline_mode = #tpu.pipeline_mode<synchronous>, transform_indices = @transform_2, window_bounds = array<i64: 1, 128>}, {transform_indices = @transform_3, window_bounds = array<i64: 8, 128>}, {transform_indices = @transform_4, window_bounds = array<i64: 8, 8, 128>}]} {
    %c0_i32 = arith.constant 0 : i32
    %0 = arith.cmpi eq, %arg1, %c0_i32 : i32
    %1 = arith.extui %0 : i1 to i32
    %c0_i32_0 = arith.constant 0 : i32
    %2 = arith.cmpi ne, %1, %c0_i32_0 : i32
    scf.if %2 {
      %c0_78 = arith.constant 0 : index
      %c0_79 = arith.constant 0 : index
      %320 = vector.load %arg5[%c0_78, %c0_79] : memref<8x128xf32, #tpu.memory_space<vmem>>, vector<8x128xf32>
      %c0_80 = arith.constant 0 : index
      %c0_81 = arith.constant 0 : index
      %321 = vector.load %arg7[%c0_80, %c0_81] : memref<8x128xf32, #tpu.memory_space<vmem>>, vector<8x128xf32>
      tpu.vector_store %arg7[%c0_80, %c0_81], %320 {strides = array<i32>} : memref<8x128xf32, #tpu.memory_space<vmem>>, vector<8x128xf32>,
    } else {
    }
    %c0 = arith.constant 0 : index
    %c0_1 = arith.constant 0 : index
    %3 = vector.load %arg4[%c0, %c0_1] : memref<1x128xf32, #tpu.memory_space<vmem>>, vector<1x128xf32>
    %4 = vector.shape_cast %3 : vector<1x128xf32> to vector<1x128xf32>
    %5 = vector.broadcast %4 : vector<1x128xf32> to vector<8x128xf32>
    %c0_2 = arith.constant 0 : index
    %c0_3 = arith.constant 0 : index
    %6 = vector.load %arg7[%c0_2, %c0_3] : memref<8x128xf32, #tpu.memory_space<vmem>>, vector<8x128xf32>
    %c0_i32_4 = arith.constant 0 : i32
    %7 = arith.index_cast %c0_i32_4 : i32 to index
    %c0_5 = arith.constant 0 : index
    %c0_6 = arith.constant 0 : index
    %8 = vector.load %arg2[%7, %c0_5, %c0_6] : memref<8x8x384xbf16, #tpu.memory_space<vmem>>, vector<1x8x384xbf16>
    %9 = vector.shape_cast %8 : vector<1x8x384xbf16> to vector<8x384xbf16>
    %10 = arith.truncf %6 : vector<8x128xf32> to vector<8x128xbf16>
    %c0_7 = arith.constant 0 : index
    %c0_8 = arith.constant 0 : index
    %11 = vector.load %arg3[%c0_7, %c0_8] : memref<128x384xbf16, #tpu.memory_space<vmem>>, vector<128x384xbf16>
    %cst = arith.constant dense<0.000000e+00> : vector<8x384xf32>
    %12 = tpu.matmul %10, %11, %cst {dimension_numbers = #tpu.dot_dimension_numbers<[1], [0], [0], [1], [0, 0, 1, 1], [], []>} : vector<8x128xbf16>, vector<128x384xbf16>, vector<8x384xf32> -> vector<8x384xf32>
    %13 = vector.extract_strided_slice %9 {offsets = [0, 0], sizes = [8, 128], strides = [1, 1]} : vector<8x384xbf16> to vector<8x128xbf16>
    %14 = arith.extf %13 : vector<8x128xbf16> to vector<8x128xf32>
    %15 = vector.extract_strided_slice %9 {offsets = [0, 128], sizes = [8, 128], strides = [1, 1]} : vector<8x384xbf16> to vector<8x128xbf16>
    %16 = arith.extf %15 : vector<8x128xbf16> to vector<8x128xf32>
    %17 = vector.extract_strided_slice %9 {offsets = [0, 256], sizes = [8, 128], strides = [1, 1]} : vector<8x384xbf16> to vector<8x128xbf16>
    %18 = arith.extf %17 : vector<8x128xbf16> to vector<8x128xf32>
    %19 = vector.extract_strided_slice %12 {offsets = [0, 0], sizes = [8, 128], strides = [1, 1]} : vector<8x384xf32> to vector<8x128xf32>
    %20 = vector.extract_strided_slice %12 {offsets = [0, 128], sizes = [8, 128], strides = [1, 1]} : vector<8x384xf32> to vector<8x128xf32>
    %21 = vector.extract_strided_slice %12 {offsets = [0, 256], sizes = [8, 128], strides = [1, 1]} : vector<8x384xf32> to vector<8x128xf32>
    %22 = arith.addf %21, %5 : vector<8x128xf32>
    %23 = arith.addf %14, %19 : vector<8x128xf32>
    %24 = arith.negf %23 : vector<8x128xf32>
    %25 = math.exp %24 : vector<8x128xf32>
    %cst_9 = arith.constant 1.000000e+00 : f32
    %26 = vector.broadcast %cst_9 : f32 to vector<8x128xf32>
    %27 = arith.addf %26, %25 : vector<8x128xf32>
    %28 = arith.divf %26, %27 : vector<8x128xf32>
    %29 = arith.addf %16, %20 : vector<8x128xf32>
    %30 = arith.negf %29 : vector<8x128xf32>
    %31 = math.exp %30 : vector<8x128xf32>
    %cst_10 = arith.constant 1.000000e+00 : f32
    %32 = vector.broadcast %cst_10 : f32 to vector<8x128xf32>
    %33 = arith.addf %32, %31 : vector<8x128xf32>
    %34 = arith.divf %32, %33 : vector<8x128xf32>
    %35 = arith.mulf %28, %22 : vector<8x128xf32>
    %36 = arith.addf %18, %35 : vector<8x128xf32>
    %37 = math.tanh %36 : vector<8x128xf32>
    %38 = arith.subf %6, %37 : vector<8x128xf32>
    %39 = arith.mulf %34, %38 : vector<8x128xf32>
    %40 = arith.addf %37, %39 : vector<8x128xf32>
    %41 = arith.truncf %40 : vector<8x128xf32> to vector<8x128xbf16>
    %42 = arith.index_cast %c0_i32_4 : i32 to index
    %c0_11 = arith.constant 0 : index
    %c0_12 = arith.constant 0 : index
    %43 = vector.load %arg6[%42, %c0_11, %c0_12] : memref<8x8x128xbf16, #tpu.memory_space<vmem>>, vector<1x8x128xbf16>
    %44 = vector.shape_cast %43 : vector<1x8x128xbf16> to vector<8x128xbf16>
    %45 = vector.shape_cast %41 : vector<8x128xbf16> to vector<1x8x128xbf16>
    tpu.vector_store %arg6[%42, %c0_11, %c0_12], %45 {strides = array<i32>} : memref<8x8x128xbf16, #tpu.memory_space<vmem>>, vector<1x8x128xbf16>,
    %c1_i32 = arith.constant 1 : i32
    %46 = arith.index_cast %c1_i32 : i32 to index
    %c0_13 = arith.constant 0 : index
    %c0_14 = arith.constant 0 : index
    %47 = vector.load %arg2[%46, %c0_13, %c0_14] : memref<8x8x384xbf16, #tpu.memory_space<vmem>>, vector<1x8x384xbf16>
    %48 = vector.shape_cast %47 : vector<1x8x384xbf16> to vector<8x384xbf16>
    %49 = arith.truncf %40 : vector<8x128xf32> to vector<8x128xbf16>
    %c0_15 = arith.constant 0 : index
    %c0_16 = arith.constant 0 : index
    %50 = vector.load %arg3[%c0_15, %c0_16] : memref<128x384xbf16, #tpu.memory_space<vmem>>, vector<128x384xbf16>
    %cst_17 = arith.constant dense<0.000000e+00> : vector<8x384xf32>
    %51 = tpu.matmul %49, %50, %cst_17 {dimension_numbers = #tpu.dot_dimension_numbers<[1], [0], [0], [1], [0, 0, 1, 1], [], []>} : vector<8x128xbf16>, vector<128x384xbf16>, vector<8x384xf32> -> vector<8x384xf32>
    %52 = vector.extract_strided_slice %48 {offsets = [0, 0], sizes = [8, 128], strides = [1, 1]} : vector<8x384xbf16> to vector<8x128xbf16>
    %53 = arith.extf %52 : vector<8x128xbf16> to vector<8x128xf32>
    %54 = vector.extract_strided_slice %48 {offsets = [0, 128], sizes = [8, 128], strides = [1, 1]} : vector<8x384xbf16> to vector<8x128xbf16>
    %55 = arith.extf %54 : vector<8x128xbf16> to vector<8x128xf32>
    %56 = vector.extract_strided_slice %48 {offsets = [0, 256], sizes = [8, 128], strides = [1, 1]} : vector<8x384xbf16> to vector<8x128xbf16>
    %57 = arith.extf %56 : vector<8x128xbf16> to vector<8x128xf32>
    %58 = vector.extract_strided_slice %51 {offsets = [0, 0], sizes = [8, 128], strides = [1, 1]} : vector<8x384xf32> to vector<8x128xf32>
    %59 = vector.extract_strided_slice %51 {offsets = [0, 128], sizes = [8, 128], strides = [1, 1]} : vector<8x384xf32> to vector<8x128xf32>
    %60 = vector.extract_strided_slice %51 {offsets = [0, 256], sizes = [8, 128], strides = [1, 1]} : vector<8x384xf32> to vector<8x128xf32>
    %61 = arith.addf %60, %5 : vector<8x128xf32>
    %62 = arith.addf %53, %58 : vector<8x128xf32>
    %63 = arith.negf %62 : vector<8x128xf32>
    %64 = math.exp %63 : vector<8x128xf32>
    %cst_18 = arith.constant 1.000000e+00 : f32
    %65 = vector.broadcast %cst_18 : f32 to vector<8x128xf32>
    %66 = arith.addf %65, %64 : vector<8x128xf32>
    %67 = arith.divf %65, %66 : vector<8x128xf32>
    %68 = arith.addf %55, %59 : vector<8x128xf32>
    %69 = arith.negf %68 : vector<8x128xf32>
    %70 = math.exp %69 : vector<8x128xf32>
    %cst_19 = arith.constant 1.000000e+00 : f32
    %71 = vector.broadcast %cst_19 : f32 to vector<8x128xf32>
    %72 = arith.addf %71, %70 : vector<8x128xf32>
    %73 = arith.divf %71, %72 : vector<8x128xf32>
    %74 = arith.mulf %67, %61 : vector<8x128xf32>
    %75 = arith.addf %57, %74 : vector<8x128xf32>
    %76 = math.tanh %75 : vector<8x128xf32>
    %77 = arith.subf %40, %76 : vector<8x128xf32>
    %78 = arith.mulf %73, %77 : vector<8x128xf32>
    %79 = arith.addf %76, %78 : vector<8x128xf32>
    %80 = arith.truncf %79 : vector<8x128xf32> to vector<8x128xbf16>
    %81 = arith.index_cast %c1_i32 : i32 to index
    %c0_20 = arith.constant 0 : index
    %c0_21 = arith.constant 0 : index
    %82 = vector.load %arg6[%81, %c0_20, %c0_21] : memref<8x8x128xbf16, #tpu.memory_space<vmem>>, vector<1x8x128xbf16>
    %83 = vector.shape_cast %82 : vector<1x8x128xbf16> to vector<8x128xbf16>
    %84 = vector.shape_cast %80 : vector<8x128xbf16> to vector<1x8x128xbf16>
    tpu.vector_store %arg6[%81, %c0_20, %c0_21], %84 {strides = array<i32>} : memref<8x8x128xbf16, #tpu.memory_space<vmem>>, vector<1x8x128xbf16>,
    %c2_i32 = arith.constant 2 : i32
    %85 = arith.index_cast %c2_i32 : i32 to index
    %c0_22 = arith.constant 0 : index
    %c0_23 = arith.constant 0 : index
    %86 = vector.load %arg2[%85, %c0_22, %c0_23] : memref<8x8x384xbf16, #tpu.memory_space<vmem>>, vector<1x8x384xbf16>
    %87 = vector.shape_cast %86 : vector<1x8x384xbf16> to vector<8x384xbf16>
    %88 = arith.truncf %79 : vector<8x128xf32> to vector<8x128xbf16>
    %c0_24 = arith.constant 0 : index
    %c0_25 = arith.constant 0 : index
    %89 = vector.load %arg3[%c0_24, %c0_25] : memref<128x384xbf16, #tpu.memory_space<vmem>>, vector<128x384xbf16>
    %cst_26 = arith.constant dense<0.000000e+00> : vector<8x384xf32>
    %90 = tpu.matmul %88, %89, %cst_26 {dimension_numbers = #tpu.dot_dimension_numbers<[1], [0], [0], [1], [0, 0, 1, 1], [], []>} : vector<8x128xbf16>, vector<128x384xbf16>, vector<8x384xf32> -> vector<8x384xf32>
    %91 = vector.extract_strided_slice %87 {offsets = [0, 0], sizes = [8, 128], strides = [1, 1]} : vector<8x384xbf16> to vector<8x128xbf16>
    %92 = arith.extf %91 : vector<8x128xbf16> to vector<8x128xf32>
    %93 = vector.extract_strided_slice %87 {offsets = [0, 128], sizes = [8, 128], strides = [1, 1]} : vector<8x384xbf16> to vector<8x128xbf16>
    %94 = arith.extf %93 : vector<8x128xbf16> to vector<8x128xf32>
    %95 = vector.extract_strided_slice %87 {offsets = [0, 256], sizes = [8, 128], strides = [1, 1]} : vector<8x384xbf16> to vector<8x128xbf16>
    %96 = arith.extf %95 : vector<8x128xbf16> to vector<8x128xf32>
    %97 = vector.extract_strided_slice %90 {offsets = [0, 0], sizes = [8, 128], strides = [1, 1]} : vector<8x384xf32> to vector<8x128xf32>
    %98 = vector.extract_strided_slice %90 {offsets = [0, 128], sizes = [8, 128], strides = [1, 1]} : vector<8x384xf32> to vector<8x128xf32>
    %99 = vector.extract_strided_slice %90 {offsets = [0, 256], sizes = [8, 128], strides = [1, 1]} : vector<8x384xf32> to vector<8x128xf32>
    %100 = arith.addf %99, %5 : vector<8x128xf32>
    %101 = arith.addf %92, %97 : vector<8x128xf32>
    %102 = arith.negf %101 : vector<8x128xf32>
    %103 = math.exp %102 : vector<8x128xf32>
    %cst_27 = arith.constant 1.000000e+00 : f32
    %104 = vector.broadcast %cst_27 : f32 to vector<8x128xf32>
    %105 = arith.addf %104, %103 : vector<8x128xf32>
    %106 = arith.divf %104, %105 : vector<8x128xf32>
    %107 = arith.addf %94, %98 : vector<8x128xf32>
    %108 = arith.negf %107 : vector<8x128xf32>
    %109 = math.exp %108 : vector<8x128xf32>
    %cst_28 = arith.constant 1.000000e+00 : f32
    %110 = vector.broadcast %cst_28 : f32 to vector<8x128xf32>
    %111 = arith.addf %110, %109 : vector<8x128xf32>
    %112 = arith.divf %110, %111 : vector<8x128xf32>
    %113 = arith.mulf %106, %100 : vector<8x128xf32>
    %114 = arith.addf %96, %113 : vector<8x128xf32>
    %115 = math.tanh %114 : vector<8x128xf32>
    %116 = arith.subf %79, %115 : vector<8x128xf32>
    %117 = arith.mulf %112, %116 : vector<8x128xf32>
    %118 = arith.addf %115, %117 : vector<8x128xf32>
    %119 = arith.truncf %118 : vector<8x128xf32> to vector<8x128xbf16>
    %120 = arith.index_cast %c2_i32 : i32 to index
    %c0_29 = arith.constant 0 : index
    %c0_30 = arith.constant 0 : index
    %121 = vector.load %arg6[%120, %c0_29, %c0_30] : memref<8x8x128xbf16, #tpu.memory_space<vmem>>, vector<1x8x128xbf16>
    %122 = vector.shape_cast %121 : vector<1x8x128xbf16> to vector<8x128xbf16>
    %123 = vector.shape_cast %119 : vector<8x128xbf16> to vector<1x8x128xbf16>
    tpu.vector_store %arg6[%120, %c0_29, %c0_30], %123 {strides = array<i32>} : memref<8x8x128xbf16, #tpu.memory_space<vmem>>, vector<1x8x128xbf16>,
    %c3_i32 = arith.constant 3 : i32
    %124 = arith.index_cast %c3_i32 : i32 to index
    %c0_31 = arith.constant 0 : index
    %c0_32 = arith.constant 0 : index
    %125 = vector.load %arg2[%124, %c0_31, %c0_32] : memref<8x8x384xbf16, #tpu.memory_space<vmem>>, vector<1x8x384xbf16>
    %126 = vector.shape_cast %125 : vector<1x8x384xbf16> to vector<8x384xbf16>
    %127 = arith.truncf %118 : vector<8x128xf32> to vector<8x128xbf16>
    %c0_33 = arith.constant 0 : index
    %c0_34 = arith.constant 0 : index
    %128 = vector.load %arg3[%c0_33, %c0_34] : memref<128x384xbf16, #tpu.memory_space<vmem>>, vector<128x384xbf16>
    %cst_35 = arith.constant dense<0.000000e+00> : vector<8x384xf32>
    %129 = tpu.matmul %127, %128, %cst_35 {dimension_numbers = #tpu.dot_dimension_numbers<[1], [0], [0], [1], [0, 0, 1, 1], [], []>} : vector<8x128xbf16>, vector<128x384xbf16>, vector<8x384xf32> -> vector<8x384xf32>
    %130 = vector.extract_strided_slice %126 {offsets = [0, 0], sizes = [8, 128], strides = [1, 1]} : vector<8x384xbf16> to vector<8x128xbf16>
    %131 = arith.extf %130 : vector<8x128xbf16> to vector<8x128xf32>
    %132 = vector.extract_strided_slice %126 {offsets = [0, 128], sizes = [8, 128], strides = [1, 1]} : vector<8x384xbf16> to vector<8x128xbf16>
    %133 = arith.extf %132 : vector<8x128xbf16> to vector<8x128xf32>
    %134 = vector.extract_strided_slice %126 {offsets = [0, 256], sizes = [8, 128], strides = [1, 1]} : vector<8x384xbf16> to vector<8x128xbf16>
    %135 = arith.extf %134 : vector<8x128xbf16> to vector<8x128xf32>
    %136 = vector.extract_strided_slice %129 {offsets = [0, 0], sizes = [8, 128], strides = [1, 1]} : vector<8x384xf32> to vector<8x128xf32>
    %137 = vector.extract_strided_slice %129 {offsets = [0, 128], sizes = [8, 128], strides = [1, 1]} : vector<8x384xf32> to vector<8x128xf32>
    %138 = vector.extract_strided_slice %129 {offsets = [0, 256], sizes = [8, 128], strides = [1, 1]} : vector<8x384xf32> to vector<8x128xf32>
    %139 = arith.addf %138, %5 : vector<8x128xf32>
    %140 = arith.addf %131, %136 : vector<8x128xf32>
    %141 = arith.negf %140 : vector<8x128xf32>
    %142 = math.exp %141 : vector<8x128xf32>
    %cst_36 = arith.constant 1.000000e+00 : f32
    %143 = vector.broadcast %cst_36 : f32 to vector<8x128xf32>
    %144 = arith.addf %143, %142 : vector<8x128xf32>
    %145 = arith.divf %143, %144 : vector<8x128xf32>
    %146 = arith.addf %133, %137 : vector<8x128xf32>
    %147 = arith.negf %146 : vector<8x128xf32>
    %148 = math.exp %147 : vector<8x128xf32>
    %cst_37 = arith.constant 1.000000e+00 : f32
    %149 = vector.broadcast %cst_37 : f32 to vector<8x128xf32>
    %150 = arith.addf %149, %148 : vector<8x128xf32>
    %151 = arith.divf %149, %150 : vector<8x128xf32>
    %152 = arith.mulf %145, %139 : vector<8x128xf32>
    %153 = arith.addf %135, %152 : vector<8x128xf32>
    %154 = math.tanh %153 : vector<8x128xf32>
    %155 = arith.subf %118, %154 : vector<8x128xf32>
    %156 = arith.mulf %151, %155 : vector<8x128xf32>
    %157 = arith.addf %154, %156 : vector<8x128xf32>
    %158 = arith.truncf %157 : vector<8x128xf32> to vector<8x128xbf16>
    %159 = arith.index_cast %c3_i32 : i32 to index
    %c0_38 = arith.constant 0 : index
    %c0_39 = arith.constant 0 : index
    %160 = vector.load %arg6[%159, %c0_38, %c0_39] : memref<8x8x128xbf16, #tpu.memory_space<vmem>>, vector<1x8x128xbf16>
    %161 = vector.shape_cast %160 : vector<1x8x128xbf16> to vector<8x128xbf16>
    %162 = vector.shape_cast %158 : vector<8x128xbf16> to vector<1x8x128xbf16>
    tpu.vector_store %arg6[%159, %c0_38, %c0_39], %162 {strides = array<i32>} : memref<8x8x128xbf16, #tpu.memory_space<vmem>>, vector<1x8x128xbf16>,
    %c4_i32 = arith.constant 4 : i32
    %163 = arith.index_cast %c4_i32 : i32 to index
    %c0_40 = arith.constant 0 : index
    %c0_41 = arith.constant 0 : index
    %164 = vector.load %arg2[%163, %c0_40, %c0_41] : memref<8x8x384xbf16, #tpu.memory_space<vmem>>, vector<1x8x384xbf16>
    %165 = vector.shape_cast %164 : vector<1x8x384xbf16> to vector<8x384xbf16>
    %166 = arith.truncf %157 : vector<8x128xf32> to vector<8x128xbf16>
    %c0_42 = arith.constant 0 : index
    %c0_43 = arith.constant 0 : index
    %167 = vector.load %arg3[%c0_42, %c0_43] : memref<128x384xbf16, #tpu.memory_space<vmem>>, vector<128x384xbf16>
    %cst_44 = arith.constant dense<0.000000e+00> : vector<8x384xf32>
    %168 = tpu.matmul %166, %167, %cst_44 {dimension_numbers = #tpu.dot_dimension_numbers<[1], [0], [0], [1], [0, 0, 1, 1], [], []>} : vector<8x128xbf16>, vector<128x384xbf16>, vector<8x384xf32> -> vector<8x384xf32>
    %169 = vector.extract_strided_slice %165 {offsets = [0, 0], sizes = [8, 128], strides = [1, 1]} : vector<8x384xbf16> to vector<8x128xbf16>
    %170 = arith.extf %169 : vector<8x128xbf16> to vector<8x128xf32>
    %171 = vector.extract_strided_slice %165 {offsets = [0, 128], sizes = [8, 128], strides = [1, 1]} : vector<8x384xbf16> to vector<8x128xbf16>
    %172 = arith.extf %171 : vector<8x128xbf16> to vector<8x128xf32>
    %173 = vector.extract_strided_slice %165 {offsets = [0, 256], sizes = [8, 128], strides = [1, 1]} : vector<8x384xbf16> to vector<8x128xbf16>
    %174 = arith.extf %173 : vector<8x128xbf16> to vector<8x128xf32>
    %175 = vector.extract_strided_slice %168 {offsets = [0, 0], sizes = [8, 128], strides = [1, 1]} : vector<8x384xf32> to vector<8x128xf32>
    %176 = vector.extract_strided_slice %168 {offsets = [0, 128], sizes = [8, 128], strides = [1, 1]} : vector<8x384xf32> to vector<8x128xf32>
    %177 = vector.extract_strided_slice %168 {offsets = [0, 256], sizes = [8, 128], strides = [1, 1]} : vector<8x384xf32> to vector<8x128xf32>
    %178 = arith.addf %177, %5 : vector<8x128xf32>
    %179 = arith.addf %170, %175 : vector<8x128xf32>
    %180 = arith.negf %179 : vector<8x128xf32>
    %181 = math.exp %180 : vector<8x128xf32>
    %cst_45 = arith.constant 1.000000e+00 : f32
    %182 = vector.broadcast %cst_45 : f32 to vector<8x128xf32>
    %183 = arith.addf %182, %181 : vector<8x128xf32>
    %184 = arith.divf %182, %183 : vector<8x128xf32>
    %185 = arith.addf %172, %176 : vector<8x128xf32>
    %186 = arith.negf %185 : vector<8x128xf32>
    %187 = math.exp %186 : vector<8x128xf32>
    %cst_46 = arith.constant 1.000000e+00 : f32
    %188 = vector.broadcast %cst_46 : f32 to vector<8x128xf32>
    %189 = arith.addf %188, %187 : vector<8x128xf32>
    %190 = arith.divf %188, %189 : vector<8x128xf32>
    %191 = arith.mulf %184, %178 : vector<8x128xf32>
    %192 = arith.addf %174, %191 : vector<8x128xf32>
    %193 = math.tanh %192 : vector<8x128xf32>
    %194 = arith.subf %157, %193 : vector<8x128xf32>
    %195 = arith.mulf %190, %194 : vector<8x128xf32>
    %196 = arith.addf %193, %195 : vector<8x128xf32>
    %197 = arith.truncf %196 : vector<8x128xf32> to vector<8x128xbf16>
    %198 = arith.index_cast %c4_i32 : i32 to index
    %c0_47 = arith.constant 0 : index
    %c0_48 = arith.constant 0 : index
    %199 = vector.load %arg6[%198, %c0_47, %c0_48] : memref<8x8x128xbf16, #tpu.memory_space<vmem>>, vector<1x8x128xbf16>
    %200 = vector.shape_cast %199 : vector<1x8x128xbf16> to vector<8x128xbf16>
    %201 = vector.shape_cast %197 : vector<8x128xbf16> to vector<1x8x128xbf16>
    tpu.vector_store %arg6[%198, %c0_47, %c0_48], %201 {strides = array<i32>} : memref<8x8x128xbf16, #tpu.memory_space<vmem>>, vector<1x8x128xbf16>,
    %c5_i32 = arith.constant 5 : i32
    %202 = arith.index_cast %c5_i32 : i32 to index
    %c0_49 = arith.constant 0 : index
    %c0_50 = arith.constant 0 : index
    %203 = vector.load %arg2[%202, %c0_49, %c0_50] : memref<8x8x384xbf16, #tpu.memory_space<vmem>>, vector<1x8x384xbf16>
    %204 = vector.shape_cast %203 : vector<1x8x384xbf16> to vector<8x384xbf16>
    %205 = arith.truncf %196 : vector<8x128xf32> to vector<8x128xbf16>
    %c0_51 = arith.constant 0 : index
    %c0_52 = arith.constant 0 : index
    %206 = vector.load %arg3[%c0_51, %c0_52] : memref<128x384xbf16, #tpu.memory_space<vmem>>, vector<128x384xbf16>
    %cst_53 = arith.constant dense<0.000000e+00> : vector<8x384xf32>
    %207 = tpu.matmul %205, %206, %cst_53 {dimension_numbers = #tpu.dot_dimension_numbers<[1], [0], [0], [1], [0, 0, 1, 1], [], []>} : vector<8x128xbf16>, vector<128x384xbf16>, vector<8x384xf32> -> vector<8x384xf32>
    %208 = vector.extract_strided_slice %204 {offsets = [0, 0], sizes = [8, 128], strides = [1, 1]} : vector<8x384xbf16> to vector<8x128xbf16>
    %209 = arith.extf %208 : vector<8x128xbf16> to vector<8x128xf32>
    %210 = vector.extract_strided_slice %204 {offsets = [0, 128], sizes = [8, 128], strides = [1, 1]} : vector<8x384xbf16> to vector<8x128xbf16>
    %211 = arith.extf %210 : vector<8x128xbf16> to vector<8x128xf32>
    %212 = vector.extract_strided_slice %204 {offsets = [0, 256], sizes = [8, 128], strides = [1, 1]} : vector<8x384xbf16> to vector<8x128xbf16>
    %213 = arith.extf %212 : vector<8x128xbf16> to vector<8x128xf32>
    %214 = vector.extract_strided_slice %207 {offsets = [0, 0], sizes = [8, 128], strides = [1, 1]} : vector<8x384xf32> to vector<8x128xf32>
    %215 = vector.extract_strided_slice %207 {offsets = [0, 128], sizes = [8, 128], strides = [1, 1]} : vector<8x384xf32> to vector<8x128xf32>
    %216 = vector.extract_strided_slice %207 {offsets = [0, 256], sizes = [8, 128], strides = [1, 1]} : vector<8x384xf32> to vector<8x128xf32>
    %217 = arith.addf %216, %5 : vector<8x128xf32>
    %218 = arith.addf %209, %214 : vector<8x128xf32>
    %219 = arith.negf %218 : vector<8x128xf32>
    %220 = math.exp %219 : vector<8x128xf32>
    %cst_54 = arith.constant 1.000000e+00 : f32
    %221 = vector.broadcast %cst_54 : f32 to vector<8x128xf32>
    %222 = arith.addf %221, %220 : vector<8x128xf32>
    %223 = arith.divf %221, %222 : vector<8x128xf32>
    %224 = arith.addf %211, %215 : vector<8x128xf32>
    %225 = arith.negf %224 : vector<8x128xf32>
    %226 = math.exp %225 : vector<8x128xf32>
    %cst_55 = arith.constant 1.000000e+00 : f32
    %227 = vector.broadcast %cst_55 : f32 to vector<8x128xf32>
    %228 = arith.addf %227, %226 : vector<8x128xf32>
    %229 = arith.divf %227, %228 : vector<8x128xf32>
    %230 = arith.mulf %223, %217 : vector<8x128xf32>
    %231 = arith.addf %213, %230 : vector<8x128xf32>
    %232 = math.tanh %231 : vector<8x128xf32>
    %233 = arith.subf %196, %232 : vector<8x128xf32>
    %234 = arith.mulf %229, %233 : vector<8x128xf32>
    %235 = arith.addf %232, %234 : vector<8x128xf32>
    %236 = arith.truncf %235 : vector<8x128xf32> to vector<8x128xbf16>
    %237 = arith.index_cast %c5_i32 : i32 to index
    %c0_56 = arith.constant 0 : index
    %c0_57 = arith.constant 0 : index
    %238 = vector.load %arg6[%237, %c0_56, %c0_57] : memref<8x8x128xbf16, #tpu.memory_space<vmem>>, vector<1x8x128xbf16>
    %239 = vector.shape_cast %238 : vector<1x8x128xbf16> to vector<8x128xbf16>
    %240 = vector.shape_cast %236 : vector<8x128xbf16> to vector<1x8x128xbf16>
    tpu.vector_store %arg6[%237, %c0_56, %c0_57], %240 {strides = array<i32>} : memref<8x8x128xbf16, #tpu.memory_space<vmem>>, vector<1x8x128xbf16>,
    %c6_i32 = arith.constant 6 : i32
    %241 = arith.index_cast %c6_i32 : i32 to index
    %c0_58 = arith.constant 0 : index
    %c0_59 = arith.constant 0 : index
    %242 = vector.load %arg2[%241, %c0_58, %c0_59] : memref<8x8x384xbf16, #tpu.memory_space<vmem>>, vector<1x8x384xbf16>
    %243 = vector.shape_cast %242 : vector<1x8x384xbf16> to vector<8x384xbf16>
    %244 = arith.truncf %235 : vector<8x128xf32> to vector<8x128xbf16>
    %c0_60 = arith.constant 0 : index
    %c0_61 = arith.constant 0 : index
    %245 = vector.load %arg3[%c0_60, %c0_61] : memref<128x384xbf16, #tpu.memory_space<vmem>>, vector<128x384xbf16>
    %cst_62 = arith.constant dense<0.000000e+00> : vector<8x384xf32>
    %246 = tpu.matmul %244, %245, %cst_62 {dimension_numbers = #tpu.dot_dimension_numbers<[1], [0], [0], [1], [0, 0, 1, 1], [], []>} : vector<8x128xbf16>, vector<128x384xbf16>, vector<8x384xf32> -> vector<8x384xf32>
    %247 = vector.extract_strided_slice %243 {offsets = [0, 0], sizes = [8, 128], strides = [1, 1]} : vector<8x384xbf16> to vector<8x128xbf16>
    %248 = arith.extf %247 : vector<8x128xbf16> to vector<8x128xf32>
    %249 = vector.extract_strided_slice %243 {offsets = [0, 128], sizes = [8, 128], strides = [1, 1]} : vector<8x384xbf16> to vector<8x128xbf16>
    %250 = arith.extf %249 : vector<8x128xbf16> to vector<8x128xf32>
    %251 = vector.extract_strided_slice %243 {offsets = [0, 256], sizes = [8, 128], strides = [1, 1]} : vector<8x384xbf16> to vector<8x128xbf16>
    %252 = arith.extf %251 : vector<8x128xbf16> to vector<8x128xf32>
    %253 = vector.extract_strided_slice %246 {offsets = [0, 0], sizes = [8, 128], strides = [1, 1]} : vector<8x384xf32> to vector<8x128xf32>
    %254 = vector.extract_strided_slice %246 {offsets = [0, 128], sizes = [8, 128], strides = [1, 1]} : vector<8x384xf32> to vector<8x128xf32>
    %255 = vector.extract_strided_slice %246 {offsets = [0, 256], sizes = [8, 128], strides = [1, 1]} : vector<8x384xf32> to vector<8x128xf32>
    %256 = arith.addf %255, %5 : vector<8x128xf32>
    %257 = arith.addf %248, %253 : vector<8x128xf32>
    %258 = arith.negf %257 : vector<8x128xf32>
    %259 = math.exp %258 : vector<8x128xf32>
    %cst_63 = arith.constant 1.000000e+00 : f32
    %260 = vector.broadcast %cst_63 : f32 to vector<8x128xf32>
    %261 = arith.addf %260, %259 : vector<8x128xf32>
    %262 = arith.divf %260, %261 : vector<8x128xf32>
    %263 = arith.addf %250, %254 : vector<8x128xf32>
    %264 = arith.negf %263 : vector<8x128xf32>
    %265 = math.exp %264 : vector<8x128xf32>
    %cst_64 = arith.constant 1.000000e+00 : f32
    %266 = vector.broadcast %cst_64 : f32 to vector<8x128xf32>
    %267 = arith.addf %266, %265 : vector<8x128xf32>
    %268 = arith.divf %266, %267 : vector<8x128xf32>
    %269 = arith.mulf %262, %256 : vector<8x128xf32>
    %270 = arith.addf %252, %269 : vector<8x128xf32>
    %271 = math.tanh %270 : vector<8x128xf32>
    %272 = arith.subf %235, %271 : vector<8x128xf32>
    %273 = arith.mulf %268, %272 : vector<8x128xf32>
    %274 = arith.addf %271, %273 : vector<8x128xf32>
    %275 = arith.truncf %274 : vector<8x128xf32> to vector<8x128xbf16>
    %276 = arith.index_cast %c6_i32 : i32 to index
    %c0_65 = arith.constant 0 : index
    %c0_66 = arith.constant 0 : index
    %277 = vector.load %arg6[%276, %c0_65, %c0_66] : memref<8x8x128xbf16, #tpu.memory_space<vmem>>, vector<1x8x128xbf16>
    %278 = vector.shape_cast %277 : vector<1x8x128xbf16> to vector<8x128xbf16>
    %279 = vector.shape_cast %275 : vector<8x128xbf16> to vector<1x8x128xbf16>
    tpu.vector_store %arg6[%276, %c0_65, %c0_66], %279 {strides = array<i32>} : memref<8x8x128xbf16, #tpu.memory_space<vmem>>, vector<1x8x128xbf16>,
    %c7_i32 = arith.constant 7 : i32
    %280 = arith.index_cast %c7_i32 : i32 to index
    %c0_67 = arith.constant 0 : index
    %c0_68 = arith.constant 0 : index
    %281 = vector.load %arg2[%280, %c0_67, %c0_68] : memref<8x8x384xbf16, #tpu.memory_space<vmem>>, vector<1x8x384xbf16>
    %282 = vector.shape_cast %281 : vector<1x8x384xbf16> to vector<8x384xbf16>
    %283 = arith.truncf %274 : vector<8x128xf32> to vector<8x128xbf16>
    %c0_69 = arith.constant 0 : index
    %c0_70 = arith.constant 0 : index
    %284 = vector.load %arg3[%c0_69, %c0_70] : memref<128x384xbf16, #tpu.memory_space<vmem>>, vector<128x384xbf16>
    %cst_71 = arith.constant dense<0.000000e+00> : vector<8x384xf32>
    %285 = tpu.matmul %283, %284, %cst_71 {dimension_numbers = #tpu.dot_dimension_numbers<[1], [0], [0], [1], [0, 0, 1, 1], [], []>} : vector<8x128xbf16>, vector<128x384xbf16>, vector<8x384xf32> -> vector<8x384xf32>
    %286 = vector.extract_strided_slice %282 {offsets = [0, 0], sizes = [8, 128], strides = [1, 1]} : vector<8x384xbf16> to vector<8x128xbf16>
    %287 = arith.extf %286 : vector<8x128xbf16> to vector<8x128xf32>
    %288 = vector.extract_strided_slice %282 {offsets = [0, 128], sizes = [8, 128], strides = [1, 1]} : vector<8x384xbf16> to vector<8x128xbf16>
    %289 = arith.extf %288 : vector<8x128xbf16> to vector<8x128xf32>
    %290 = vector.extract_strided_slice %282 {offsets = [0, 256], sizes = [8, 128], strides = [1, 1]} : vector<8x384xbf16> to vector<8x128xbf16>
    %291 = arith.extf %290 : vector<8x128xbf16> to vector<8x128xf32>
    %292 = vector.extract_strided_slice %285 {offsets = [0, 0], sizes = [8, 128], strides = [1, 1]} : vector<8x384xf32> to vector<8x128xf32>
    %293 = vector.extract_strided_slice %285 {offsets = [0, 128], sizes = [8, 128], strides = [1, 1]} : vector<8x384xf32> to vector<8x128xf32>
    %294 = vector.extract_strided_slice %285 {offsets = [0, 256], sizes = [8, 128], strides = [1, 1]} : vector<8x384xf32> to vector<8x128xf32>
    %295 = arith.addf %294, %5 : vector<8x128xf32>
    %296 = arith.addf %287, %292 : vector<8x128xf32>
    %297 = arith.negf %296 : vector<8x128xf32>
    %298 = math.exp %297 : vector<8x128xf32>
    %cst_72 = arith.constant 1.000000e+00 : f32
    %299 = vector.broadcast %cst_72 : f32 to vector<8x128xf32>
    %300 = arith.addf %299, %298 : vector<8x128xf32>
    %301 = arith.divf %299, %300 : vector<8x128xf32>
    %302 = arith.addf %289, %293 : vector<8x128xf32>
    %303 = arith.negf %302 : vector<8x128xf32>
    %304 = math.exp %303 : vector<8x128xf32>
    %cst_73 = arith.constant 1.000000e+00 : f32
    %305 = vector.broadcast %cst_73 : f32 to vector<8x128xf32>
    %306 = arith.addf %305, %304 : vector<8x128xf32>
    %307 = arith.divf %305, %306 : vector<8x128xf32>
    %308 = arith.mulf %301, %295 : vector<8x128xf32>
    %309 = arith.addf %291, %308 : vector<8x128xf32>
    %310 = math.tanh %309 : vector<8x128xf32>
    %311 = arith.subf %274, %310 : vector<8x128xf32>
    %312 = arith.mulf %307, %311 : vector<8x128xf32>
    %313 = arith.addf %310, %312 : vector<8x128xf32>
    %314 = arith.truncf %313 : vector<8x128xf32> to vector<8x128xbf16>
    %315 = arith.index_cast %c7_i32 : i32 to index
    %c0_74 = arith.constant 0 : index
    %c0_75 = arith.constant 0 : index
    %316 = vector.load %arg6[%315, %c0_74, %c0_75] : memref<8x8x128xbf16, #tpu.memory_space<vmem>>, vector<1x8x128xbf16>
    %317 = vector.shape_cast %316 : vector<1x8x128xbf16> to vector<8x128xbf16>
    %318 = vector.shape_cast %314 : vector<8x128xbf16> to vector<1x8x128xbf16>
    tpu.vector_store %arg6[%315, %c0_74, %c0_75], %318 {strides = array<i32>} : memref<8x8x128xbf16, #tpu.memory_space<vmem>>, vector<1x8x128xbf16>,
    %c8_i32 = arith.constant 8 : i32
    %c0_76 = arith.constant 0 : index
    %c0_77 = arith.constant 0 : index
    %319 = vector.load %arg7[%c0_76, %c0_77] : memref<8x128xf32, #tpu.memory_space<vmem>>, vector<8x128xf32>
    tpu.vector_store %arg7[%c0_76, %c0_77], %313 {strides = array<i32>} : memref<8x128xf32, #tpu.memory_space<vmem>>, vector<8x128xf32>,
    return
  }
  func.func @transform_0(%arg0: i32, %arg1: i32) -> (i32, i32, i32) {
    %c0_i32 = arith.constant 0 : i32
    %c0_i32_0 = arith.constant 0 : i32
    return %arg1, %arg0, %c0_i32 : i32, i32, i32
  }
  func.func @transform_1(%arg0: i32, %arg1: i32) -> (i32, i32) {
    %c0_i32 = arith.constant 0 : i32
    %c0_i32_0 = arith.constant 0 : i32
    %c0_i32_1 = arith.constant 0 : i32
    return %c0_i32, %c0_i32_0 : i32, i32
  }
  func.func @transform_2(%arg0: i32, %arg1: i32) -> (i32, i32) {
    %c0_i32 = arith.constant 0 : i32
    %c0_i32_0 = arith.constant 0 : i32
    %c0_i32_1 = arith.constant 0 : i32
    return %c0_i32, %c0_i32_0 : i32, i32
  }
  func.func @transform_3(%arg0: i32, %arg1: i32) -> (i32, i32) {
    %c0_i32 = arith.constant 0 : i32
    %c0_i32_0 = arith.constant 0 : i32
    return %arg0, %c0_i32 : i32, i32
  }
  func.func @transform_4(%arg0: i32, %arg1: i32) -> (i32, i32, i32) {
    %c0_i32 = arith.constant 0 : i32
    %c0_i32_0 = arith.constant 0 : i32
    return %arg1, %arg0, %c0_i32 : i32, i32, i32
  }
}

</mosaic_0001>

<bundles_post_ra>
// kernel: tpu_custom_call.1
= control target key start
LH: loop header
LB: loop body
LE: loop exit
PB: predicated region body
PF: predicated region fallthrough
CT: control target
= control target key end

     0   :  { %6 = vsyncpa [#allocation3], 0  ;;  %s441_s0 = inlined_call_operand.hbm [shape: f32[8,128], index: 0, kind: input, shape index: {}]   ;;  %s442_s1 = inlined_call_operand.hbm [shape: f32[16,128], index: 1, kind: output, shape index: {}]  }
   0x1   :  { %7 = vsyncpa [#allocation4], 0 }
   0x2   :  { %9 = vsyncpa [#allocation4 + $0x1], 0  ;;  %s357_s6 = smov 0   ;;  %s359_s7 = smov 0  }
   0x3   :  { %s361_s8 = smov 0   ;;  %s363_s9 = smov 0  }
   0x4 LB: > { %s378_s10 = sadd.s32 4294967295, %s344_s9   ;;  %s188_s11 = sadd.s32 4294967294, %s344_s9   ;;  %s344_s9 = sphi %s363_s9, %s448_s9   ;;  %s340_s8 = sphi %s361_s8, %s447_s8   ;;  %s336_s7 = sphi %s359_s7, %s446_s7   ;;  %s332_s6 = sphi %s357_s6, %s445_s6  }
   0x5   : > { %s382_s12 = sadd.s32 1, %s344_s9   ;;  %s43_s13 = sadd.s32 1, %s340_s8 }
   0x6   : > { %s40_s14 = ssub.s32 %s344_s9, %s382_s12  ;;  %p53_p0 = scmp.ne.s32.totalorder %s340_s8, %s336_s7 }
   0x7   : > { %p41_p1 = scmp.eq.s32.totalorder %s40_s14, 0  ;;  %p54_p2 = scmp.eq.s32.totalorder %s378_s10, 1 }
   0x8   : > { %p59_p3 = scmp.ne.s32.totalorder %s336_s7, %s332_s6  ;;  %p60_p4 = scmp.eq.s32.totalorder %s188_s11, 1 }
   0x9   : > { %s393_s15 = scalar_select %p41_p1, %s340_s8, %s43_s13  }
   0xa   : > { %p395_p5 = por %p54_p2, %p53_p0  ;;  %p399_p6 = por %p60_p4, %p59_p3 }
   0xb   : > { %p189_p7 = scmp.ge.s32.totalorder %s344_s9, 1  ;;  %p67_p8 = scmp.lt.s32.totalorder %s344_s9, 3 }
   0xc   : > { %p212_p9 = scmp.eq.s32.totalorder %s378_s10, 0  ;;  %s79_s20 = sshll.u32 %s441_s0, 4  ;;  %s80_s20 = int_to_ptr.hbm [resolvable:$true] %s79_s20 }
   0xd   : > { %p68_p10 = pnand %p189_p7, %p67_p8  ;;  %s346_s21 = smov [#allocation2]  }
   0xe   : > { %s81_s22 = sshll.u32 %s346_s21, 4  ;;  %s82_s22 = int_to_ptr.vmem [resolvable:$true] %s81_s22 }
   0xf   : > { %p204_p11 = pneg %p68_p10  ;;  %94 = sbr.rel (%p68_p10) target bundleno = 37 (0x25), region = 24 }
  0x11   : > { %p205_p12 = pnand %p212_p9, %p204_p11 }
  0x13   : > { %207 = dma.hbm_to_vmem [thread:$0]  (!%p205_p12), %s80_s20, 128, %s82_s22, [#allocation3]  }
  0x14   : > { %323 = dma.done.wait (%p212_p9), [#allocation3], 128  }
  0x15   : > { %325 = vsyncadd (%p212_p9), [#allocation3], 4294967168  ;;  %s107_s23 = sand.u32 1, %s336_s7   ;;  %s195_s24 = sshll.u32 %s378_s10, 3  ;;  %v110_v0 = vld [vmem:[#allocation2] sm:$0xff] }
  0x16   : > { %s193_s25 = sshll.u32 %s107_s23, 3  ;;  %s124_s28 = scalar_lea.hbm %s442_s1, %s195_s24  ;;  %v111_v1 = vadd.f32 1.0, %v110_v0 }
  0x17   : > { %s109_s29 = scalar_lea.vmem [#allocation5], %s193_s25  ;;  %s128_s2 = sshll.u32 %s124_s28, 4  ;;  %s129_s2 = int_to_ptr.hbm [resolvable:$true] %s128_s2 }
  0x18   : > { %s126_s30 = sshll.u32 %s109_s29, 4  ;;  %112 = vst [vmem:[%s109_s29] sm:$0xff] %v111_v1  ;;  %s114_s3 = scalar_lea.sflag [#allocation4], %s107_s23  ;;  %s127_s30 = int_to_ptr.vmem [resolvable:$true] %s126_s30 }
  0x19   : > { %s292_s4 = sshra.s32 %s129_s2, 4  ;;  %s298_s13 = scalar_lea.hbm %s442_s1, 16  ;;  %s293_s4 = int_to_ptr.hbm [resolvable:$true] %s292_s4 }
  0x1a   : > { %s294_s5 = scalar_lea.hbm %s293_s4, 8  ;;  %p299_p2 = scmp.lt.s32.totalorder %s293_s4, %s442_s1 }
  0x1b   : > { %p295_p13 = scmp.ne.s32.totalorder %s293_s4, %s294_s5  ;;  %p300_p3 = scmp.lt.s32.totalorder %s298_s13, %s294_s5 }
  0x1d   : > { %p296_p0 = pnand %p295_p13, %p395_p5  ;;  %p301_p4 = por %p300_p3, %p299_p2 }
  0x1f   : > { %p297_p1 = pneg %p296_p0 }
  0x21   : > { %p302_p7 = pnand %p301_p4, %p297_p1 }
  0x23   : > { %305 = shalt.err (!%p302_p7)
}
  0x24   : > { %202 = dma.vmem_to_hbm [thread:$0]  (%p395_p5), %s127_s30, 128, %s129_s2, %s114_s3  }
  0x25 PF: > { %p214_p8 = scmp.ge.s32.totalorder %s344_s9, 2  ;;  %s140_s19 = sand.u32 1, %s332_s6  }
  0x26   : > { %s141_s20 = scalar_lea.sflag [#allocation4], %s140_s19 }
  0x27   : > { %p209_p9 = pnand %p214_p8, %p399_p6 }
  0x29   : > { %p210_p10 = pneg %p209_p9 }
  0x2b   : > { %327 = dma.done.wait (%p210_p10), %s141_s20, 128  }
  0x2c   : > { %329 = vsyncadd (%p210_p10), %s141_s20, 4294967168  ;;  %p12_p11 = scmp.ge.s32.totalorder %s382_s12, 4   ;;  %s445_s6 = smov %s336_s7 }
  0x2d   : > { %s446_s7 = smov %s340_s8  ;;  %s447_s8 = smov %s393_s15 }
  0x2e   : > { %s448_s9 = smov %s382_s12  ;;  %14 = sbr.rel (!%p12_p11) target bundleno = 4 (0x4), region = 61 }
  0x33   :  { %147 = vsyncpa [#allocation3], 1 }
  0x34   :  { %149 = vsyncpa [#allocation3 + $0x1], 1 }
  0x35   :  { %150 = vsyncpa [#allocation4], 1 }
  0x36   :  { %152 = vsyncpa [#allocation4 + $0x1], 1 }

// kernel: _decoder_gru_forward_impl.3
= control target key start
LH: loop header
LB: loop body
LE: loop exit
PB: predicated region body
PF: predicated region fallthrough
CT: control target
= control target key end

     0   :  { %s4503_s1 = inlined_call_operand.vmem [shape: bf16[128,384], index: 1, kind: input, shape index: {}]   ;;  %s4504_s3 = inlined_call_operand.vmem [shape: f32[8,128], index: 3, kind: input, shape index: {}]   ;;  %s4505_s2 = inlined_call_operand.vmem [shape: f32[1,128], index: 2, kind: input, shape index: {}]   ;;  %s4506_s0 = inlined_call_operand.vmem [shape: bf16[8,8,384], index: 0, kind: input, shape index: {}]   ;;  %s4507_s4 = inlined_call_operand.vmem [shape: f32[8,8,128], index: 4, kind: output, shape index: {}]  }
   0x1   :  { %v2181_v0 = vld [vmem:[%s4503_s1 + $0xa8] sm:$0xf]  ;;  %v2922_v1 = vld [vmem:[%s4503_s1 + $0xb0] sm:$0xf0]  ;;  %v2921_v2 = vld [vmem:[%s4503_s1 + $0xac] sm:$0xf] }
   0x2   :  { %v2182_v3 = vor.u32 %v2922_v1, %v2181_v0  ;;  %v2183_v4 = vld [vmem:[%s4503_s1 + $0xb4] sm:$0xf0]  ;;  %v2169_v5 = vld [vmem:[%s4503_s1 + $0x90] sm:$0xf]  ;;  %v2919_v6 = vld [vmem:[%s4503_s1 + $0x98] sm:$0xf0] }
   0x3   :  { %v2186_v7 = vor.u32 %v2921_v2, %v2183_v4  ;;  %v2918_v8 = vld [vmem:[%s4503_s1 + $0x94] sm:$0xf]  ;;  %v2171_v9 = vld [vmem:[%s4503_s1 + $0x9c] sm:$0xf0]  ;;  %v2170_v10 = vor.u32 %v2919_v6, %v2169_v5  ;;  %v2157_v12 = vld [vmem:[%s4503_s1 + $0x78] sm:$0xf] }
   0x4   :  { %191 = vmatpush.bf16.msra.mxu0 %v2182_v3  ;;  %v2174_v11 = vor.u32 %v2918_v8, %v2171_v9  ;;  %v2916_v13 = vld [vmem:[%s4503_s1 + $0x80] sm:$0xf0]  ;;  %v2915_v14 = vld [vmem:[%s4503_s1 + $0x7c] sm:$0xf]  ;;  %v2159_v15 = vld [vmem:[%s4503_s1 + $0x84] sm:$0xf0] }
   0x5   :  { %204 = vmatpush.bf16.msra.mxu1 %v2186_v7  ;;  %v2189_v16 = vld [vmem:[%s4503_s1 + $0xb0] sm:$0xf]  ;;  %v2923_v17 = vld [vmem:[%s4503_s1 + $0xb8] sm:$0xf0]  ;;  %v2158_v19 = vor.u32 %v2916_v13, %v2157_v12  ;;  %v2177_v20 = vld [vmem:[%s4503_s1 + $0x98] sm:$0xf]  ;;  %v2162_v22 = vor.u32 %v2915_v14, %v2159_v15 }
   0x6   :  { %v2190_v18 = vor.u32 %v2923_v17, %v2189_v16  ;;  %v2920_v21 = vld [vmem:[%s4503_s1 + $0xa0] sm:$0xf0]  ;;  %v2145_v23 = vld [vmem:[%s4503_s1 + $0x60] sm:$0xf]  ;;  %v2913_v24 = vld [vmem:[%s4503_s1 + $0x68] sm:$0xf0] }
   0x7   :  { %v2912_v25 = vld [vmem:[%s4503_s1 + $0x64] sm:$0xf]  ;;  %v2178_v26 = vor.u32 %v2920_v21, %v2177_v20  ;;  %v2147_v27 = vld [vmem:[%s4503_s1 + $0x6c] sm:$0xf0]  ;;  %v2165_v28 = vld [vmem:[%s4503_s1 + $0x80] sm:$0xf]  ;;  %v2146_v30 = vor.u32 %v2913_v24, %v2145_v23 }
   0x8   :  { %192 = vmatpush.bf16.msra.mxu0 %v2170_v10  ;;  %217 = vmatpush.bf16.msra.mxu2 %v2190_v18  ;;  %v2917_v29 = vld [vmem:[%s4503_s1 + $0x88] sm:$0xf0]  ;;  %v2150_v31 = vor.u32 %v2912_v25, %v2147_v27  ;;  %v2133_v32 = vld [vmem:[%s4503_s1 + $0x48] sm:$0xf]  ;;  %v2910_v33 = vld [vmem:[%s4503_s1 + $0x50] sm:$0xf0] }
   0x9   :  { %205 = vmatpush.bf16.msra.mxu1 %v2174_v11  ;;  %v2909_v34 = vld [vmem:[%s4503_s1 + $0x4c] sm:$0xf]  ;;  %v2166_v35 = vor.u32 %v2917_v29, %v2165_v28  ;;  %v2135_v36 = vld [vmem:[%s4503_s1 + $0x54] sm:$0xf0]  ;;  %v2153_v37 = vld [vmem:[%s4503_s1 + $0x68] sm:$0xf]  ;;  %v2134_v39 = vor.u32 %v2910_v33, %v2133_v32 }
   0xa   :  { %v2914_v38 = vld [vmem:[%s4503_s1 + $0x70] sm:$0xf0]  ;;  %v2138_v40 = vor.u32 %v2909_v34, %v2135_v36  ;;  %v2121_v41 = vld [vmem:[%s4503_s1 + $0x30] sm:$0xf]  ;;  %v2907_v42 = vld [vmem:[%s4503_s1 + $0x38] sm:$0xf0] }
   0xb   :  { %v2906_v43 = vld [vmem:[%s4503_s1 + $0x34] sm:$0xf]  ;;  %v2154_v44 = vor.u32 %v2914_v38, %v2153_v37  ;;  %v2123_v45 = vld [vmem:[%s4503_s1 + $0x3c] sm:$0xf0]  ;;  %v2141_v46 = vld [vmem:[%s4503_s1 + $0x50] sm:$0xf]  ;;  %v2122_v48 = vor.u32 %v2907_v42, %v2121_v41 }
   0xc   :  { %193 = vmatpush.bf16.msra.mxu0 %v2158_v19  ;;  %218 = vmatpush.bf16.msra.mxu2 %v2178_v26  ;;  %v2911_v47 = vld [vmem:[%s4503_s1 + $0x58] sm:$0xf0]  ;;  %v2126_v49 = vor.u32 %v2906_v43, %v2123_v45  ;;  %v2109_v50 = vld [vmem:[%s4503_s1 + $0x18] sm:$0xf]  ;;  %v2904_v51 = vld [vmem:[%s4503_s1 + $0x20] sm:$0xf0] }
   0xd   :  { %206 = vmatpush.bf16.msra.mxu1 %v2162_v22  ;;  %v2903_v52 = vld [vmem:[%s4503_s1 + $0x1c] sm:$0xf]  ;;  %v2142_v53 = vor.u32 %v2911_v47, %v2141_v46  ;;  %v2111_v54 = vld [vmem:[%s4503_s1 + $0x24] sm:$0xf0]  ;;  %v2129_v55 = vld [vmem:[%s4503_s1 + $0x38] sm:$0xf]  ;;  %v2110_v57 = vor.u32 %v2904_v51, %v2109_v50 }
   0xe   :  { %v2908_v56 = vld [vmem:[%s4503_s1 + $0x40] sm:$0xf0]  ;;  %v2114_v58 = vor.u32 %v2903_v52, %v2111_v54  ;;  %v2097_v59 = vld [vmem:[%s4503_s1] sm:$0xf]  ;;  %v2901_v60 = vld [vmem:[%s4503_s1 + $0x8] sm:$0xf0] }
   0xf   :  { %v2900_v61 = vld [vmem:[%s4503_s1 + $0x4] sm:$0xf]  ;;  %v2130_v62 = vor.u32 %v2908_v56, %v2129_v55  ;;  %v2099_v63 = vld [vmem:[%s4503_s1 + $0xc] sm:$0xf0]  ;;  %v2117_v0 = vld [vmem:[%s4503_s1 + $0x20] sm:$0xf]  ;;  %v2098_v2 = vor.u32 %v2901_v60, %v2097_v59 }
  0x10   :  { %194 = vmatpush.bf16.msra.mxu0 %v2146_v30  ;;  %219 = vmatpush.bf16.msra.mxu2 %v2166_v35  ;;  %v2905_v1 = vld [vmem:[%s4503_s1 + $0x28] sm:$0xf0]  ;;  %v3340_v3 = vld [vmem:[%s4504_s3] sm:$0xff]  ;;  %v2102_v4 = vor.u32 %v2900_v61, %v2099_v63  ;;  %v2105_v6 = vld [vmem:[%s4503_s1 + $0x8] sm:$0xf] }
  0x11   :  { %207 = vmatpush.bf16.msra.mxu1 %v2150_v31  ;;  %v2118_v5 = vor.u32 %v2905_v1, %v2117_v0  ;;  %v2902_v7 = vld [vmem:[%s4503_s1 + $0x10] sm:$0xf0]  ;;  %v30_v8 = vpack.c.bf16 %v3340_v3, %v3340_v3  ;;  %v2281_v10 = vld [vmem:[%s4503_s1 + $0xa8] sm:$0xf]  ;;  %v2945_v12 = vld [vmem:[%s4503_s1 + $0xac] sm:$0xf] }
  0x12   :  { %v2106_v9 = vor.u32 %v2902_v7, %v2105_v6  ;;  %v2946_v11 = vld [vmem:[%s4503_s1 + $0xb0] sm:$0xf0]  ;;  %v2283_v14 = vld [vmem:[%s4503_s1 + $0xb4] sm:$0xf0]  ;;  %v2289_v15 = vld [vmem:[%s4503_s1 + $0xb0] sm:$0xf] }
  0x13   :  { %v2282_v13 = vor.u32 %v2946_v11, %v2281_v10  ;;  %v2947_v16 = vld [vmem:[%s4503_s1 + $0xb8] sm:$0xf0]  ;;  %v2286_v17 = vor.u32 %v2945_v12, %v2283_v14  ;;  %v2269_v19 = vld [vmem:[%s4503_s1 + $0x90] sm:$0xf]  ;;  %v2942_v21 = vld [vmem:[%s4503_s1 + $0x94] sm:$0xf] }
  0x14   :  { %195 = vmatpush.bf16.msra.mxu0 %v2134_v39  ;;  %220 = vmatpush.bf16.msra.mxu2 %v2154_v44  ;;  %v2290_v18 = vor.u32 %v2947_v16, %v2289_v15  ;;  %v2943_v20 = vld [vmem:[%s4503_s1 + $0x98] sm:$0xf0]  ;;  %v2271_v23 = vld [vmem:[%s4503_s1 + $0x9c] sm:$0xf0]  ;;  %v2277_v24 = vld [vmem:[%s4503_s1 + $0x98] sm:$0xf] }
  0x15   :  { %208 = vmatpush.bf16.msra.mxu1 %v2138_v40  ;;  %448 = vmatpush.bf16.msra.mxu3 %v2282_v13  ;;  %v2270_v22 = vor.u32 %v2943_v20, %v2269_v19  ;;  %v2944_v25 = vld [vmem:[%s4503_s1 + $0xa0] sm:$0xf0]  ;;  %v2274_v27 = vor.u32 %v2942_v21, %v2271_v23  ;;  %v2257_v29 = vld [vmem:[%s4503_s1 + $0x78] sm:$0xf]  ;;  %v2939_v31 = vld [vmem:[%s4503_s1 + $0x7c] sm:$0xf] }
  0x16   :  { %v28_v26 = vld [vmem:[%s4506_s0] sm:$0xff]  ;;  %v2278_v28 = vor.u32 %v2944_v25, %v2277_v24  ;;  %v2259_v34 = vld [vmem:[%s4503_s1 + $0x84] sm:$0xf0]  ;;  %v2941_v37 = vld [vmem:[%s4503_s1 + $0x88] sm:$0xf0] }
  0x17   :  { %v2940_v30 = vld [vmem:[%s4503_s1 + $0x80] sm:$0xf0]  ;;  %v232_v32 = vrot.slane %v28_v26, 4  ;;  %v2262_v35 = vor.u32 %v2939_v31, %v2259_v34  ;;  %v2265_v36 = vld [vmem:[%s4503_s1 + $0x80] sm:$0xf]  ;;  %v230_v39 = vunpack.c.l.bf16 %v28_v26 }
  0x18   :  { %196 = vmatpush.bf16.msra.mxu0 %v2122_v48  ;;  %221 = vmatpush.bf16.msra.mxu2 %v2142_v53  ;;  %v2258_v33 = vor.u32 %v2940_v30, %v2257_v29  ;;  %v2266_v38 = vor.u32 %v2941_v37, %v2265_v36  ;;  %v2245_v40 = vld [vmem:[%s4503_s1 + $0x60] sm:$0xf]  ;;  %v2937_v41 = vld [vmem:[%s4503_s1 + $0x68] sm:$0xf0]  ;;  %v2936_v42 = vld [vmem:[%s4503_s1 + $0x64] sm:$0xf] }
  0x19   :  { %209 = vmatpush.bf16.msra.mxu1 %v2126_v49  ;;  %449 = vmatpush.bf16.msra.mxu3 %v2270_v22  ;;  %v234_v43 = vunpack.c.l.bf16 %v232_v32  ;;  %v2246_v44 = vor.u32 %v2937_v41, %v2245_v40  ;;  %v2247_v45 = vld [vmem:[%s4503_s1 + $0x6c] sm:$0xf0]  ;;  %v2253_v46 = vld [vmem:[%s4503_s1 + $0x68] sm:$0xf]  ;;  %v2938_v47 = vld [vmem:[%s4503_s1 + $0x70] sm:$0xf0] }
  0x1a   :  { %v2250_v48 = vor.u32 %v2936_v42, %v2247_v45  ;;  %v2254_v49 = vor.u32 %v2938_v47, %v2253_v46  ;;  %v2233_v53 = vld [vmem:[%s4503_s1 + $0x48] sm:$0xf]  ;;  %v2934_v54 = vld [vmem:[%s4503_s1 + $0x50] sm:$0xf0]  ;;  %v2933_v55 = vld [vmem:[%s4503_s1 + $0x4c] sm:$0xf] }
  0x1b   :  { %v2241_v59 = vld [vmem:[%s4503_s1 + $0x50] sm:$0xf]  ;;  %v2935_v60 = vld [vmem:[%s4503_s1 + $0x58] sm:$0xf0]  ;;  %v2223_v6 = vld [vmem:[%s4503_s1 + $0x3c] sm:$0xf0] }
  0x1c   :  { %197 = vmatpush.bf16.msra.mxu0 %v2110_v57  ;;  %222 = vmatpush.bf16.msra.mxu2 %v2130_v62  ;;  %v2234_v57 = vor.u32 %v2934_v54, %v2233_v53  ;;  %v2242_v63 = vor.u32 %v2935_v60, %v2241_v59  ;;  %v2221_v1 = vld [vmem:[%s4503_s1 + $0x30] sm:$0xf]  ;;  %v2229_v7 = vld [vmem:[%s4503_s1 + $0x38] sm:$0xf]  ;;  %v2928_v14 = vld [vmem:[%s4503_s1 + $0x20] sm:$0xf0] }
  0x1d   :  { %210 = vmatpush.bf16.msra.mxu1 %v2114_v58  ;;  %450 = vmatpush.bf16.msra.mxu3 %v2258_v33  ;;  %v2235_v58 = vld [vmem:[%s4503_s1 + $0x54] sm:$0xf0]  ;;  %v2927_v15 = vld [vmem:[%s4503_s1 + $0x1c] sm:$0xf]  ;;  %v2929_v19 = vld [vmem:[%s4503_s1 + $0x28] sm:$0xf0] }
  0x1e   :  { %v2238_v62 = vor.u32 %v2933_v55, %v2235_v58  ;;  %v2209_v13 = vld [vmem:[%s4503_s1 + $0x18] sm:$0xf]  ;;  %v2197_v24 = vld [vmem:[%s4503_s1] sm:$0xf]  ;;  %v2925_v25 = vld [vmem:[%s4503_s1 + $0x8] sm:$0xf0] }
  0x1f   :  { %v2210_v16 = vor.u32 %v2928_v14, %v2209_v13  ;;  %v2924_v26 = vld [vmem:[%s4503_s1 + $0x4] sm:$0xf]  ;;  %v2198_v29 = vor.u32 %v2925_v25, %v2197_v24  ;;  %v2199_v30 = vld [vmem:[%s4503_s1 + $0xc] sm:$0xf0]  ;;  %v2205_v31 = vld [vmem:[%s4503_s1 + $0x8] sm:$0xf] }
  0x20   :  { %198 = vmatpush.bf16.msra.mxu0 %v2098_v2  ;;  %223 = vmatpush.bf16.msra.mxu2 %v2118_v5  ;;  %v2931_v2 = vld [vmem:[%s4503_s1 + $0x38] sm:$0xf0]  ;;  %v2202_v33 = vor.u32 %v2924_v26, %v2199_v30  ;;  %v2926_v34 = vld [vmem:[%s4503_s1 + $0x10] sm:$0xf0]  ;;  %v3500_v40 = vld [vmem:[%s4505_s2] ss:$0 sm:$0xff] }
  0x21   :  { %211 = vmatpush.bf16.msra.mxu1 %v2102_v4  ;;  %451 = vmatpush.bf16.msra.mxu3 %v2246_v44  ;;  %v2930_v4 = vld [vmem:[%s4503_s1 + $0x34] sm:$0xf]  ;;  %v2222_v5 = vor.u32 %v2931_v2, %v2221_v1  ;;  %v29_v46 = vld [vmem:[%s4506_s0 + $0x8] sm:$0xf]  ;;  %v2358_v25 = vld [vmem:[%s4503_s1 + $0x78] sm:$0xf] }
  0x22   :  { %v2964_v26 = vld [vmem:[%s4503_s1 + $0x80] sm:$0xf0]  ;;  %v2360_v30 = vld [vmem:[%s4503_s1 + $0x84] sm:$0xf0] }
  0x23   :  { %199 = vmatmul.bf16.vlgmr.msra.gmra.mxu0 %v30_v8 }
  0x24   :  { %212 = vmatmul.bf16.vlgmr.msra.gmra.mxu1 %v30_v8  ;;  %224 = vmatpush.bf16.msra.mxu2 %v2106_v9  ;;  %v2226_v9 = vor.u32 %v2930_v4, %v2223_v6  ;;  %v2970_v6 = vld [vmem:[%s4503_s1 + $0xb0] sm:$0xf0] }
  0x25   :  { %461 = vmatpush.bf16.msrb.mxu0 %v2286_v17  ;;  %474 = vmatpush.bf16.msrb.mxu1 %v2290_v18  ;;  %v2211_v17 = vld [vmem:[%s4503_s1 + $0x24] sm:$0xf0]  ;;  %v2217_v18 = vld [vmem:[%s4503_s1 + $0x20] sm:$0xf] }
  0x26   :  { %452 = vmatpush.bf16.msra.mxu3 %v2234_v57  ;;  %v2214_v22 = vor.u32 %v2927_v15, %v2211_v17  ;;  %v2218_v23 = vor.u32 %v2929_v19, %v2217_v18  ;;  %v2370_v15 = vld [vmem:[%s4503_s1 + $0x90] sm:$0xf]  ;;  %v2966_v17 = vld [vmem:[%s4503_s1 + $0x94] sm:$0xf]  ;;  %v2372_v19 = vld [vmem:[%s4503_s1 + $0x9c] sm:$0xf0] }
  0x27   :  { %225 = vmatmul.bf16.vlgmr.msra.gmra.mxu2 %v30_v8  ;;  %v2932_v8 = vld [vmem:[%s4503_s1 + $0x40] sm:$0xf0] }
  0x28   :  { %v2230_v10 = vor.u32 %v2932_v8, %v2229_v7  ;;  %v2969_v7 = vld [vmem:[%s4503_s1 + $0xac] sm:$0xf] }
  0x29   :  { %462 = vmatpush.bf16.msrb.mxu0 %v2274_v27  ;;  %475 = vmatpush.bf16.msrb.mxu1 %v2278_v28 }
  0x2a   :  { %453 = vmatpush.bf16.msra.mxu3 %v2222_v5  ;;  %v2193_v5 = vld [vmem:[%s4506_s0 + $0xc] sm:$0xff] }
  0x2d   :  { %463 = vmatpush.bf16.msrb.mxu0 %v2262_v35  ;;  %476 = vmatpush.bf16.msrb.mxu1 %v2266_v38  ;;  %v2206_v35 = vor.u32 %v2926_v34, %v2205_v31  ;;  %v2366_v31 = vld [vmem:[%s4503_s1 + $0x80] sm:$0xf] }
  0x2e   :  { %454 = vmatpush.bf16.msra.mxu3 %v2210_v16  ;;  %v2967_v16 = vld [vmem:[%s4503_s1 + $0x98] sm:$0xf0] }
  0x2f   :  { %v2371_v18 = vor.u32 %v2967_v16, %v2370_v15 }
  0x31   :  { %464 = vmatpush.bf16.msrb.mxu0 %v2250_v48  ;;  %477 = vmatpush.bf16.msrb.mxu1 %v2254_v49 }
  0x32   :  { %455 = vmatpush.bf16.msra.mxu3 %v2198_v29  ;;  %v2359_v29 = vor.u32 %v2964_v26, %v2358_v25  ;;  %v2306_v26 = vld [vmem:[%s4503_s1 + $0x8] sm:$0xf] }
  0x35   :  { %465 = vmatpush.bf16.msrb.mxu0 %v2238_v62  ;;  %478 = vmatpush.bf16.msrb.mxu1 %v2242_v63 }
  0x39   :  { %466 = vmatpush.bf16.msrb.mxu0 %v2226_v9  ;;  %479 = vmatpush.bf16.msrb.mxu1 %v2230_v10  ;;  %v2384_v9 = vld [vmem:[%s4503_s1 + $0xb4] sm:$0xf0]  ;;  %v2390_v10 = vld [vmem:[%s4503_s1 + $0xb0] sm:$0xf] }
  0x3a   :  { %v2387_v13 = vor.u32 %v2969_v7, %v2384_v9  ;;  %v2952_v9 = vld [vmem:[%s4503_s1 + $0x20] sm:$0xf0] }
  0x3c   :  { %719 = vmatpush.bf16.msrb.mxu3 %v2387_v13  ;;  %v2318_v13 = vld [vmem:[%s4503_s1 + $0x20] sm:$0xf] }
  0x3d   :  { %467 = vmatpush.bf16.msrb.mxu0 %v2214_v22  ;;  %480 = vmatpush.bf16.msrb.mxu1 %v2218_v23  ;;  %v2375_v23 = vor.u32 %v2966_v17, %v2372_v19  ;;  %v2298_v19 = vld [vmem:[%s4503_s1] sm:$0xf] }
  0x40   :  { %720 = vmatpush.bf16.msrb.mxu3 %v2375_v23  ;;  %v2300_v23 = vld [vmem:[%s4503_s1 + $0xc] sm:$0xf0] }
  0x41   :  { %468 = vmatpush.bf16.msrb.mxu0 %v2202_v33  ;;  %481 = vmatpush.bf16.msrb.mxu1 %v2206_v35 }
  0xa0   :  { %v200_v50 = vpop.f32.mrf.mxu0 }
  0xa1   :  { %v237_v51 = vadd.f32 %v230_v39, %v200_v50  ;;  %v213_v52 = vpop.f32.mrf.mxu1 }
  0xa2   :  { %v257_v56 = vadd.f32 %v234_v43, %v213_v52 }
  0xa3   :  { %v2191_v61 = vmul.f32 -1.442695, %v237_v51  ;;  %v235_v51 = vunpack.c.l.bf16 %v29_v46 }
  0xa4   :  { %v2192_v0 = vmul.f32 -1.442695, %v257_v56 }
  0xa5   :  { %3093 = vpow2.f32 %v2191_v61 }
  0xa6   :  { %3095 = vpow2.f32 %v2192_v0 }
  0xa8   :  { %v202_v11 = vpop.f32.mrf.mxu0 }
  0xa9   :  { %v215_v12 = vpop.f32.mrf.mxu1  ;;  %v2971_v11 = vld [vmem:[%s4503_s1 + $0xb8] sm:$0xf0] }
  0xaa   :  { %v226_v21 = vpop.f32.mrf.mxu2  ;;  %v489_v12 = vrot.slane %v2193_v5, 4  ;;  %v2391_v14 = vor.u32 %v2971_v11, %v2390_v10  ;;  %v2951_v11 = vld [vmem:[%s4503_s1 + $0x1c] sm:$0xf] }
  0xab   :  { %v3094_v20 = vpop.eup %3093  ;;  %v236_v47 = vadd.f32 %v3500_v40, %v226_v21  ;;  %v2968_v21 = vld [vmem:[%s4503_s1 + $0xa0] sm:$0xf0] }
  0xac   :  { %v3096_v27 = vpop.eup %3095  ;;  %v241_v28 = vadd.f32 1.0, %v3094_v20  ;;  %732 = vmatpush.bf16.msra.mxu0 %v2391_v14  ;;  %v2378_v20 = vld [vmem:[%s4503_s1 + $0x98] sm:$0xf]  ;;  %v491_v22 = vunpack.c.l.bf16 %v489_v12  ;;  %v2312_v12 = vld [vmem:[%s4503_s1 + $0x24] sm:$0xf0] }
  0xad   :  { %v261_v32 = vadd.f32 1.0, %v3096_v27  ;;  %v2379_v24 = vor.u32 %v2968_v21, %v2378_v20  ;;  %v2963_v27 = vld [vmem:[%s4503_s1 + $0x7c] sm:$0xf]  ;;  %v2953_v14 = vld [vmem:[%s4503_s1 + $0x28] sm:$0xf0] }
  0xae   :  { %3097 = vrcp.f32 %v241_v28  ;;  %v253_v43 = vand.u32 2147483648, %v241_v28  ;;  %v251_v45 = vand.u32 2147483647, %v241_v28  ;;  %vm247_vm1 = vweird.f32 %v241_v28  ;;  %v2949_v20 = vld [vmem:[%s4503_s1 + $0x8] sm:$0xf0] }
  0xaf   :  { %3099 = vrcp.f32 %v261_v32  ;;  %vm267_vm4 = vweird.f32 %v261_v32  ;;  %v273_v57 = vand.u32 2147483648, %v261_v32  ;;  %v271_v59 = vand.u32 2147483647, %v261_v32 }
  0xb0   :  { %v254_v50 = vor.u32 1.1754944e-38, %v253_v43  ;;  %vm252_vm3 = vcmp.eq.f32.partialorder %v251_v45, 8.507059e+37  ;;  %733 = vmatpush.bf16.msra.mxu0 %v2379_v24  ;;  %v2363_v35 = vor.u32 %v2963_v27, %v2360_v30  ;;  %v2960_v43 = vld [vmem:[%s4503_s1 + $0x64] sm:$0xf]  ;;  %v2354_v45 = vld [vmem:[%s4503_s1 + $0x68] sm:$0xf]  ;;  %v2319_v21 = vor.u32 %v2953_v14, %v2318_v13 }
  0xb1   :  { %v274_v60 = vor.u32 1.1754944e-38, %v273_v57  ;;  %vm272_vm7 = vcmp.eq.f32.partialorder %v271_v59, 8.507059e+37  ;;  %v2322_v59 = vld [vmem:[%s4503_s1 + $0x30] sm:$0xf]  ;;  %v2950_v27 = vld [vmem:[%s4503_s1 + $0x10] sm:$0xf0] }
  0xb2   :  { %v228_v36 = vpop.f32.mrf.mxu2  ;;  %721 = vmatpush.bf16.msrb.mxu3 %v2363_v35  ;;  %v2473_v13 = vld [vmem:[%s4503_s1 + $0x9c] sm:$0xf0]  ;;  %v2479_v14 = vld [vmem:[%s4503_s1 + $0x98] sm:$0xf] }
  0xb4   :  { %v3098_v37 = vpop.eup %3097 }
  0xb5   :  { %v3100_v38 = vpop.eup %3099  ;;  %v243_v39 = vmul.f32 %v3098_v37, %v241_v28  ;;  %vm248_vm0 = vweird.f32 %v3098_v37 }
  0xb6   :  { %v263_v42 = vmul.f32 %v3100_v38, %v261_v32  ;;  %vm249_vm2 = vmor %vm247_vm1, %vm248_vm0  ;;  %vm268_vm5 = vweird.f32 %v3100_v38  ;;  %v2965_v32 = vld [vmem:[%s4503_s1 + $0x88] sm:$0xf0] }
  0xb7   :  { %v244_v41 = vsub.f32 1.0, %v243_v39  ;;  %vm269_vm6 = vmor %vm267_vm4, %vm268_vm5  ;;  %v2367_v36 = vor.u32 %v2965_v32, %v2366_v31  ;;  %v2346_v39 = vld [vmem:[%s4503_s1 + $0x60] sm:$0xf]  ;;  %v2307_v31 = vor.u32 %v2950_v27, %v2306_v26 }
  0xb8   :  { %v264_v49 = vsub.f32 1.0, %v263_v42 }
  0xb9   :  { %v245_v44 = vmul.f32 %v3098_v37, %v244_v41  ;;  %734 = vmatpush.bf16.msra.mxu0 %v2367_v36  ;;  %v2961_v41 = vld [vmem:[%s4503_s1 + $0x68] sm:$0xf0] }
  0xba   :  { %v265_v55 = vmul.f32 %v3100_v38, %v264_v49  ;;  %v2347_v42 = vor.u32 %v2961_v41, %v2346_v39  ;;  %v2958_v49 = vld [vmem:[%s4503_s1 + $0x50] sm:$0xf0] }
  0xbb   :  { %v246_v48 = vadd.f32 %v3098_v37, %v245_v44  ;;  %v2348_v44 = vld [vmem:[%s4503_s1 + $0x6c] sm:$0xf0] }
  0xbc   :  { %v266_v58 = vadd.f32 %v3100_v38, %v265_v55  ;;  %v2351_v46 = vor.u32 %v2960_v43, %v2348_v44  ;;  %v2342_v55 = vld [vmem:[%s4503_s1 + $0x50] sm:$0xf] }
  0xbd   :  { %v250_v52 = vsel %vm249_vm2, %v3098_v37, %v246_v48  ;;  %v2334_v48 = vld [vmem:[%s4503_s1 + $0x48] sm:$0xf] }
  0xbe   :  { %v255_v53 = vsel %vm252_vm3, %v254_v50, %v250_v52  ;;  %v270_v61 = vsel %vm269_vm6, %v3100_v38, %v266_v58  ;;  %v487_v38 = vunpack.c.l.bf16 %v2193_v5  ;;  %v2335_v52 = vor.u32 %v2958_v49, %v2334_v48  ;;  %722 = vmatpush.bf16.msrb.mxu3 %v2351_v46  ;;  %v2959_v58 = vld [vmem:[%s4503_s1 + $0x58] sm:$0xf0]  ;;  %v2330_v5 = vld [vmem:[%s4503_s1 + $0x38] sm:$0xf] }
  0xbf   :  { %v277_v54 = vmul.f32 %v255_v53, %v236_v47  ;;  %v275_v0 = vsel %vm272_vm7, %v274_v60, %v270_v61  ;;  %v2962_v47 = vld [vmem:[%s4503_s1 + $0x70] sm:$0xf0]  ;;  %v2957_v53 = vld [vmem:[%s4503_s1 + $0x4c] sm:$0xf]  ;;  %v2955_v60 = vld [vmem:[%s4503_s1 + $0x38] sm:$0xf0] }
  0xc1   :  { %v278_v56 = vadd.f32 %v277_v54, %v235_v51  ;;  %v2355_v51 = vor.u32 %v2962_v47, %v2354_v45  ;;  %v2336_v54 = vld [vmem:[%s4503_s1 + $0x54] sm:$0xf0] }
  0xc2   :  { %v2339_v57 = vor.u32 %v2957_v53, %v2336_v54 }
  0xc3   :  { %3101 = vtanh.f32 %v278_v56  ;;  %735 = vmatpush.bf16.msra.mxu0 %v2355_v51 }
  0xc4   :  { %723 = vmatpush.bf16.msrb.mxu3 %v2339_v57 }
  0xc9   :  { %v3102_v62 = vpop.eup %3101 }
  0xca   :  { %v280_v63 = vsub.f32 %v3340_v3, %v3102_v62  ;;  %v2382_v3 = vld [vmem:[%s4503_s1 + $0xa8] sm:$0xf] }
  0xcb   :  { %v2383_v8 = vor.u32 %v2970_v6, %v2382_v3  ;;  %v2956_v3 = vld [vmem:[%s4503_s1 + $0x40] sm:$0xf0]  ;;  %v2323_v6 = vor.u32 %v2955_v60, %v2322_v59 }
  0xcc   :  { %v281_v1 = vmul.f32 %v280_v63, %v275_v0  ;;  %v2954_v63 = vld [vmem:[%s4503_s1 + $0x34] sm:$0xf]  ;;  %v2324_v0 = vld [vmem:[%s4503_s1 + $0x3c] sm:$0xf0]  ;;  %v2331_v10 = vor.u32 %v2956_v3, %v2330_v5  ;;  %v2491_v5 = vld [vmem:[%s4503_s1 + $0xb0] sm:$0xf] }
  0xcd   :  { %706 = vmatpush.bf16.msrb.mxu2 %v2383_v8  ;;  %v2327_v7 = vor.u32 %v2954_v63, %v2324_v0  ;;  %v2310_v8 = vld [vmem:[%s4503_s1 + $0x18] sm:$0xf]  ;;  %v2483_v63 = vld [vmem:[%s4503_s1 + $0xa8] sm:$0xf]  ;;  %v2993_v0 = vld [vmem:[%s4503_s1 + $0xac] sm:$0xf] }
  0xce   :  { %v3507_v2 = vadd.f32 %v3102_v62, %v281_v1  ;;  %v2343_v62 = vor.u32 %v2959_v58, %v2342_v55  ;;  %v2311_v17 = vor.u32 %v2952_v9, %v2310_v8  ;;  %v2995_v3 = vld [vmem:[%s4503_s1 + $0xb8] sm:$0xf0]  ;;  %v2471_v9 = vld [vmem:[%s4503_s1 + $0x90] sm:$0xf] }
  0xcf   :  { %724 = vmatpush.bf16.msrb.mxu3 %v2327_v7  ;;  %v2492_v7 = vor.u32 %v2995_v3, %v2491_v5  ;;  %v2294_v8 = vld [vmem:[%s4506_s0 + $0x18] sm:$0xff]  ;;  %v2976_v5 = vld [vmem:[%s4503_s1 + $0x20] sm:$0xf0] }
  0xd0   :  { %283 = vst [vmem:[%s4507_s4] sm:$0xff] %v3507_v2  ;;  %v287_v4 = vpack.c.bf16 %v3507_v2, %v3507_v2  ;;  %736 = vmatpush.bf16.msra.mxu0 %v2343_v62  ;;  %v2975_v3 = vld [vmem:[%s4503_s1 + $0x1c] sm:$0xf] }
  0xd1   :  { %707 = vmatpush.bf16.msrb.mxu2 %v2371_v18  ;;  %v2315_v18 = vor.u32 %v2951_v11, %v2312_v12  ;;  %v2990_v11 = vld [vmem:[%s4503_s1 + $0x94] sm:$0xf] }
  0xd2   :  { %456 = vmatmul.bf16.vlgmr.msra.gmra.mxu3 %v287_v4  ;;  %469 = vmatmul.bf16.vlgmr.msrb.gmra.mxu0 %v287_v4 }
  0xd3   :  { %482 = vmatmul.bf16.vlgmr.msrb.gmra.mxu1 %v287_v4  ;;  %725 = vmatpush.bf16.msrb.mxu3 %v2315_v18  ;;  %v747_v18 = vrot.slane %v2294_v8, 4 }
  0xd4   :  { %737 = vmatpush.bf16.msra.mxu0 %v2331_v10  ;;  %v2991_v10 = vld [vmem:[%s4503_s1 + $0x98] sm:$0xf0] }
  0xd5   :  { %708 = vmatpush.bf16.msrb.mxu2 %v2359_v29  ;;  %v2299_v29 = vor.u32 %v2949_v20, %v2298_v19  ;;  %v2472_v12 = vor.u32 %v2991_v10, %v2471_v9  ;;  %v2459_v19 = vld [vmem:[%s4503_s1 + $0x78] sm:$0xf]  ;;  %v2988_v20 = vld [vmem:[%s4503_s1 + $0x80] sm:$0xf0] }
  0xd8   :  { %738 = vmatpush.bf16.msra.mxu0 %v2319_v21  ;;  %v2987_v21 = vld [vmem:[%s4503_s1 + $0x7c] sm:$0xf] }
  0xd9   :  { %709 = vmatpush.bf16.msrb.mxu2 %v2347_v42  ;;  %v2194_v42 = vld [vmem:[%s4506_s0 + $0x14] sm:$0xf] }
  0xda   :  { %v492_v48 = vunpack.c.l.bf16 %v2194_v42  ;;  %v2435_v42 = vld [vmem:[%s4503_s1 + $0x48] sm:$0xf] }
  0xdc   :  { %739 = vmatpush.bf16.msra.mxu0 %v2307_v31  ;;  %v2447_v31 = vld [vmem:[%s4503_s1 + $0x60] sm:$0xf] }
  0xdd   :  { %710 = vmatpush.bf16.msrb.mxu2 %v2335_v52 }
  0xe1   :  { %711 = vmatpush.bf16.msrb.mxu2 %v2323_v6 }
  0xe5   :  { %712 = vmatpush.bf16.msrb.mxu2 %v2311_v17 }
  0xe9   :  { %713 = vmatpush.bf16.msrb.mxu2 %v2299_v29  ;;  %v745_v29 = vunpack.c.l.bf16 %v2294_v8  ;;  %v2977_v8 = vld [vmem:[%s4503_s1 + $0x28] sm:$0xf0] }
 0x14f   :  { %v470_v28 = vpop.f32.mrf.mxu0 }
 0x150   :  { %v514_v33 = vadd.f32 %v491_v22, %v470_v28  ;;  %v3572_v34 = vpop.f32.mrf.mxu1  ;;  %v2948_v22 = vld [vmem:[%s4503_s1 + $0x4] sm:$0xf] }
 0x151   :  { %v2303_v30 = vor.u32 %v2948_v22, %v2300_v23  ;;  %v493_v46 = vadd.f32 %v3500_v40, %v3572_v34  ;;  %v2460_v22 = vor.u32 %v2988_v20, %v2459_v19  ;;  %v2461_v23 = vld [vmem:[%s4503_s1 + $0x84] sm:$0xf0]  ;;  %v2974_v19 = vld [vmem:[%s4503_s1 + $0x10] sm:$0xf0] }
 0x152   :  { %v2292_v37 = vmul.f32 -1.442695, %v514_v33  ;;  %v2464_v27 = vor.u32 %v2987_v21, %v2461_v23 }
 0x153   :  { %726 = vmatpush.bf16.msrb.mxu3 %v2303_v30  ;;  %v749_v30 = vunpack.c.l.bf16 %v747_v18  ;;  %v2407_v18 = vld [vmem:[%s4503_s1 + $0x8] sm:$0xf] }
 0x154   :  { %3103 = vpow2.f32 %v2292_v37 }
 0x155   :  { %v457_v50 = vpop.f32.mrf.mxu3 }
 0x156   :  { %v494_v56 = vadd.f32 %v487_v38, %v457_v50 }
 0x157   :  { %v472_v61 = vpop.f32.mrf.mxu0  ;;  %990 = vmatpush.bf16.msra.mxu3 %v2492_v7  ;;  %v2419_v7 = vld [vmem:[%s4503_s1 + $0x20] sm:$0xf] }
 0x158   :  { %v2291_v1 = vmul.f32 -1.442695, %v494_v56  ;;  %v485_v4 = vpop.f32.mrf.mxu1 }
 0x159   :  { %v2485_v4 = vld [vmem:[%s4503_s1 + $0xb4] sm:$0xf0] }
 0x15a   :  { %3105 = vpow2.f32 %v2291_v1  ;;  %v3104_v15 = vpop.eup %3103  ;;  %v2488_v6 = vor.u32 %v2993_v0, %v2485_v4  ;;  %v2411_v4 = vld [vmem:[%s4503_s1 + $0x18] sm:$0xf] }
 0x15b   :  { %v518_v25 = vadd.f32 1.0, %v3104_v15  ;;  %v2992_v15 = vld [vmem:[%s4503_s1 + $0xa0] sm:$0xf0] }
 0x15c   :  { %977 = vmatpush.bf16.msra.mxu2 %v2488_v6  ;;  %v2480_v17 = vor.u32 %v2992_v15, %v2479_v14  ;;  %v2413_v6 = vld [vmem:[%s4503_s1 + $0x24] sm:$0xf0]  ;;  %v2399_v14 = vld [vmem:[%s4503_s1] sm:$0xf]  ;;  %v2973_v15 = vld [vmem:[%s4503_s1 + $0x8] sm:$0xf0] }
 0x15d   :  { %v459_v16 = vpop.f32.mrf.mxu3  ;;  %v530_v54 = vand.u32 2147483648, %v518_v25  ;;  %vm524_vm13 = vweird.f32 %v518_v25  ;;  %v528_v55 = vand.u32 2147483647, %v518_v25  ;;  %v2400_v23 = vor.u32 %v2973_v15, %v2399_v14  ;;  %v3012_v14 = vld [vmem:[%s4503_s1 + $0x80] sm:$0xf0] }
 0x15e   :  { %v2476_v16 = vor.u32 %v2990_v11, %v2473_v13  ;;  %991 = vmatpush.bf16.msra.mxu3 %v2480_v17  ;;  %v2412_v11 = vor.u32 %v2976_v5, %v2411_v4  ;;  %v2420_v13 = vor.u32 %v2977_v8, %v2419_v7  ;;  %v2401_v17 = vld [vmem:[%s4503_s1 + $0xc] sm:$0xf0]  ;;  %v3015_v5 = vld [vmem:[%s4503_s1 + $0x98] sm:$0xf0]  ;;  %v2574_v7 = vld [vmem:[%s4503_s1 + $0x9c] sm:$0xf0] }
 0x15f   :  { %v531_v58 = vor.u32 1.1754944e-38, %v530_v54  ;;  %vm529_vm15 = vcmp.eq.f32.partialorder %v528_v55, 8.507059e+37  ;;  %v2423_v54 = vld [vmem:[%s4503_s1 + $0x30] sm:$0xf]  ;;  %v2979_v55 = vld [vmem:[%s4503_s1 + $0x38] sm:$0xf0] }
 0x160   :  { %v3106_v24 = vpop.eup %3105  ;;  %978 = vmatpush.bf16.msra.mxu2 %v2476_v16  ;;  %v2972_v16 = vld [vmem:[%s4503_s1 + $0x4] sm:$0xf]  ;;  %v2572_v4 = vld [vmem:[%s4503_s1 + $0x90] sm:$0xf]  ;;  %v2580_v8 = vld [vmem:[%s4503_s1 + $0x98] sm:$0xf] }
 0x161   :  { %v498_v28 = vadd.f32 1.0, %v3106_v24  ;;  %v2467_v24 = vld [vmem:[%s4503_s1 + $0x80] sm:$0xf]  ;;  %v3011_v15 = vld [vmem:[%s4503_s1 + $0x7c] sm:$0xf] }
 0x163   :  { %3107 = vrcp.f32 %v498_v28  ;;  %v510_v38 = vand.u32 2147483648, %v498_v28  ;;  %v508_v41 = vand.u32 2147483647, %v498_v28  ;;  %vm504_vm9 = vweird.f32 %v498_v28 }
 0x164   :  { %3109 = vrcp.f32 %v518_v25  ;;  %979 = vmatpush.bf16.msra.mxu2 %v2464_v27  ;;  %v2408_v27 = vor.u32 %v2974_v19, %v2407_v18  ;;  %v2568_v18 = vld [vmem:[%s4503_s1 + $0x80] sm:$0xf]  ;;  %v3013_v19 = vld [vmem:[%s4503_s1 + $0x88] sm:$0xf0] }
 0x165   :  { %v511_v45 = vor.u32 1.1754944e-38, %v510_v38  ;;  %vm509_vm11 = vcmp.eq.f32.partialorder %v508_v41, 8.507059e+37  ;;  %v2986_v38 = vld [vmem:[%s4503_s1 + $0x70] sm:$0xf0] }
 0x169   :  { %v3108_v32 = vpop.eup %3107 }
 0x16a   :  { %v3110_v33 = vpop.eup %3109  ;;  %v500_v35 = vmul.f32 %v3108_v32, %v498_v28  ;;  %vm505_vm8 = vweird.f32 %v3108_v32 }
 0x16b   :  { %v520_v37 = vmul.f32 %v3110_v33, %v518_v25  ;;  %vm506_vm10 = vmor %vm504_vm9, %vm505_vm8  ;;  %vm525_vm12 = vweird.f32 %v3110_v33  ;;  %v2989_v25 = vld [vmem:[%s4503_s1 + $0x88] sm:$0xf0] }
 0x16c   :  { %v501_v36 = vsub.f32 1.0, %v500_v35  ;;  %vm526_vm14 = vmor %vm524_vm13, %vm525_vm12  ;;  %v2468_v28 = vor.u32 %v2989_v25, %v2467_v24  ;;  %v2404_v25 = vor.u32 %v2972_v16, %v2401_v17  ;;  %v2562_v17 = vld [vmem:[%s4503_s1 + $0x84] sm:$0xf0] }
 0x16d   :  { %v521_v44 = vsub.f32 1.0, %v520_v37  ;;  %v2455_v37 = vld [vmem:[%s4503_s1 + $0x68] sm:$0xf] }
 0x16e   :  { %v502_v39 = vmul.f32 %v3108_v32, %v501_v36  ;;  %992 = vmatpush.bf16.msra.mxu3 %v2468_v28  ;;  %v2449_v36 = vld [vmem:[%s4503_s1 + $0x6c] sm:$0xf0]  ;;  %v2456_v41 = vor.u32 %v2986_v38, %v2455_v37  ;;  %v2295_v37 = vld [vmem:[%s4506_s0 + $0x20] sm:$0xf] }
 0x16f   :  { %v522_v51 = vmul.f32 %v3110_v33, %v521_v44  ;;  %v2981_v44 = vld [vmem:[%s4503_s1 + $0x4c] sm:$0xf] }
 0x170   :  { %v503_v43 = vadd.f32 %v3108_v32, %v502_v39 }
 0x171   :  { %v523_v53 = vadd.f32 %v3110_v33, %v522_v51 }
 0x172   :  { %v507_v47 = vsel %vm506_vm10, %v3108_v32, %v503_v43  ;;  %v2985_v32 = vld [vmem:[%s4503_s1 + $0x68] sm:$0xf0]  ;;  %v2982_v43 = vld [vmem:[%s4503_s1 + $0x50] sm:$0xf0]  ;;  %993 = vmatpush.bf16.msra.mxu3 %v2456_v41 }
 0x173   :  { %v512_v49 = vsel %vm509_vm11, %v511_v45, %v507_v47  ;;  %v527_v56 = vsel %vm526_vm14, %v3110_v33, %v523_v53  ;;  %v2984_v33 = vld [vmem:[%s4503_s1 + $0x64] sm:$0xf]  ;;  %v2448_v35 = vor.u32 %v2985_v32, %v2447_v31  ;;  %v2436_v47 = vor.u32 %v2982_v43, %v2435_v42 }
 0x174   :  { %v534_v50 = vmul.f32 %v512_v49, %v493_v46  ;;  %v532_v59 = vsel %vm529_vm15, %v531_v58, %v527_v56  ;;  %v2452_v39 = vor.u32 %v2984_v33, %v2449_v36  ;;  %v2443_v49 = vld [vmem:[%s4503_s1 + $0x50] sm:$0xf]  ;;  %v2978_v56 = vld [vmem:[%s4503_s1 + $0x34] sm:$0xf]  ;;  %v2425_v58 = vld [vmem:[%s4503_s1 + $0x3c] sm:$0xf0] }
 0x175   :  { %v2428_v0 = vor.u32 %v2978_v56, %v2425_v58 }
 0x176   :  { %v535_v52 = vadd.f32 %v534_v50, %v492_v48  ;;  %v2437_v48 = vld [vmem:[%s4503_s1 + $0x54] sm:$0xf0]  ;;  %v2983_v50 = vld [vmem:[%s4503_s1 + $0x58] sm:$0xf0]  ;;  %980 = vmatpush.bf16.msra.mxu2 %v2452_v39 }
 0x177   :  { %v2440_v53 = vor.u32 %v2981_v44, %v2437_v48  ;;  %v750_v44 = vunpack.c.l.bf16 %v2295_v37  ;;  %v2536_v37 = vld [vmem:[%s4503_s1 + $0x48] sm:$0xf] }
 0x178   :  { %3111 = vtanh.f32 %v535_v52 }
 0x17a   :  { %981 = vmatpush.bf16.msra.mxu2 %v2440_v53 }
 0x17e   :  { %v3112_v57 = vpop.eup %3111  ;;  %982 = vmatpush.bf16.msra.mxu2 %v2428_v0 }
 0x17f   :  { %v537_v34 = vsub.f32 %v3507_v2, %v3112_v57  ;;  %v2994_v2 = vld [vmem:[%s4503_s1 + $0xb0] sm:$0xf0] }
 0x180   :  { %v2484_v1 = vor.u32 %v2994_v2, %v2483_v63  ;;  %v2424_v2 = vor.u32 %v2979_v55, %v2423_v54 }
 0x181   :  { %v538_v60 = vmul.f32 %v537_v34, %v532_v59  ;;  %v2431_v34 = vld [vmem:[%s4503_s1 + $0x38] sm:$0xf]  ;;  %v2980_v59 = vld [vmem:[%s4503_s1 + $0x40] sm:$0xf0] }
 0x182   :  { %964 = vmatpush.bf16.msra.mxu1 %v2484_v1  ;;  %v2432_v1 = vor.u32 %v2980_v59, %v2431_v34  ;;  %v2584_v34 = vld [vmem:[%s4503_s1 + $0xa8] sm:$0xf]  ;;  %v3017_v59 = vld [vmem:[%s4503_s1 + $0xac] sm:$0xf] }
 0x183   :  { %v3670_v61 = vadd.f32 %v3112_v57, %v538_v60  ;;  %v2444_v57 = vor.u32 %v2983_v50, %v2443_v49 }
 0x185   :  { %2293 = vst [vmem:[%s4507_s4 + $0x8] sm:$0xff] %v3670_v61  ;;  %v545_v62 = vpack.c.bf16 %v3670_v61, %v3670_v61  ;;  %994 = vmatpush.bf16.msra.mxu3 %v2444_v57 }
 0x186   :  { %965 = vmatpush.bf16.msra.mxu1 %v2472_v12  ;;  %v2416_v12 = vor.u32 %v2975_v3, %v2413_v6  ;;  %v3014_v3 = vld [vmem:[%s4503_s1 + $0x94] sm:$0xf]  ;;  %v2573_v6 = vor.u32 %v3015_v5, %v2572_v4  ;;  %v2520_v4 = vld [vmem:[%s4503_s1 + $0x20] sm:$0xf] }
 0x187   :  { %714 = vmatmul.bf16.vlgmr.msrb.gmra.mxu2 %v545_v62  ;;  %727 = vmatmul.bf16.vlgmr.msrb.gmra.mxu3 %v545_v62 }
 0x188   :  { %740 = vmatmul.bf16.vlgmr.msra.gmra.mxu0 %v545_v62  ;;  %983 = vmatpush.bf16.msra.mxu2 %v2416_v12  ;;  %v2395_v12 = vld [vmem:[%s4506_s0 + $0x24] sm:$0xff] }
 0x189   :  { %995 = vmatpush.bf16.msra.mxu3 %v2432_v1 }
 0x18a   :  { %966 = vmatpush.bf16.msra.mxu1 %v2460_v22 }
 0x18c   :  { %984 = vmatpush.bf16.msra.mxu2 %v2404_v25  ;;  %v3008_v25 = vld [vmem:[%s4503_s1 + $0x64] sm:$0xf] }
 0x18d   :  { %996 = vmatpush.bf16.msra.mxu3 %v2420_v13  ;;  %v2560_v13 = vld [vmem:[%s4503_s1 + $0x78] sm:$0xf] }
 0x18e   :  { %967 = vmatpush.bf16.msra.mxu1 %v2448_v35  ;;  %v2561_v16 = vor.u32 %v3012_v14, %v2560_v13  ;;  %v2502_v13 = vld [vmem:[%s4503_s1 + $0xc] sm:$0xf0] }
 0x191   :  { %997 = vmatpush.bf16.msra.mxu3 %v2408_v27 }
 0x192   :  { %968 = vmatpush.bf16.msra.mxu1 %v2436_v47 }
 0x196   :  { %969 = vmatpush.bf16.msra.mxu1 %v2424_v2  ;;  %v3019_v2 = vld [vmem:[%s4503_s1 + $0xb8] sm:$0xf0] }
 0x19a   :  { %970 = vmatpush.bf16.msra.mxu1 %v2412_v11 }
 0x19e   :  { %971 = vmatpush.bf16.msra.mxu1 %v2400_v23  ;;  %v2548_v23 = vld [vmem:[%s4503_s1 + $0x60] sm:$0xf] }
 0x205   :  { %v3735_v26 = vpop.f32.mrf.mxu0 }
 0x206   :  { %v751_v42 = vadd.f32 %v3500_v40, %v3735_v26 }
 0x20a   :  { %v715_v45 = vpop.f32.mrf.mxu2  ;;  %v728_v46 = vpop.f32.mrf.mxu3 }
 0x20b   :  { %v752_v51 = vadd.f32 %v745_v29, %v715_v45  ;;  %v772_v52 = vadd.f32 %v749_v30, %v728_v46 }
 0x20d   :  { %v2392_v60 = vmul.f32 -1.442695, %v752_v51  ;;  %v2393_v62 = vmul.f32 -1.442695, %v772_v52  ;;  %v743_v63 = vpop.f32.mrf.mxu0 }
 0x20e   :  { %v2592_v63 = vld [vmem:[%s4503_s1 + $0xb0] sm:$0xf] }
 0x20f   :  { %3113 = vpow2.f32 %v2392_v60  ;;  %v2593_v1 = vor.u32 %v3019_v2, %v2592_v63  ;;  %v3000_v63 = vld [vmem:[%s4503_s1 + $0x20] sm:$0xf0] }
 0x210   :  { %3115 = vpow2.f32 %v2393_v62  ;;  %v2586_v62 = vld [vmem:[%s4503_s1 + $0xb4] sm:$0xf0] }
 0x211   :  { %v2589_v0 = vor.u32 %v3017_v59, %v2586_v62  ;;  %1248 = vmatpush.bf16.msrb.mxu2 %v2593_v1  ;;  %v2512_v62 = vld [vmem:[%s4503_s1 + $0x18] sm:$0xf]  ;;  %v2514_v1 = vld [vmem:[%s4503_s1 + $0x24] sm:$0xf0] }
 0x212   :  { %v717_v9 = vpop.f32.mrf.mxu2  ;;  %v730_v10 = vpop.f32.mrf.mxu3  ;;  %v2513_v2 = vor.u32 %v3000_v63, %v2512_v62  ;;  %v2673_v62 = vld [vmem:[%s4503_s1 + $0x90] sm:$0xf]  ;;  %v3039_v63 = vld [vmem:[%s4503_s1 + $0x98] sm:$0xf0] }
 0x213   :  { %1235 = vmatpush.bf16.msrb.mxu1 %v2589_v0  ;;  %v3016_v9 = vld [vmem:[%s4503_s1 + $0xa0] sm:$0xf0]  ;;  %v2577_v10 = vor.u32 %v3014_v3, %v2574_v7  ;;  %v2999_v0 = vld [vmem:[%s4503_s1 + $0x1c] sm:$0xf]  ;;  %v2500_v7 = vld [vmem:[%s4503_s1] sm:$0xf] }
 0x214   :  { %v2581_v11 = vor.u32 %v3016_v9, %v2580_v8  ;;  %v2517_v3 = vor.u32 %v2999_v0, %v2514_v1  ;;  %v2997_v8 = vld [vmem:[%s4503_s1 + $0x8] sm:$0xf0]  ;;  %v2674_v0 = vor.u32 %v3039_v63, %v2673_v62  ;;  %v2675_v1 = vld [vmem:[%s4503_s1 + $0x9c] sm:$0xf0] }
 0x215   :  { %v3114_v20 = vpop.eup %3113  ;;  %v3025_v62 = vld [vmem:[%s4503_s1 + $0x28] sm:$0xf0] }
 0x216   :  { %v3116_v21 = vpop.eup %3115  ;;  %v756_v22 = vadd.f32 1.0, %v3114_v20  ;;  %1249 = vmatpush.bf16.msrb.mxu2 %v2581_v11  ;;  %v2565_v20 = vor.u32 %v3011_v15, %v2562_v17  ;;  %v2501_v11 = vor.u32 %v2997_v8, %v2500_v7  ;;  %v2508_v15 = vld [vmem:[%s4503_s1 + $0x8] sm:$0xf]  ;;  %v2661_v8 = vld [vmem:[%s4503_s1 + $0x78] sm:$0xf] }
 0x217   :  { %v776_v24 = vadd.f32 1.0, %v3116_v21  ;;  %1236 = vmatpush.bf16.msrb.mxu1 %v2577_v10  ;;  %v2569_v21 = vor.u32 %v3013_v19, %v2568_v18 }
 0x218   :  { %3117 = vrcp.f32 %v756_v22  ;;  %v768_v32 = vand.u32 2147483648, %v756_v22  ;;  %v766_v36 = vand.u32 2147483647, %v756_v22  ;;  %vm762_vm1 = vweird.f32 %v756_v22 }
 0x219   :  { %3119 = vrcp.f32 %v776_v24  ;;  %v788_v50 = vand.u32 2147483648, %v776_v24  ;;  %vm782_vm5 = vweird.f32 %v776_v24  ;;  %v786_v51 = vand.u32 2147483647, %v776_v24 }
 0x21a   :  { %v769_v39 = vor.u32 1.1754944e-38, %v768_v32  ;;  %vm767_vm3 = vcmp.eq.f32.partialorder %v766_v36, 8.507059e+37  ;;  %1250 = vmatpush.bf16.msrb.mxu2 %v2569_v21 }
 0x21b   :  { %v789_v54 = vor.u32 1.1754944e-38, %v788_v50  ;;  %vm787_vm7 = vcmp.eq.f32.partialorder %v786_v51, 8.507059e+37  ;;  %1237 = vmatpush.bf16.msrb.mxu1 %v2565_v20  ;;  %v3003_v50 = vld [vmem:[%s4503_s1 + $0x38] sm:$0xf0]  ;;  %v3002_v51 = vld [vmem:[%s4503_s1 + $0x34] sm:$0xf] }
 0x21e   :  { %v3118_v28 = vpop.eup %3117 }
 0x21f   :  { %v3120_v29 = vpop.eup %3119  ;;  %v758_v30 = vmul.f32 %v3118_v28, %v756_v22  ;;  %vm763_vm0 = vweird.f32 %v3118_v28  ;;  %v1003_v22 = vunpack.c.l.bf16 %v2395_v12 }
 0x220   :  { %v778_v33 = vmul.f32 %v3120_v29, %v776_v24  ;;  %vm764_vm2 = vmor %vm762_vm1, %vm763_vm0  ;;  %vm783_vm4 = vweird.f32 %v3120_v29  ;;  %v3009_v24 = vld [vmem:[%s4503_s1 + $0x68] sm:$0xf0] }
 0x221   :  { %v759_v31 = vsub.f32 1.0, %v758_v30  ;;  %vm784_vm6 = vmor %vm782_vm5, %vm783_vm4  ;;  %v2549_v27 = vor.u32 %v3009_v24, %v2548_v23  ;;  %v3010_v30 = vld [vmem:[%s4503_s1 + $0x70] sm:$0xf0] }
 0x222   :  { %v779_v41 = vsub.f32 1.0, %v778_v33 }
 0x223   :  { %v760_v35 = vmul.f32 %v3118_v28, %v759_v31  ;;  %v1005_v31 = vrot.slane %v2395_v12, 4  ;;  %v2996_v12 = vld [vmem:[%s4503_s1 + $0x4] sm:$0xf] }
 0x224   :  { %v780_v47 = vmul.f32 %v3120_v29, %v779_v41  ;;  %v2505_v14 = vor.u32 %v2996_v12, %v2502_v13  ;;  %v2663_v12 = vld [vmem:[%s4503_s1 + $0x84] sm:$0xf0]  ;;  %v2669_v13 = vld [vmem:[%s4503_s1 + $0x80] sm:$0xf] }
 0x225   :  { %v761_v38 = vadd.f32 %v3118_v28, %v760_v35 }
 0x226   :  { %v781_v49 = vadd.f32 %v3120_v29, %v780_v47 }
 0x227   :  { %v765_v43 = vsel %vm764_vm2, %v3118_v28, %v761_v38  ;;  %v2550_v28 = vld [vmem:[%s4503_s1 + $0x6c] sm:$0xf0]  ;;  %v3006_v38 = vld [vmem:[%s4503_s1 + $0x50] sm:$0xf0] }
 0x228   :  { %v770_v45 = vsel %vm767_vm3, %v769_v39, %v765_v43  ;;  %v785_v52 = vsel %vm784_vm6, %v3120_v29, %v781_v49  ;;  %v2556_v29 = vld [vmem:[%s4503_s1 + $0x68] sm:$0xf]  ;;  %v2553_v32 = vor.u32 %v3008_v25, %v2550_v28  ;;  %v3005_v39 = vld [vmem:[%s4503_s1 + $0x4c] sm:$0xf]  ;;  %v2537_v41 = vor.u32 %v3006_v38, %v2536_v37  ;;  %v2544_v43 = vld [vmem:[%s4503_s1 + $0x50] sm:$0xf] }
 0x229   :  { %v792_v46 = vmul.f32 %v770_v45, %v751_v42  ;;  %v790_v55 = vsel %vm787_vm7, %v789_v54, %v785_v52  ;;  %v2557_v33 = vor.u32 %v3010_v30, %v2556_v29  ;;  %v2538_v42 = vld [vmem:[%s4503_s1 + $0x54] sm:$0xf0]  ;;  %v2524_v49 = vld [vmem:[%s4503_s1 + $0x30] sm:$0xf]  ;;  %v2526_v54 = vld [vmem:[%s4503_s1 + $0x3c] sm:$0xf0] }
 0x22a   :  { %1238 = vmatpush.bf16.msrb.mxu1 %v2553_v32  ;;  %v2541_v47 = vor.u32 %v3005_v39, %v2538_v42 }
 0x22b   :  { %v793_v48 = vadd.f32 %v792_v46, %v750_v44  ;;  %1251 = vmatpush.bf16.msrb.mxu2 %v2557_v33  ;;  %v3007_v44 = vld [vmem:[%s4503_s1 + $0x58] sm:$0xf0]  ;;  %v1007_v46 = vunpack.c.l.bf16 %v1005_v31 }
 0x22d   :  { %3121 = vtanh.f32 %v793_v48  ;;  %v2545_v48 = vor.u32 %v3007_v44, %v2544_v43 }
 0x22e   :  { %1239 = vmatpush.bf16.msrb.mxu1 %v2541_v47 }
 0x22f   :  { %1252 = vmatpush.bf16.msrb.mxu2 %v2545_v48 }
 0x233   :  { %v3122_v53 = vpop.eup %3121 }
 0x234   :  { %v795_v26 = vsub.f32 %v3670_v61, %v3122_v53  ;;  %v3018_v61 = vld [vmem:[%s4503_s1 + $0xb0] sm:$0xf0] }
 0x235   :  { %v2585_v60 = vor.u32 %v3018_v61, %v2584_v34  ;;  %v2529_v34 = vor.u32 %v3002_v51, %v2526_v54  ;;  %v2685_v54 = vld [vmem:[%s4503_s1 + $0xa8] sm:$0xf] }
 0x236   :  { %v796_v56 = vmul.f32 %v795_v26, %v790_v55  ;;  %v2532_v26 = vld [vmem:[%s4503_s1 + $0x38] sm:$0xf]  ;;  %v3004_v55 = vld [vmem:[%s4503_s1 + $0x40] sm:$0xf0] }
 0x237   :  { %1222 = vmatpush.bf16.msrb.mxu0 %v2585_v60  ;;  %v2533_v61 = vor.u32 %v3004_v55, %v2532_v26  ;;  %1240 = vmatpush.bf16.msrb.mxu1 %v2529_v34  ;;  %v3041_v26 = vld [vmem:[%s4503_s1 + $0xac] sm:$0xf]  ;;  %v3043_v34 = vld [vmem:[%s4503_s1 + $0xb8] sm:$0xf0] }
 0x238   :  { %v3833_v57 = vadd.f32 %v3122_v53, %v796_v56  ;;  %v2525_v53 = vor.u32 %v3003_v50, %v2524_v49 }
 0x239   :  { %1253 = vmatpush.bf16.msrb.mxu2 %v2533_v61 }
 0x23a   :  { %2394 = vst [vmem:[%s4507_s4 + $0x10] sm:$0xff] %v3833_v57  ;;  %v803_v58 = vpack.c.bf16 %v3833_v57, %v3833_v57 }
 0x23b   :  { %1223 = vmatpush.bf16.msrb.mxu0 %v2573_v6  ;;  %v3001_v6 = vld [vmem:[%s4503_s1 + $0x28] sm:$0xf0]  ;;  %1241 = vmatpush.bf16.msrb.mxu1 %v2517_v3 }
 0x23c   :  { %972 = vmatmul.bf16.vlgmr.msra.gmra.mxu1 %v803_v58  ;;  %985 = vmatmul.bf16.vlgmr.msra.gmra.mxu2 %v803_v58  ;;  %v2521_v10 = vor.u32 %v3001_v6, %v2520_v4  ;;  %v2681_v4 = vld [vmem:[%s4503_s1 + $0x98] sm:$0xf] }
 0x23d   :  { %998 = vmatmul.bf16.vlgmr.msra.gmra.mxu3 %v803_v58 }
 0x23e   :  { %1254 = vmatpush.bf16.msrb.mxu2 %v2521_v10  ;;  %v3035_v10 = vld [vmem:[%s4503_s1 + $0x7c] sm:$0xf] }
 0x23f   :  { %1224 = vmatpush.bf16.msrb.mxu0 %v2561_v16  ;;  %v2998_v16 = vld [vmem:[%s4503_s1 + $0x10] sm:$0xf0]  ;;  %1242 = vmatpush.bf16.msrb.mxu1 %v2505_v14  ;;  %v3037_v14 = vld [vmem:[%s4503_s1 + $0x88] sm:$0xf0] }
 0x240   :  { %v2509_v19 = vor.u32 %v2998_v16, %v2508_v15  ;;  %v2666_v15 = vor.u32 %v3035_v10, %v2663_v12  ;;  %v2670_v16 = vor.u32 %v3037_v14, %v2669_v13  ;;  %v3022_v12 = vld [vmem:[%s4503_s1 + $0x10] sm:$0xf0] }
 0x242   :  { %1255 = vmatpush.bf16.msrb.mxu2 %v2509_v19  ;;  %v2649_v19 = vld [vmem:[%s4503_s1 + $0x60] sm:$0xf] }
 0x243   :  { %1225 = vmatpush.bf16.msrb.mxu0 %v2549_v27  ;;  %v2396_v27 = vld [vmem:[%s4506_s0 + $0x2c] sm:$0xf] }
 0x244   :  { %v1008_v33 = vunpack.c.l.bf16 %v2396_v27 }
 0x247   :  { %1226 = vmatpush.bf16.msrb.mxu0 %v2537_v41 }
 0x24b   :  { %1227 = vmatpush.bf16.msrb.mxu0 %v2525_v53 }
 0x24f   :  { %1228 = vmatpush.bf16.msrb.mxu0 %v2513_v2  ;;  %v3038_v2 = vld [vmem:[%s4503_s1 + $0x94] sm:$0xf] }
 0x250   :  { %v2678_v3 = vor.u32 %v3038_v2, %v2675_v1  ;;  %v2601_v1 = vld [vmem:[%s4503_s1] sm:$0xf] }
 0x253   :  { %1229 = vmatpush.bf16.msrb.mxu0 %v2501_v11 }
 0x2b9   :  { %v973_v35 = vpop.f32.mrf.mxu1 }
 0x2ba   :  { %v1010_v36 = vadd.f32 %v1003_v22, %v973_v35 }
 0x2bc   :  { %v2493_v45 = vmul.f32 -1.442695, %v1010_v36 }
 0x2be   :  { %3123 = vpow2.f32 %v2493_v45 }
 0x2bf   :  { %v986_v52 = vpop.f32.mrf.mxu2 }
 0x2c0   :  { %v1030_v56 = vadd.f32 %v1007_v46, %v986_v52  ;;  %v999_v58 = vpop.f32.mrf.mxu3 }
 0x2c1   :  { %v975_v59 = vpop.f32.mrf.mxu1  ;;  %v1009_v37 = vadd.f32 %v3500_v40, %v999_v58  ;;  %v2693_v58 = vld [vmem:[%s4503_s1 + $0xb0] sm:$0xf] }
 0x2c2   :  { %v2494_v60 = vmul.f32 -1.442695, %v1030_v56  ;;  %v2687_v56 = vld [vmem:[%s4503_s1 + $0xb4] sm:$0xf0]  ;;  %v2694_v59 = vor.u32 %v3043_v34, %v2693_v58  ;;  %v3024_v58 = vld [vmem:[%s4503_s1 + $0x20] sm:$0xf0] }
 0x2c3   :  { %v2690_v61 = vor.u32 %v3041_v26, %v2687_v56  ;;  %v2613_v56 = vld [vmem:[%s4503_s1 + $0x18] sm:$0xf]  ;;  %v3023_v34 = vld [vmem:[%s4503_s1 + $0x1c] sm:$0xf] }
 0x2c4   :  { %v3124_v5 = vpop.eup %3123  ;;  %3125 = vpow2.f32 %v2494_v60  ;;  %v2496_v60 = vld [vmem:[%s4506_s0 + $0x30] sm:$0xff]  ;;  %1506 = vmatpush.bf16.msra.mxu1 %v2694_v59  ;;  %v2615_v59 = vld [vmem:[%s4503_s1 + $0x24] sm:$0xf0] }
 0x2c5   :  { %v1014_v9 = vadd.f32 1.0, %v3124_v5  ;;  %1493 = vmatpush.bf16.msra.mxu0 %v2690_v61  ;;  %v3040_v5 = vld [vmem:[%s4503_s1 + $0xa0] sm:$0xf0]  ;;  %v1263_v7 = vrot.slane %v2496_v60, 4  ;;  %v2614_v61 = vor.u32 %v3024_v58, %v2613_v56  ;;  %v2618_v2 = vor.u32 %v3023_v34, %v2615_v59  ;;  %v2774_v58 = vld [vmem:[%s4503_s1 + $0x90] sm:$0xf] }
 0x2c6   :  { %v2682_v6 = vor.u32 %v3040_v5, %v2681_v4  ;;  %v3021_v4 = vld [vmem:[%s4503_s1 + $0x8] sm:$0xf0]  ;;  %v3020_v5 = vld [vmem:[%s4503_s1 + $0x4] sm:$0xf]  ;;  %v3063_v34 = vld [vmem:[%s4503_s1 + $0x98] sm:$0xf0] }
 0x2c7   :  { %3127 = vrcp.f32 %v1014_v9  ;;  %v988_v17 = vpop.f32.mrf.mxu2  ;;  %v1026_v25 = vand.u32 2147483648, %v1014_v9  ;;  %v1024_v29 = vand.u32 2147483647, %v1014_v9  ;;  %vm1020_vm9 = vweird.f32 %v1014_v9 }
 0x2c8   :  { %v1001_v18 = vpop.f32.mrf.mxu3  ;;  %1507 = vmatpush.bf16.msra.mxu1 %v2682_v6  ;;  %v1261_v17 = vunpack.c.l.bf16 %v2496_v60  ;;  %v2621_v60 = vld [vmem:[%s4503_s1 + $0x20] sm:$0xf]  ;;  %v2775_v59 = vor.u32 %v3063_v34, %v2774_v58 }
 0x2c9   :  { %v1027_v35 = vor.u32 1.1754944e-38, %v1026_v25  ;;  %vm1025_vm11 = vcmp.eq.f32.partialorder %v1024_v29, 8.507059e+37  ;;  %1494 = vmatpush.bf16.msra.mxu0 %v2678_v3  ;;  %v1265_v18 = vunpack.c.l.bf16 %v1263_v7  ;;  %v3034_v25 = vld [vmem:[%s4503_s1 + $0x70] sm:$0xf0]  ;;  %v2602_v7 = vor.u32 %v3021_v4, %v2601_v1  ;;  %v2762_v4 = vld [vmem:[%s4503_s1 + $0x78] sm:$0xf] }
 0x2ca   :  { %v3126_v20 = vpop.eup %3125 }
 0x2cb   :  { %v1034_v21 = vadd.f32 1.0, %v3126_v20  ;;  %v3033_v20 = vld [vmem:[%s4503_s1 + $0x68] sm:$0xf0] }
 0x2cc   :  { %1508 = vmatpush.bf16.msra.mxu1 %v2670_v16 }
 0x2cd   :  { %v3128_v22 = vpop.eup %3127  ;;  %3129 = vrcp.f32 %v1034_v21  ;;  %v1046_v45 = vand.u32 2147483648, %v1034_v21  ;;  %vm1040_vm13 = vweird.f32 %v1034_v21  ;;  %v1044_v46 = vand.u32 2147483647, %v1034_v21  ;;  %1495 = vmatpush.bf16.msra.mxu0 %v2666_v15 }
 0x2ce   :  { %v1016_v23 = vmul.f32 %v3128_v22, %v1014_v9  ;;  %vm1021_vm8 = vweird.f32 %v3128_v22  ;;  %v3036_v9 = vld [vmem:[%s4503_s1 + $0x80] sm:$0xf0] }
 0x2cf   :  { %vm1022_vm10 = vmor %vm1020_vm9, %vm1021_vm8  ;;  %v1047_v49 = vor.u32 1.1754944e-38, %v1046_v45  ;;  %vm1045_vm15 = vcmp.eq.f32.partialorder %v1044_v46, 8.507059e+37  ;;  %v2662_v11 = vor.u32 %v3036_v9, %v2661_v8  ;;  %v2625_v46 = vld [vmem:[%s4503_s1 + $0x30] sm:$0xf] }
 0x2d0   :  { %v1017_v24 = vsub.f32 1.0, %v1016_v23  ;;  %v2651_v23 = vld [vmem:[%s4503_s1 + $0x6c] sm:$0xf0] }
 0x2d1   :  { %v2603_v8 = vld [vmem:[%s4503_s1 + $0xc] sm:$0xf0] }
 0x2d2   :  { %v1018_v28 = vmul.f32 %v3128_v22, %v1017_v24  ;;  %v2657_v24 = vld [vmem:[%s4503_s1 + $0x68] sm:$0xf]  ;;  %v2606_v10 = vor.u32 %v3020_v5, %v2603_v8  ;;  %v3060_v5 = vld [vmem:[%s4503_s1 + $0x80] sm:$0xf0] }
 0x2d3   :  { %v3130_v30 = vpop.eup %3129  ;;  %v2764_v8 = vld [vmem:[%s4503_s1 + $0x84] sm:$0xf0] }
 0x2d4   :  { %v1036_v31 = vmul.f32 %v3130_v30, %v1034_v21  ;;  %v1019_v32 = vadd.f32 %v3128_v22, %v1018_v28  ;;  %vm1041_vm12 = vweird.f32 %v3130_v30  ;;  %v3032_v21 = vld [vmem:[%s4503_s1 + $0x64] sm:$0xf]  ;;  %v2658_v28 = vor.u32 %v3034_v25, %v2657_v24 }
 0x2d5   :  { %vm1042_vm14 = vmor %vm1040_vm13, %vm1041_vm12  ;;  %v2654_v27 = vor.u32 %v3032_v21, %v2651_v23  ;;  %v2497_v23 = vld [vmem:[%s4506_s0 + $0x38] sm:$0xf] }
 0x2d6   :  { %v1037_v36 = vsub.f32 1.0, %v1036_v31  ;;  %v1023_v38 = vsel %vm1022_vm10, %v3128_v22, %v1019_v32  ;;  %v2650_v22 = vor.u32 %v3033_v20, %v2649_v19  ;;  %1509 = vmatpush.bf16.msra.mxu1 %v2658_v28  ;;  %v1266_v28 = vunpack.c.l.bf16 %v2497_v23 }
 0x2d7   :  { %v1028_v39 = vsel %vm1025_vm11, %v1027_v35, %v1023_v38  ;;  %1496 = vmatpush.bf16.msra.mxu0 %v2654_v27  ;;  %v3030_v35 = vld [vmem:[%s4503_s1 + $0x50] sm:$0xf0]  ;;  %v2639_v38 = vld [vmem:[%s4503_s1 + $0x54] sm:$0xf0] }
 0x2d8   :  { %v1050_v41 = vmul.f32 %v1028_v39, %v1009_v37  ;;  %v1038_v42 = vmul.f32 %v3130_v30, %v1037_v36  ;;  %v3029_v36 = vld [vmem:[%s4503_s1 + $0x4c] sm:$0xf]  ;;  %v2645_v39 = vld [vmem:[%s4503_s1 + $0x50] sm:$0xf] }
 0x2da   :  { %v1051_v43 = vadd.f32 %v1050_v41, %v1008_v33  ;;  %v1039_v44 = vadd.f32 %v3130_v30, %v1038_v42  ;;  %v2637_v33 = vld [vmem:[%s4503_s1 + $0x48] sm:$0xf]  ;;  %v3031_v41 = vld [vmem:[%s4503_s1 + $0x58] sm:$0xf0] }
 0x2db   :  { %v2638_v37 = vor.u32 %v3030_v35, %v2637_v33  ;;  %v2646_v45 = vor.u32 %v3031_v41, %v2645_v39 }
 0x2dc   :  { %3131 = vtanh.f32 %v1051_v43  ;;  %v1043_v47 = vsel %vm1042_vm14, %v3130_v30, %v1039_v44  ;;  %v2642_v44 = vor.u32 %v3029_v36, %v2639_v38 }
 0x2dd   :  { %v1048_v40 = vsel %vm1045_vm15, %v1047_v49, %v1043_v47  ;;  %1510 = vmatpush.bf16.msra.mxu1 %v2646_v45  ;;  %v3027_v47 = vld [vmem:[%s4503_s1 + $0x38] sm:$0xf0] }
 0x2de   :  { %1497 = vmatpush.bf16.msra.mxu0 %v2642_v44  ;;  %v2626_v49 = vor.u32 %v3027_v47, %v2625_v46 }
 0x2e2   :  { %v3132_v48 = vpop.eup %3131 }
 0x2e3   :  { %v1053_v50 = vsub.f32 %v3833_v57, %v3132_v48  ;;  %v3042_v57 = vld [vmem:[%s4503_s1 + $0xb0] sm:$0xf0] }
 0x2e4   :  { %v2686_v55 = vor.u32 %v3042_v57, %v2685_v54 }
 0x2e5   :  { %v1054_v51 = vmul.f32 %v1053_v50, %v1048_v40  ;;  %v2627_v50 = vld [vmem:[%s4503_s1 + $0x3c] sm:$0xf0]  ;;  %v2633_v40 = vld [vmem:[%s4503_s1 + $0x38] sm:$0xf] }
 0x2e6   :  { %1480 = vmatpush.bf16.msrb.mxu3 %v2686_v55 }
 0x2e7   :  { %v3993_v52 = vadd.f32 %v3132_v48, %v1054_v51  ;;  %v3026_v48 = vld [vmem:[%s4503_s1 + $0x34] sm:$0xf]  ;;  %v3028_v51 = vld [vmem:[%s4503_s1 + $0x40] sm:$0xf0] }
 0x2e8   :  { %v2630_v54 = vor.u32 %v3026_v48, %v2627_v50  ;;  %v2634_v57 = vor.u32 %v3028_v51, %v2633_v40  ;;  %v3066_v50 = vld [vmem:[%s4503_s1 + $0xb0] sm:$0xf0]  ;;  %v3065_v40 = vld [vmem:[%s4503_s1 + $0xac] sm:$0xf] }
 0x2e9   :  { %2495 = vst [vmem:[%s4507_s4 + $0x18] sm:$0xff] %v3993_v52  ;;  %v1061_v53 = vpack.c.bf16 %v3993_v52, %v3993_v52 }
 0x2ea   :  { %1481 = vmatpush.bf16.msrb.mxu3 %v2674_v0  ;;  %1498 = vmatpush.bf16.msra.mxu0 %v2630_v54  ;;  %v2622_v0 = vor.u32 %v3025_v62, %v2621_v60  ;;  %v2794_v54 = vld [vmem:[%s4503_s1 + $0xb0] sm:$0xf]  ;;  %v2776_v60 = vld [vmem:[%s4503_s1 + $0x9c] sm:$0xf0]  ;;  %v2782_v62 = vld [vmem:[%s4503_s1 + $0x98] sm:$0xf] }
 0x2eb   :  { %1230 = vmatmul.bf16.vlgmr.msrb.gmra.mxu0 %v1061_v53  ;;  %1243 = vmatmul.bf16.vlgmr.msrb.gmra.mxu1 %v1061_v53 }
 0x2ec   :  { %1256 = vmatmul.bf16.vlgmr.msrb.gmra.mxu2 %v1061_v53  ;;  %1511 = vmatpush.bf16.msra.mxu1 %v2634_v57  ;;  %v3067_v57 = vld [vmem:[%s4503_s1 + $0xb8] sm:$0xf0] }
 0x2ed   :  { %v2795_v56 = vor.u32 %v3067_v57, %v2794_v54  ;;  %v3047_v57 = vld [vmem:[%s4503_s1 + $0x1c] sm:$0xf] }
 0x2ee   :  { %1482 = vmatpush.bf16.msrb.mxu3 %v2662_v11  ;;  %1499 = vmatpush.bf16.msra.mxu0 %v2618_v2  ;;  %v2609_v11 = vld [vmem:[%s4503_s1 + $0x8] sm:$0xf] }
 0x2ef   :  { %v2610_v14 = vor.u32 %v3022_v12, %v2609_v11 }
 0x2f0   :  { %1512 = vmatpush.bf16.msra.mxu1 %v2622_v0 }
 0x2f2   :  { %1483 = vmatpush.bf16.msrb.mxu3 %v2650_v22  ;;  %1500 = vmatpush.bf16.msra.mxu0 %v2606_v10  ;;  %v3061_v10 = vld [vmem:[%s4503_s1 + $0x88] sm:$0xf0] }
 0x2f4   :  { %1513 = vmatpush.bf16.msra.mxu1 %v2610_v14 }
 0x2f6   :  { %1484 = vmatpush.bf16.msrb.mxu3 %v2638_v37  ;;  %1764 = vmatpush.bf16.msrb.mxu0 %v2795_v56  ;;  %v3049_v56 = vld [vmem:[%s4503_s1 + $0x28] sm:$0xf0] }
 0x2fa   :  { %1485 = vmatpush.bf16.msrb.mxu3 %v2626_v49  ;;  %v2597_v49 = vld [vmem:[%s4506_s0 + $0x3c] sm:$0xff] }
 0x2fe   :  { %1486 = vmatpush.bf16.msrb.mxu3 %v2614_v61  ;;  %v3062_v61 = vld [vmem:[%s4503_s1 + $0x94] sm:$0xf] }
 0x2ff   :  { %v2779_v0 = vor.u32 %v3062_v61, %v2776_v60  ;;  %v2702_v60 = vld [vmem:[%s4503_s1] sm:$0xf] }
 0x302   :  { %1487 = vmatpush.bf16.msrb.mxu3 %v2602_v7  ;;  %v2763_v7 = vor.u32 %v3060_v5, %v2762_v4  ;;  %v2710_v5 = vld [vmem:[%s4503_s1 + $0x8] sm:$0xf] }
 0x368   :  { %v1231_v29 = vpop.f32.mrf.mxu0  ;;  %v1244_v30 = vpop.f32.mrf.mxu1 }
 0x369   :  { %v1268_v31 = vadd.f32 %v1261_v17, %v1231_v29  ;;  %v1288_v32 = vadd.f32 %v1265_v18, %v1244_v30  ;;  %v4154_v29 = vld [vmem:[%s4505_s2] ss:$0 sm:$0xff] }
 0x36b   :  { %v2594_v42 = vmul.f32 -1.442695, %v1268_v31  ;;  %v2595_v43 = vmul.f32 -1.442695, %v1288_v32 }
 0x36d   :  { %3133 = vpow2.f32 %v2594_v42 }
 0x36e   :  { %3135 = vpow2.f32 %v2595_v43 }
 0x36f   :  { %v1257_v53 = vpop.f32.mrf.mxu2 }
 0x370   :  { %v1233_v26 = vpop.f32.mrf.mxu0  ;;  %v1246_v55 = vpop.f32.mrf.mxu1  ;;  %v1267_v30 = vadd.f32 %v4154_v29, %v1257_v53  ;;  %v2788_v53 = vld [vmem:[%s4503_s1 + $0xb4] sm:$0xf0] }
 0x371   :  { %v1521_v26 = vrot.slane %v2597_v49, 4  ;;  %v2791_v55 = vor.u32 %v3065_v40, %v2788_v53  ;;  %v3048_v53 = vld [vmem:[%s4503_s1 + $0x20] sm:$0xf0] }
 0x373   :  { %v3134_v63 = vpop.eup %3133  ;;  %1751 = vmatpush.bf16.msra.mxu3 %v2791_v55  ;;  %v1523_v2 = vunpack.c.l.bf16 %v1521_v26  ;;  %v2716_v26 = vld [vmem:[%s4503_s1 + $0x24] sm:$0xf0]  ;;  %v2722_v55 = vld [vmem:[%s4503_s1 + $0x20] sm:$0xf] }
 0x374   :  { %v3136_v3 = vpop.eup %3135  ;;  %v1272_v6 = vadd.f32 1.0, %v3134_v63  ;;  %v3064_v63 = vld [vmem:[%s4503_s1 + $0xa0] sm:$0xf0] }
 0x375   :  { %v1292_v9 = vadd.f32 1.0, %v3136_v3  ;;  %v2783_v1 = vor.u32 %v3064_v63, %v2782_v62  ;;  %v3059_v3 = vld [vmem:[%s4503_s1 + $0x7c] sm:$0xf]  ;;  %v3045_v62 = vld [vmem:[%s4503_s1 + $0x8] sm:$0xf0]  ;;  %v2723_v63 = vor.u32 %v3049_v56, %v2722_v55 }
 0x376   :  { %3137 = vrcp.f32 %v1272_v6  ;;  %v1284_v20 = vand.u32 2147483648, %v1272_v6  ;;  %v1282_v22 = vand.u32 2147483647, %v1272_v6  ;;  %vm1278_vm1 = vweird.f32 %v1272_v6  ;;  %v2877_v55 = vld [vmem:[%s4503_s1 + $0x9c] sm:$0xf0] }
 0x377   :  { %3139 = vrcp.f32 %v1292_v9  ;;  %v1259_v13 = vpop.f32.mrf.mxu2  ;;  %v1304_v38 = vand.u32 2147483648, %v1292_v9  ;;  %vm1298_vm5 = vweird.f32 %v1292_v9  ;;  %v1302_v39 = vand.u32 2147483647, %v1292_v9  ;;  %1752 = vmatpush.bf16.msra.mxu3 %v2779_v0  ;;  %1765 = vmatpush.bf16.msrb.mxu0 %v2783_v1  ;;  %v2704_v0 = vld [vmem:[%s4503_s1 + $0xc] sm:$0xf0] }
 0x378   :  { %v1285_v27 = vor.u32 1.1754944e-38, %v1284_v20  ;;  %vm1283_vm3 = vcmp.eq.f32.partialorder %v1282_v22, 8.507059e+37  ;;  %v2767_v13 = vor.u32 %v3059_v3, %v2764_v8  ;;  %v3056_v20 = vld [vmem:[%s4503_s1 + $0x64] sm:$0xf]  ;;  %v2758_v22 = vld [vmem:[%s4503_s1 + $0x68] sm:$0xf] }
 0x379   :  { %v1305_v43 = vor.u32 1.1754944e-38, %v1304_v38  ;;  %vm1303_vm7 = vcmp.eq.f32.partialorder %v1302_v39, 8.507059e+37  ;;  %v3055_v38 = vld [vmem:[%s4503_s1 + $0x58] sm:$0xf0]  ;;  %v2726_v39 = vld [vmem:[%s4503_s1 + $0x30] sm:$0xf] }
 0x37a   :  { %v3046_v3 = vld [vmem:[%s4503_s1 + $0x10] sm:$0xf0]  ;;  %v2883_v56 = vld [vmem:[%s4503_s1 + $0x98] sm:$0xf] }
 0x37b   :  { %1753 = vmatpush.bf16.msra.mxu3 %v2767_v13 }
 0x37c   :  { %v3138_v15 = vpop.eup %3137 }
 0x37d   :  { %v3140_v16 = vpop.eup %3139  ;;  %v1274_v17 = vmul.f32 %v3138_v15, %v1272_v6  ;;  %vm1279_vm0 = vweird.f32 %v3138_v15 }
 0x37e   :  { %v1294_v19 = vmul.f32 %v3140_v16, %v1292_v9  ;;  %vm1280_vm2 = vmor %vm1278_vm1, %vm1279_vm0  ;;  %vm1299_vm4 = vweird.f32 %v3140_v16  ;;  %v2770_v9 = vld [vmem:[%s4503_s1 + $0x80] sm:$0xf] }
 0x37f   :  { %v1275_v18 = vsub.f32 1.0, %v1274_v17  ;;  %vm1300_vm6 = vmor %vm1298_vm5, %vm1299_vm4  ;;  %v2771_v14 = vor.u32 %v3061_v10, %v2770_v9  ;;  %v2750_v17 = vld [vmem:[%s4503_s1 + $0x60] sm:$0xf]  ;;  %v2711_v9 = vor.u32 %v3046_v3, %v2710_v5 }
 0x380   :  { %v1295_v25 = vsub.f32 1.0, %v1294_v19 }
 0x381   :  { %v1276_v21 = vmul.f32 %v3138_v15, %v1275_v18  ;;  %1766 = vmatpush.bf16.msrb.mxu0 %v2771_v14  ;;  %v3057_v18 = vld [vmem:[%s4503_s1 + $0x68] sm:$0xf0] }
 0x382   :  { %v1296_v35 = vmul.f32 %v3140_v16, %v1295_v25  ;;  %v2751_v19 = vor.u32 %v3057_v18, %v2750_v17  ;;  %v2738_v25 = vld [vmem:[%s4503_s1 + $0x48] sm:$0xf] }
 0x383   :  { %v1277_v24 = vadd.f32 %v3138_v15, %v1276_v21  ;;  %v2752_v21 = vld [vmem:[%s4503_s1 + $0x6c] sm:$0xf0] }
 0x384   :  { %v1297_v37 = vadd.f32 %v3140_v16, %v1296_v35  ;;  %v2755_v23 = vor.u32 %v3056_v20, %v2752_v21  ;;  %v2746_v35 = vld [vmem:[%s4503_s1 + $0x50] sm:$0xf] }
 0x385   :  { %v1281_v31 = vsel %vm1280_vm2, %v3138_v15, %v1277_v24  ;;  %v3058_v24 = vld [vmem:[%s4503_s1 + $0x70] sm:$0xf0] }
 0x386   :  { %v1286_v32 = vsel %vm1283_vm3, %v1285_v27, %v1281_v31  ;;  %v1301_v41 = vsel %vm1300_vm6, %v3140_v16, %v1297_v37  ;;  %v1519_v16 = vunpack.c.l.bf16 %v2597_v49  ;;  %v3054_v27 = vld [vmem:[%s4503_s1 + $0x50] sm:$0xf0]  ;;  %1754 = vmatpush.bf16.msra.mxu3 %v2755_v23  ;;  %v2734_v49 = vld [vmem:[%s4503_s1 + $0x38] sm:$0xf] }
 0x387   :  { %v1308_v33 = vmul.f32 %v1286_v32, %v1267_v30  ;;  %v1306_v45 = vsel %vm1303_vm7, %v1305_v43, %v1301_v41  ;;  %v2759_v30 = vor.u32 %v3058_v24, %v2758_v22  ;;  %v2739_v31 = vor.u32 %v3054_v27, %v2738_v25  ;;  %v3053_v32 = vld [vmem:[%s4503_s1 + $0x4c] sm:$0xf]  ;;  %v3051_v41 = vld [vmem:[%s4503_s1 + $0x38] sm:$0xf0] }
 0x388   :  { %v2747_v43 = vor.u32 %v3055_v38, %v2746_v35 }
 0x389   :  { %v1309_v36 = vadd.f32 %v1308_v33, %v1266_v28  ;;  %v2740_v33 = vld [vmem:[%s4503_s1 + $0x54] sm:$0xf0]  ;;  %1767 = vmatpush.bf16.msrb.mxu0 %v2759_v30 }
 0x38a   :  { %v2743_v37 = vor.u32 %v3053_v32, %v2740_v33 }
 0x38b   :  { %3141 = vtanh.f32 %v1309_v36 }
 0x38c   :  { %1755 = vmatpush.bf16.msra.mxu3 %v2743_v37 }
 0x38d   :  { %1768 = vmatpush.bf16.msrb.mxu0 %v2747_v43 }
 0x391   :  { %v3142_v42 = vpop.eup %3141 }
 0x392   :  { %v1311_v44 = vsub.f32 %v3993_v52, %v3142_v42  ;;  %v2786_v52 = vld [vmem:[%s4503_s1 + $0xa8] sm:$0xf] }
 0x393   :  { %v2787_v51 = vor.u32 %v3066_v50, %v2786_v52  ;;  %v3052_v52 = vld [vmem:[%s4503_s1 + $0x40] sm:$0xf0]  ;;  %v2727_v50 = vor.u32 %v3051_v41, %v2726_v39 }
 0x394   :  { %v1312_v46 = vmul.f32 %v1311_v44, %v1306_v45  ;;  %v3050_v44 = vld [vmem:[%s4503_s1 + $0x34] sm:$0xf]  ;;  %v2728_v45 = vld [vmem:[%s4503_s1 + $0x3c] sm:$0xf0]  ;;  %v2735_v54 = vor.u32 %v3052_v52, %v2734_v49  ;;  %v2895_v49 = vld [vmem:[%s4503_s1 + $0xb0] sm:$0xf] }
 0x395   :  { %1738 = vmatpush.bf16.msra.mxu2 %v2787_v51  ;;  %v2731_v40 = vor.u32 %v3050_v44, %v2728_v45  ;;  %v2714_v51 = vld [vmem:[%s4503_s1 + $0x18] sm:$0xf]  ;;  %v2887_v44 = vld [vmem:[%s4503_s1 + $0xa8] sm:$0xf]  ;;  %v3089_v45 = vld [vmem:[%s4503_s1 + $0xac] sm:$0xf] }
 0x396   :  { %v4158_v47 = vadd.f32 %v3142_v42, %v1312_v46  ;;  %v2715_v61 = vor.u32 %v3048_v53, %v2714_v51  ;;  %1769 = vmatpush.bf16.msrb.mxu0 %v2735_v54  ;;  %v3091_v52 = vld [vmem:[%s4503_s1 + $0xb8] sm:$0xf0]  ;;  %v2698_v51 = vld [vmem:[%s4506_s0 + $0x48] sm:$0xff]  ;;  %v2875_v53 = vld [vmem:[%s4503_s1 + $0x90] sm:$0xf] }
 0x397   :  { %1756 = vmatpush.bf16.msra.mxu3 %v2731_v40  ;;  %v2896_v40 = vor.u32 %v3091_v52, %v2895_v49  ;;  %v3087_v54 = vld [vmem:[%s4503_s1 + $0x98] sm:$0xf0]  ;;  %v3072_v49 = vld [vmem:[%s4503_s1 + $0x20] sm:$0xf0] }
 0x398   :  { %2596 = vst [vmem:[%s4507_s4 + $0x20] sm:$0xff] %v4158_v47  ;;  %v1319_v48 = vpack.c.bf16 %v4158_v47, %v4158_v47  ;;  %v3071_v52 = vld [vmem:[%s4503_s1 + $0x1c] sm:$0xf] }
 0x399   :  { %1739 = vmatpush.bf16.msra.mxu2 %v2775_v59  ;;  %v2719_v59 = vor.u32 %v3047_v57, %v2716_v26  ;;  %v3086_v57 = vld [vmem:[%s4503_s1 + $0x94] sm:$0xf]  ;;  %v2876_v26 = vor.u32 %v3087_v54, %v2875_v53 }
 0x39a   :  { %1488 = vmatmul.bf16.vlgmr.msrb.gmra.mxu3 %v1319_v48  ;;  %1501 = vmatmul.bf16.vlgmr.msra.gmra.mxu0 %v1319_v48 }
 0x39b   :  { %1514 = vmatmul.bf16.vlgmr.msra.gmra.mxu1 %v1319_v48  ;;  %1757 = vmatpush.bf16.msra.mxu3 %v2719_v59  ;;  %v1779_v59 = vrot.slane %v2698_v51, 4 }
 0x39c   :  { %1770 = vmatpush.bf16.msrb.mxu0 %v2723_v63  ;;  %v3083_v63 = vld [vmem:[%s4503_s1 + $0x7c] sm:$0xf] }
 0x39d   :  { %1740 = vmatpush.bf16.msra.mxu2 %v2763_v7  ;;  %v2703_v7 = vor.u32 %v3045_v62, %v2702_v60  ;;  %v2863_v60 = vld [vmem:[%s4503_s1 + $0x78] sm:$0xf]  ;;  %v3084_v62 = vld [vmem:[%s4503_s1 + $0x80] sm:$0xf0] }
 0x3a0   :  { %1771 = vmatpush.bf16.msrb.mxu0 %v2711_v9  ;;  %v2851_v9 = vld [vmem:[%s4503_s1 + $0x60] sm:$0xf] }
 0x3a1   :  { %1741 = vmatpush.bf16.msra.mxu2 %v2751_v19  ;;  %v2598_v19 = vld [vmem:[%s4506_s0 + $0x44] sm:$0xf] }
 0x3a2   :  { %v1524_v25 = vunpack.c.l.bf16 %v2598_v19  ;;  %v2839_v19 = vld [vmem:[%s4503_s1 + $0x48] sm:$0xf] }
 0x3a5   :  { %1742 = vmatpush.bf16.msra.mxu2 %v2739_v31 }
 0x3a9   :  { %1743 = vmatpush.bf16.msra.mxu2 %v2727_v50 }
 0x3ad   :  { %1744 = vmatpush.bf16.msra.mxu2 %v2715_v61 }
 0x3b1   :  { %1745 = vmatpush.bf16.msra.mxu2 %v2703_v7  ;;  %v1777_v7 = vunpack.c.l.bf16 %v2698_v51  ;;  %v3073_v51 = vld [vmem:[%s4503_s1 + $0x28] sm:$0xf0] }
 0x417   :  { %v1502_v6 = vpop.f32.mrf.mxu0 }
 0x418   :  { %v1546_v11 = vadd.f32 %v1523_v2, %v1502_v6  ;;  %v4223_v12 = vpop.f32.mrf.mxu1  ;;  %v3044_v2 = vld [vmem:[%s4503_s1 + $0x4] sm:$0xf] }
 0x419   :  { %v2707_v8 = vor.u32 %v3044_v2, %v2704_v0  ;;  %v1525_v23 = vadd.f32 %v4154_v29, %v4223_v12  ;;  %v2864_v2 = vor.u32 %v3084_v62, %v2863_v60  ;;  %v2865_v0 = vld [vmem:[%s4503_s1 + $0x84] sm:$0xf0]  ;;  %v3070_v60 = vld [vmem:[%s4503_s1 + $0x10] sm:$0xf0] }
 0x41a   :  { %v2696_v15 = vmul.f32 -1.442695, %v1546_v11  ;;  %v2868_v3 = vor.u32 %v3083_v63, %v2865_v0 }
 0x41b   :  { %1758 = vmatpush.bf16.msra.mxu3 %v2707_v8  ;;  %v1781_v8 = vunpack.c.l.bf16 %v1779_v59  ;;  %v2811_v59 = vld [vmem:[%s4503_s1 + $0x8] sm:$0xf] }
 0x41c   :  { %3143 = vpow2.f32 %v2696_v15 }
 0x41d   :  { %v1489_v28 = vpop.f32.mrf.mxu3 }
 0x41e   :  { %v1526_v36 = vadd.f32 %v1519_v16, %v1489_v28 }
 0x41f   :  { %v1504_v42 = vpop.f32.mrf.mxu0  ;;  %2022 = vmatpush.bf16.msrb.mxu3 %v2896_v40  ;;  %v2823_v40 = vld [vmem:[%s4503_s1 + $0x20] sm:$0xf] }
 0x420   :  { %v2695_v46 = vmul.f32 -1.442695, %v1526_v36  ;;  %v1517_v48 = vpop.f32.mrf.mxu1 }
 0x421   :  { %v2889_v48 = vld [vmem:[%s4503_s1 + $0xb4] sm:$0xf0] }
 0x422   :  { %3145 = vpow2.f32 %v2695_v46  ;;  %v3144_v58 = vpop.eup %3143  ;;  %v2892_v50 = vor.u32 %v3089_v45, %v2889_v48  ;;  %v2815_v48 = vld [vmem:[%s4503_s1 + $0x18] sm:$0xf] }
 0x423   :  { %v1550_v4 = vadd.f32 1.0, %v3144_v58  ;;  %v3088_v58 = vld [vmem:[%s4503_s1 + $0xa0] sm:$0xf0] }
 0x424   :  { %2009 = vmatpush.bf16.msrb.mxu2 %v2892_v50  ;;  %v2884_v61 = vor.u32 %v3088_v58, %v2883_v56  ;;  %v2817_v50 = vld [vmem:[%s4503_s1 + $0x24] sm:$0xf0]  ;;  %v2803_v56 = vld [vmem:[%s4503_s1] sm:$0xf]  ;;  %v3069_v58 = vld [vmem:[%s4503_s1 + $0x8] sm:$0xf0] }
 0x425   :  { %v1491_v34 = vpop.f32.mrf.mxu3  ;;  %v1562_v33 = vand.u32 2147483648, %v1550_v4  ;;  %vm1556_vm13 = vweird.f32 %v1550_v4  ;;  %v1560_v35 = vand.u32 2147483647, %v1550_v4  ;;  %v2804_v0 = vor.u32 %v3069_v58, %v2803_v56 }
 0x426   :  { %v2880_v34 = vor.u32 %v3086_v57, %v2877_v55  ;;  %2023 = vmatpush.bf16.msrb.mxu3 %v2884_v61  ;;  %v2816_v57 = vor.u32 %v3072_v49, %v2815_v48  ;;  %v2824_v55 = vor.u32 %v3073_v51, %v2823_v40  ;;  %v2805_v61 = vld [vmem:[%s4503_s1 + $0xc] sm:$0xf0] }
 0x427   :  { %v1563_v38 = vor.u32 1.1754944e-38, %v1562_v33  ;;  %vm1561_vm15 = vcmp.eq.f32.partialorder %v1560_v35, 8.507059e+37  ;;  %v2827_v33 = vld [vmem:[%s4503_s1 + $0x30] sm:$0xf]  ;;  %v3075_v35 = vld [vmem:[%s4503_s1 + $0x38] sm:$0xf0] }
 0x428   :  { %v3146_v1 = vpop.eup %3145  ;;  %2010 = vmatpush.bf16.msrb.mxu2 %v2880_v34  ;;  %v3068_v34 = vld [vmem:[%s4503_s1 + $0x4] sm:$0xf] }
 0x429   :  { %v1530_v6 = vadd.f32 1.0, %v3146_v1  ;;  %v2871_v1 = vld [vmem:[%s4503_s1 + $0x80] sm:$0xf] }
 0x42b   :  { %3147 = vrcp.f32 %v1530_v6  ;;  %v1542_v16 = vand.u32 2147483648, %v1530_v6  ;;  %v1540_v18 = vand.u32 2147483647, %v1530_v6  ;;  %vm1536_vm9 = vweird.f32 %v1530_v6 }
 0x42c   :  { %3149 = vrcp.f32 %v1550_v4  ;;  %2011 = vmatpush.bf16.msrb.mxu2 %v2868_v3  ;;  %v2812_v3 = vor.u32 %v3070_v60, %v2811_v59 }
 0x42d   :  { %v1543_v22 = vor.u32 1.1754944e-38, %v1542_v16  ;;  %vm1541_vm11 = vcmp.eq.f32.partialorder %v1540_v18, 8.507059e+37  ;;  %v3082_v16 = vld [vmem:[%s4503_s1 + $0x70] sm:$0xf0] }
 0x431   :  { %v3148_v10 = vpop.eup %3147 }
 0x432   :  { %v3150_v11 = vpop.eup %3149  ;;  %v1532_v13 = vmul.f32 %v3148_v10, %v1530_v6  ;;  %vm1537_vm8 = vweird.f32 %v3148_v10 }
 0x433   :  { %v1552_v15 = vmul.f32 %v3150_v11, %v1550_v4  ;;  %vm1538_vm10 = vmor %vm1536_vm9, %vm1537_vm8  ;;  %vm1557_vm12 = vweird.f32 %v3150_v11  ;;  %v3085_v4 = vld [vmem:[%s4503_s1 + $0x88] sm:$0xf0] }
 0x434   :  { %v1533_v14 = vsub.f32 1.0, %v1532_v13  ;;  %vm1558_vm14 = vmor %vm1556_vm13, %vm1557_vm12  ;;  %v2872_v6 = vor.u32 %v3085_v4, %v2871_v1  ;;  %v2808_v4 = vor.u32 %v3068_v34, %v2805_v61  ;;  %v2800_v34 = vld [vmem:[%s4506_s0 + $0x5c] sm:$0xf] }
 0x435   :  { %v1553_v21 = vsub.f32 1.0, %v1552_v15  ;;  %v2859_v15 = vld [vmem:[%s4503_s1 + $0x68] sm:$0xf] }
 0x436   :  { %v1534_v17 = vmul.f32 %v3148_v10, %v1533_v14  ;;  %2024 = vmatpush.bf16.msrb.mxu3 %v2872_v6  ;;  %v2853_v14 = vld [vmem:[%s4503_s1 + $0x6c] sm:$0xf0]  ;;  %v2860_v18 = vor.u32 %v3082_v16, %v2859_v15 }
 0x437   :  { %v1554_v30 = vmul.f32 %v3150_v11, %v1553_v21  ;;  %v3077_v21 = vld [vmem:[%s4503_s1 + $0x4c] sm:$0xf]  ;;  %v2699_v15 = vld [vmem:[%s4506_s0 + $0x50] sm:$0xf] }
 0x438   :  { %v1535_v20 = vadd.f32 %v3148_v10, %v1534_v17 }
 0x439   :  { %v1555_v32 = vadd.f32 %v3150_v11, %v1554_v30 }
 0x43a   :  { %v1539_v24 = vsel %vm1538_vm10, %v3148_v10, %v1535_v20  ;;  %v3081_v10 = vld [vmem:[%s4503_s1 + $0x68] sm:$0xf0]  ;;  %v3078_v20 = vld [vmem:[%s4503_s1 + $0x50] sm:$0xf0]  ;;  %2025 = vmatpush.bf16.msrb.mxu3 %v2860_v18 }
 0x43b   :  { %v1544_v27 = vsel %vm1541_vm11, %v1543_v22, %v1539_v24  ;;  %v1559_v36 = vsel %vm1558_vm14, %v3150_v11, %v1555_v32  ;;  %v3080_v11 = vld [vmem:[%s4503_s1 + $0x64] sm:$0xf]  ;;  %v2852_v13 = vor.u32 %v3081_v10, %v2851_v9  ;;  %v2840_v24 = vor.u32 %v3078_v20, %v2839_v19 }
 0x43c   :  { %v1566_v28 = vmul.f32 %v1544_v27, %v1525_v23  ;;  %v1564_v39 = vsel %vm1561_vm15, %v1563_v38, %v1559_v36  ;;  %v2856_v17 = vor.u32 %v3080_v11, %v2853_v14  ;;  %v2847_v27 = vld [vmem:[%s4503_s1 + $0x50] sm:$0xf]  ;;  %v3074_v36 = vld [vmem:[%s4503_s1 + $0x34] sm:$0xf]  ;;  %v2829_v38 = vld [vmem:[%s4503_s1 + $0x3c] sm:$0xf0] }
 0x43d   :  { %v2832_v45 = vor.u32 %v3074_v36, %v2829_v38 }
 0x43e   :  { %v1567_v31 = vadd.f32 %v1566_v28, %v1524_v25  ;;  %v2841_v25 = vld [vmem:[%s4503_s1 + $0x54] sm:$0xf0]  ;;  %v3079_v28 = vld [vmem:[%s4503_s1 + $0x58] sm:$0xf0]  ;;  %2012 = vmatpush.bf16.msrb.mxu2 %v2856_v17 }
 0x43f   :  { %v2844_v32 = vor.u32 %v3077_v21, %v2841_v25  ;;  %v1782_v21 = vunpack.c.l.bf16 %v2699_v15 }
 0x440   :  { %3151 = vtanh.f32 %v1567_v31 }
 0x442   :  { %2013 = vmatpush.bf16.msrb.mxu2 %v2844_v32 }
 0x446   :  { %v3152_v37 = vpop.eup %3151  ;;  %2014 = vmatpush.bf16.msrb.mxu2 %v2832_v45 }
 0x447   :  { %v1569_v12 = vsub.f32 %v4158_v47, %v3152_v37  ;;  %v3090_v47 = vld [vmem:[%s4503_s1 + $0xb0] sm:$0xf0] }
 0x448   :  { %v2888_v46 = vor.u32 %v3090_v47, %v2887_v44  ;;  %v2828_v47 = vor.u32 %v3075_v35, %v2827_v33 }
 0x449   :  { %v1570_v41 = vmul.f32 %v1569_v12, %v1564_v39  ;;  %v2835_v12 = vld [vmem:[%s4503_s1 + $0x38] sm:$0xf]  ;;  %v3076_v39 = vld [vmem:[%s4503_s1 + $0x40] sm:$0xf0] }
 0x44a   :  { %1996 = vmatpush.bf16.msrb.mxu1 %v2888_v46  ;;  %v2836_v46 = vor.u32 %v3076_v39, %v2835_v12  ;;  %v2799_v12 = vld [vmem:[%s4506_s0 + $0x54] sm:$0xff] }
 0x44b   :  { %v4321_v42 = vadd.f32 %v3152_v37, %v1570_v41  ;;  %v2848_v37 = vor.u32 %v3079_v28, %v2847_v27  ;;  %v2037_v39 = vrot.slane %v2799_v12, 4 }
 0x44d   :  { %2697 = vst [vmem:[%s4507_s4 + $0x28] sm:$0xff] %v4321_v42  ;;  %v1577_v43 = vpack.c.bf16 %v4321_v42, %v4321_v42  ;;  %2026 = vmatpush.bf16.msrb.mxu3 %v2848_v37 }
 0x44e   :  { %1997 = vmatpush.bf16.msrb.mxu1 %v2876_v26  ;;  %v2820_v26 = vor.u32 %v3071_v52, %v2817_v50 }
 0x44f   :  { %1746 = vmatmul.bf16.vlgmr.msra.gmra.mxu2 %v1577_v43  ;;  %1759 = vmatmul.bf16.vlgmr.msra.gmra.mxu3 %v1577_v43 }
 0x450   :  { %1772 = vmatmul.bf16.vlgmr.msrb.gmra.mxu0 %v1577_v43  ;;  %2015 = vmatpush.bf16.msrb.mxu2 %v2820_v26 }
 0x451   :  { %2027 = vmatpush.bf16.msrb.mxu3 %v2836_v46 }
 0x452   :  { %1998 = vmatpush.bf16.msrb.mxu1 %v2864_v2 }
 0x454   :  { %2016 = vmatpush.bf16.msrb.mxu2 %v2808_v4 }
 0x455   :  { %2028 = vmatpush.bf16.msrb.mxu3 %v2824_v55 }
 0x456   :  { %1999 = vmatpush.bf16.msrb.mxu1 %v2852_v13 }
 0x459   :  { %2029 = vmatpush.bf16.msrb.mxu3 %v2812_v3 }
 0x45a   :  { %2000 = vmatpush.bf16.msrb.mxu1 %v2840_v24 }
 0x45e   :  { %2001 = vmatpush.bf16.msrb.mxu1 %v2828_v47  ;;  %v2039_v47 = vunpack.c.l.bf16 %v2037_v39 }
 0x462   :  { %2002 = vmatpush.bf16.msrb.mxu1 %v2816_v57 }
 0x466   :  { %2003 = vmatpush.bf16.msrb.mxu1 %v2804_v0 }
 0x4cd   :  { %v4386_v5 = vpop.f32.mrf.mxu0 }
 0x4ce   :  { %v1783_v19 = vadd.f32 %v4154_v29, %v4386_v5 }
 0x4d2   :  { %v1747_v22 = vpop.f32.mrf.mxu2  ;;  %v1760_v23 = vpop.f32.mrf.mxu3 }
 0x4d3   :  { %v1784_v30 = vadd.f32 %v1777_v7, %v1747_v22  ;;  %v1804_v31 = vadd.f32 %v1781_v8, %v1760_v23 }
 0x4d5   :  { %v2796_v41 = vmul.f32 -1.442695, %v1784_v30  ;;  %v2797_v43 = vmul.f32 -1.442695, %v1804_v31  ;;  %v1775_v44 = vpop.f32.mrf.mxu0 }
 0x4d7   :  { %3153 = vpow2.f32 %v2796_v41 }
 0x4d8   :  { %3155 = vpow2.f32 %v2797_v43 }
 0x4da   :  { %v1749_v53 = vpop.f32.mrf.mxu2  ;;  %v1762_v54 = vpop.f32.mrf.mxu3 }
 0x4dd   :  { %v3154_v62 = vpop.eup %3153 }
 0x4de   :  { %v3156_v63 = vpop.eup %3155  ;;  %v1788_v2 = vadd.f32 1.0, %v3154_v62 }
 0x4df   :  { %v1808_v1 = vadd.f32 1.0, %v3156_v63 }
 0x4e0   :  { %3157 = vrcp.f32 %v1788_v2  ;;  %v1800_v10 = vand.u32 2147483648, %v1788_v2  ;;  %v1798_v14 = vand.u32 2147483647, %v1788_v2  ;;  %vm1794_vm1 = vweird.f32 %v1788_v2 }
 0x4e1   :  { %3159 = vrcp.f32 %v1808_v1  ;;  %v1820_v28 = vand.u32 2147483648, %v1808_v1  ;;  %vm1814_vm5 = vweird.f32 %v1808_v1  ;;  %v1818_v30 = vand.u32 2147483647, %v1808_v1 }
 0x4e2   :  { %v1801_v17 = vor.u32 1.1754944e-38, %v1800_v10  ;;  %vm1799_vm3 = vcmp.eq.f32.partialorder %v1798_v14, 8.507059e+37 }
 0x4e3   :  { %v1821_v33 = vor.u32 1.1754944e-38, %v1820_v28  ;;  %vm1819_vm7 = vcmp.eq.f32.partialorder %v1818_v30, 8.507059e+37 }
 0x4e6   :  { %v3158_v6 = vpop.eup %3157 }
 0x4e7   :  { %v3160_v7 = vpop.eup %3159  ;;  %v1790_v8 = vmul.f32 %v3158_v6, %v1788_v2  ;;  %vm1795_vm0 = vweird.f32 %v3158_v6  ;;  %v2040_v2 = vunpack.c.l.bf16 %v2800_v34 }
 0x4e8   :  { %v1810_v11 = vmul.f32 %v3160_v7, %v1808_v1  ;;  %vm1796_vm2 = vmor %vm1794_vm1, %vm1795_vm0  ;;  %vm1815_vm4 = vweird.f32 %v3160_v7 }
 0x4e9   :  { %v1791_v9 = vsub.f32 1.0, %v1790_v8  ;;  %vm1816_vm6 = vmor %vm1814_vm5, %vm1815_vm4 }
 0x4ea   :  { %v1811_v18 = vsub.f32 1.0, %v1810_v11 }
 0x4eb   :  { %v1792_v13 = vmul.f32 %v3158_v6, %v1791_v9 }
 0x4ec   :  { %v1812_v24 = vmul.f32 %v3160_v7, %v1811_v18 }
 0x4ed   :  { %v1793_v16 = vadd.f32 %v3158_v6, %v1792_v13 }
 0x4ee   :  { %v1813_v27 = vadd.f32 %v3160_v7, %v1812_v24 }
 0x4ef   :  { %v1797_v20 = vsel %vm1796_vm2, %v3158_v6, %v1793_v16 }
 0x4f0   :  { %v1802_v22 = vsel %vm1799_vm3, %v1801_v17, %v1797_v20  ;;  %v1817_v31 = vsel %vm1816_vm6, %v3160_v7, %v1813_v27 }
 0x4f1   :  { %v1824_v23 = vmul.f32 %v1802_v22, %v1783_v19  ;;  %v1822_v35 = vsel %vm1819_vm7, %v1821_v33, %v1817_v31 }
 0x4f3   :  { %v1825_v25 = vadd.f32 %v1824_v23, %v1782_v21 }
 0x4f5   :  { %3161 = vtanh.f32 %v1825_v25 }
 0x4fb   :  { %v3162_v32 = vpop.eup %3161 }
 0x4fc   :  { %v1827_v5 = vsub.f32 %v4321_v42, %v3162_v32  ;;  %v2035_v42 = vunpack.c.l.bf16 %v2799_v12 }
 0x4fe   :  { %v1828_v36 = vmul.f32 %v1827_v5, %v1822_v35 }
 0x500   :  { %v4484_v37 = vadd.f32 %v3162_v32, %v1828_v36 }
 0x502   :  { %2798 = vst [vmem:[%s4507_s4 + $0x30] sm:$0xff] %v4484_v37  ;;  %v1835_v38 = vpack.c.bf16 %v4484_v37, %v4484_v37 }
 0x504   :  { %2004 = vmatmul.bf16.vlgmr.msrb.gmra.mxu1 %v1835_v38  ;;  %2017 = vmatmul.bf16.vlgmr.msrb.gmra.mxu2 %v1835_v38 }
 0x505   :  { %2030 = vmatmul.bf16.vlgmr.msrb.gmra.mxu3 %v1835_v38 }
 0x581   :  { %v2005_v41 = vpop.f32.mrf.mxu1 }
 0x582   :  { %v2042_v43 = vadd.f32 %v2035_v42, %v2005_v41 }
 0x584   :  { %v2897_v44 = vmul.f32 -1.442695, %v2042_v43 }
 0x586   :  { %3163 = vpow2.f32 %v2897_v44 }
 0x587   :  { %v2018_v45 = vpop.f32.mrf.mxu2 }
 0x588   :  { %v2062_v46 = vadd.f32 %v2039_v47, %v2018_v45  ;;  %v2031_v48 = vpop.f32.mrf.mxu3 }
 0x589   :  { %v2007_v49 = vpop.f32.mrf.mxu1  ;;  %v2041_v4 = vadd.f32 %v4154_v29, %v2031_v48 }
 0x58a   :  { %v2898_v52 = vmul.f32 -1.442695, %v2062_v46 }
 0x58c   :  { %v3164_v50 = vpop.eup %3163  ;;  %3165 = vpow2.f32 %v2898_v52 }
 0x58d   :  { %v2046_v40 = vadd.f32 1.0, %v3164_v50 }
 0x58f   :  { %3167 = vrcp.f32 %v2046_v40  ;;  %v2020_v51 = vpop.f32.mrf.mxu2  ;;  %v2058_v58 = vand.u32 2147483648, %v2046_v40  ;;  %v2056_v59 = vand.u32 2147483647, %v2046_v40  ;;  %vm2052_vm9 = vweird.f32 %v2046_v40 }
 0x590   :  { %v2033_v53 = vpop.f32.mrf.mxu3 }
 0x591   :  { %v2059_v0 = vor.u32 1.1754944e-38, %v2058_v58  ;;  %vm2057_vm11 = vcmp.eq.f32.partialorder %v2056_v59, 8.507059e+37 }
 0x592   :  { %v3166_v54 = vpop.eup %3165 }
 0x593   :  { %v2066_v57 = vadd.f32 1.0, %v3166_v54 }
 0x595   :  { %v3168_v26 = vpop.eup %3167  ;;  %3169 = vrcp.f32 %v2066_v57  ;;  %v2078_v11 = vand.u32 2147483648, %v2066_v57  ;;  %vm2072_vm13 = vweird.f32 %v2066_v57  ;;  %v2076_v13 = vand.u32 2147483647, %v2066_v57 }
 0x596   :  { %v2048_v55 = vmul.f32 %v3168_v26, %v2046_v40  ;;  %vm2053_vm8 = vweird.f32 %v3168_v26 }
 0x597   :  { %vm2054_vm10 = vmor %vm2052_vm9, %vm2053_vm8  ;;  %v2079_v16 = vor.u32 1.1754944e-38, %v2078_v11  ;;  %vm2077_vm15 = vcmp.eq.f32.partialorder %v2076_v13, 8.507059e+37 }
 0x598   :  { %v2049_v56 = vsub.f32 1.0, %v2048_v55 }
 0x59a   :  { %v2050_v61 = vmul.f32 %v3168_v26, %v2049_v56 }
 0x59b   :  { %v3170_v60 = vpop.eup %3169 }
 0x59c   :  { %v2068_v62 = vmul.f32 %v3170_v60, %v2066_v57  ;;  %v2051_v63 = vadd.f32 %v3168_v26, %v2050_v61  ;;  %vm2073_vm12 = vweird.f32 %v3170_v60 }
 0x59d   :  { %vm2074_vm14 = vmor %vm2072_vm13, %vm2073_vm12 }
 0x59e   :  { %v2069_v1 = vsub.f32 1.0, %v2068_v62  ;;  %v2055_v3 = vsel %vm2054_vm10, %v3168_v26, %v2051_v63 }
 0x59f   :  { %v2060_v6 = vsel %vm2057_vm11, %v2059_v0, %v2055_v3 }
 0x5a0   :  { %v2082_v7 = vmul.f32 %v2060_v6, %v2041_v4  ;;  %v2070_v8 = vmul.f32 %v3170_v60, %v2069_v1 }
 0x5a2   :  { %v2083_v9 = vadd.f32 %v2082_v7, %v2040_v2  ;;  %v2071_v10 = vadd.f32 %v3170_v60, %v2070_v8 }
 0x5a4   :  { %3171 = vtanh.f32 %v2083_v9  ;;  %v2075_v14 = vsel %vm2074_vm14, %v3170_v60, %v2071_v10 }
 0x5a5   :  { %v2080_v29 = vsel %vm2077_vm15, %v2079_v16, %v2075_v14 }
 0x5aa   :  { %v3172_v15 = vpop.eup %3171 }
 0x5ab   :  { %v2085_v17 = vsub.f32 %v4484_v37, %v3172_v15 }
 0x5ad   :  { %v2086_v18 = vmul.f32 %v2085_v17, %v2080_v29 }
 0x5af   :  { %v2087_v19 = vadd.f32 %v3172_v15, %v2086_v18 }
 0x5b1   :  { %2899 = vst [vmem:[%s4507_s4 + $0x38] sm:$0xff] %v2087_v19 }

// kernel: _decoder_gru_forward_impl.2
= control target key start
LH: loop header
LB: loop body
LE: loop exit
PB: predicated region body
PF: predicated region fallthrough
CT: control target
= control target key end

     0   :  { %s4497_s1 = inlined_call_operand.vmem [shape: bf16[128,384], index: 1, kind: input, shape index: {}]   ;;  %s4498_s3 = inlined_call_operand.vmem [shape: f32[8,128], index: 3, kind: input, shape index: {}]   ;;  %s4499_s2 = inlined_call_operand.vmem [shape: f32[1,128], index: 2, kind: input, shape index: {}]   ;;  %s4500_s0 = inlined_call_operand.vmem [shape: bf16[8,8,384], index: 0, kind: input, shape index: {}]   ;;  %s4501_s4 = inlined_call_operand.vmem [shape: bf16[8,8,128], index: 4, kind: output, shape index: {}]  }
   0x1   :  { %v2182_v0 = vld [vmem:[%s4497_s1 + $0xa8] sm:$0xf]  ;;  %v2923_v1 = vld [vmem:[%s4497_s1 + $0xb0] sm:$0xf0]  ;;  %v2922_v2 = vld [vmem:[%s4497_s1 + $0xac] sm:$0xf] }
   0x2   :  { %v2183_v3 = vor.u32 %v2923_v1, %v2182_v0  ;;  %v2184_v4 = vld [vmem:[%s4497_s1 + $0xb4] sm:$0xf0]  ;;  %v2170_v5 = vld [vmem:[%s4497_s1 + $0x90] sm:$0xf]  ;;  %v2920_v6 = vld [vmem:[%s4497_s1 + $0x98] sm:$0xf0] }
   0x3   :  { %v2187_v7 = vor.u32 %v2922_v2, %v2184_v4  ;;  %v2919_v8 = vld [vmem:[%s4497_s1 + $0x94] sm:$0xf]  ;;  %v2172_v9 = vld [vmem:[%s4497_s1 + $0x9c] sm:$0xf0]  ;;  %v2171_v10 = vor.u32 %v2920_v6, %v2170_v5  ;;  %v2158_v12 = vld [vmem:[%s4497_s1 + $0x78] sm:$0xf] }
   0x4   :  { %191 = vmatpush.bf16.msra.mxu0 %v2183_v3  ;;  %v2175_v11 = vor.u32 %v2919_v8, %v2172_v9  ;;  %v2917_v13 = vld [vmem:[%s4497_s1 + $0x80] sm:$0xf0]  ;;  %v2916_v14 = vld [vmem:[%s4497_s1 + $0x7c] sm:$0xf]  ;;  %v2160_v15 = vld [vmem:[%s4497_s1 + $0x84] sm:$0xf0] }
   0x5   :  { %204 = vmatpush.bf16.msra.mxu1 %v2187_v7  ;;  %v2190_v16 = vld [vmem:[%s4497_s1 + $0xb0] sm:$0xf]  ;;  %v2924_v17 = vld [vmem:[%s4497_s1 + $0xb8] sm:$0xf0]  ;;  %v2159_v19 = vor.u32 %v2917_v13, %v2158_v12  ;;  %v2178_v20 = vld [vmem:[%s4497_s1 + $0x98] sm:$0xf]  ;;  %v2163_v22 = vor.u32 %v2916_v14, %v2160_v15 }
   0x6   :  { %v2191_v18 = vor.u32 %v2924_v17, %v2190_v16  ;;  %v2921_v21 = vld [vmem:[%s4497_s1 + $0xa0] sm:$0xf0]  ;;  %v2146_v23 = vld [vmem:[%s4497_s1 + $0x60] sm:$0xf]  ;;  %v2914_v24 = vld [vmem:[%s4497_s1 + $0x68] sm:$0xf0] }
   0x7   :  { %v2913_v25 = vld [vmem:[%s4497_s1 + $0x64] sm:$0xf]  ;;  %v2179_v26 = vor.u32 %v2921_v21, %v2178_v20  ;;  %v2148_v27 = vld [vmem:[%s4497_s1 + $0x6c] sm:$0xf0]  ;;  %v2166_v28 = vld [vmem:[%s4497_s1 + $0x80] sm:$0xf]  ;;  %v2147_v30 = vor.u32 %v2914_v24, %v2146_v23 }
   0x8   :  { %192 = vmatpush.bf16.msra.mxu0 %v2171_v10  ;;  %217 = vmatpush.bf16.msra.mxu2 %v2191_v18  ;;  %v2918_v29 = vld [vmem:[%s4497_s1 + $0x88] sm:$0xf0]  ;;  %v2151_v31 = vor.u32 %v2913_v25, %v2148_v27  ;;  %v2134_v32 = vld [vmem:[%s4497_s1 + $0x48] sm:$0xf]  ;;  %v2911_v33 = vld [vmem:[%s4497_s1 + $0x50] sm:$0xf0] }
   0x9   :  { %205 = vmatpush.bf16.msra.mxu1 %v2175_v11  ;;  %v2910_v34 = vld [vmem:[%s4497_s1 + $0x4c] sm:$0xf]  ;;  %v2167_v35 = vor.u32 %v2918_v29, %v2166_v28  ;;  %v2136_v36 = vld [vmem:[%s4497_s1 + $0x54] sm:$0xf0]  ;;  %v2154_v37 = vld [vmem:[%s4497_s1 + $0x68] sm:$0xf]  ;;  %v2135_v39 = vor.u32 %v2911_v33, %v2134_v32 }
   0xa   :  { %v2915_v38 = vld [vmem:[%s4497_s1 + $0x70] sm:$0xf0]  ;;  %v2139_v40 = vor.u32 %v2910_v34, %v2136_v36  ;;  %v2122_v41 = vld [vmem:[%s4497_s1 + $0x30] sm:$0xf]  ;;  %v2908_v42 = vld [vmem:[%s4497_s1 + $0x38] sm:$0xf0] }
   0xb   :  { %v2907_v43 = vld [vmem:[%s4497_s1 + $0x34] sm:$0xf]  ;;  %v2155_v44 = vor.u32 %v2915_v38, %v2154_v37  ;;  %v2124_v45 = vld [vmem:[%s4497_s1 + $0x3c] sm:$0xf0]  ;;  %v2142_v46 = vld [vmem:[%s4497_s1 + $0x50] sm:$0xf]  ;;  %v2123_v48 = vor.u32 %v2908_v42, %v2122_v41 }
   0xc   :  { %193 = vmatpush.bf16.msra.mxu0 %v2159_v19  ;;  %218 = vmatpush.bf16.msra.mxu2 %v2179_v26  ;;  %v2912_v47 = vld [vmem:[%s4497_s1 + $0x58] sm:$0xf0]  ;;  %v2127_v49 = vor.u32 %v2907_v43, %v2124_v45  ;;  %v2110_v50 = vld [vmem:[%s4497_s1 + $0x18] sm:$0xf]  ;;  %v2905_v51 = vld [vmem:[%s4497_s1 + $0x20] sm:$0xf0] }
   0xd   :  { %206 = vmatpush.bf16.msra.mxu1 %v2163_v22  ;;  %v2904_v52 = vld [vmem:[%s4497_s1 + $0x1c] sm:$0xf]  ;;  %v2143_v53 = vor.u32 %v2912_v47, %v2142_v46  ;;  %v2112_v54 = vld [vmem:[%s4497_s1 + $0x24] sm:$0xf0]  ;;  %v2130_v55 = vld [vmem:[%s4497_s1 + $0x38] sm:$0xf]  ;;  %v2111_v57 = vor.u32 %v2905_v51, %v2110_v50 }
   0xe   :  { %v2909_v56 = vld [vmem:[%s4497_s1 + $0x40] sm:$0xf0]  ;;  %v2115_v58 = vor.u32 %v2904_v52, %v2112_v54  ;;  %v2098_v59 = vld [vmem:[%s4497_s1] sm:$0xf]  ;;  %v2902_v60 = vld [vmem:[%s4497_s1 + $0x8] sm:$0xf0] }
   0xf   :  { %v2901_v61 = vld [vmem:[%s4497_s1 + $0x4] sm:$0xf]  ;;  %v2131_v62 = vor.u32 %v2909_v56, %v2130_v55  ;;  %v2100_v63 = vld [vmem:[%s4497_s1 + $0xc] sm:$0xf0]  ;;  %v2118_v0 = vld [vmem:[%s4497_s1 + $0x20] sm:$0xf]  ;;  %v2099_v2 = vor.u32 %v2902_v60, %v2098_v59 }
  0x10   :  { %194 = vmatpush.bf16.msra.mxu0 %v2147_v30  ;;  %219 = vmatpush.bf16.msra.mxu2 %v2167_v35  ;;  %v2906_v1 = vld [vmem:[%s4497_s1 + $0x28] sm:$0xf0]  ;;  %v3341_v3 = vld [vmem:[%s4498_s3] sm:$0xff]  ;;  %v2103_v4 = vor.u32 %v2901_v61, %v2100_v63  ;;  %v2106_v6 = vld [vmem:[%s4497_s1 + $0x8] sm:$0xf] }
  0x11   :  { %207 = vmatpush.bf16.msra.mxu1 %v2151_v31  ;;  %v2119_v5 = vor.u32 %v2906_v1, %v2118_v0  ;;  %v2903_v7 = vld [vmem:[%s4497_s1 + $0x10] sm:$0xf0]  ;;  %v30_v8 = vpack.c.bf16 %v3341_v3, %v3341_v3  ;;  %v2282_v10 = vld [vmem:[%s4497_s1 + $0xa8] sm:$0xf]  ;;  %v2946_v12 = vld [vmem:[%s4497_s1 + $0xac] sm:$0xf] }
  0x12   :  { %v2107_v9 = vor.u32 %v2903_v7, %v2106_v6  ;;  %v2947_v11 = vld [vmem:[%s4497_s1 + $0xb0] sm:$0xf0]  ;;  %v2284_v14 = vld [vmem:[%s4497_s1 + $0xb4] sm:$0xf0]  ;;  %v2290_v15 = vld [vmem:[%s4497_s1 + $0xb0] sm:$0xf] }
  0x13   :  { %v2283_v13 = vor.u32 %v2947_v11, %v2282_v10  ;;  %v2948_v16 = vld [vmem:[%s4497_s1 + $0xb8] sm:$0xf0]  ;;  %v2287_v17 = vor.u32 %v2946_v12, %v2284_v14  ;;  %v2270_v19 = vld [vmem:[%s4497_s1 + $0x90] sm:$0xf]  ;;  %v2943_v21 = vld [vmem:[%s4497_s1 + $0x94] sm:$0xf] }
  0x14   :  { %195 = vmatpush.bf16.msra.mxu0 %v2135_v39  ;;  %220 = vmatpush.bf16.msra.mxu2 %v2155_v44  ;;  %v2291_v18 = vor.u32 %v2948_v16, %v2290_v15  ;;  %v2944_v20 = vld [vmem:[%s4497_s1 + $0x98] sm:$0xf0]  ;;  %v2272_v23 = vld [vmem:[%s4497_s1 + $0x9c] sm:$0xf0]  ;;  %v2278_v24 = vld [vmem:[%s4497_s1 + $0x98] sm:$0xf] }
  0x15   :  { %208 = vmatpush.bf16.msra.mxu1 %v2139_v40  ;;  %448 = vmatpush.bf16.msra.mxu3 %v2283_v13  ;;  %v2271_v22 = vor.u32 %v2944_v20, %v2270_v19  ;;  %v2945_v25 = vld [vmem:[%s4497_s1 + $0xa0] sm:$0xf0]  ;;  %v2275_v27 = vor.u32 %v2943_v21, %v2272_v23  ;;  %v2258_v29 = vld [vmem:[%s4497_s1 + $0x78] sm:$0xf]  ;;  %v2940_v31 = vld [vmem:[%s4497_s1 + $0x7c] sm:$0xf] }
  0x16   :  { %v28_v26 = vld [vmem:[%s4500_s0] sm:$0xff]  ;;  %v2279_v28 = vor.u32 %v2945_v25, %v2278_v24  ;;  %v2260_v34 = vld [vmem:[%s4497_s1 + $0x84] sm:$0xf0]  ;;  %v2942_v37 = vld [vmem:[%s4497_s1 + $0x88] sm:$0xf0] }
  0x17   :  { %v2941_v30 = vld [vmem:[%s4497_s1 + $0x80] sm:$0xf0]  ;;  %v232_v32 = vrot.slane %v28_v26, 4  ;;  %v2263_v35 = vor.u32 %v2940_v31, %v2260_v34  ;;  %v2266_v36 = vld [vmem:[%s4497_s1 + $0x80] sm:$0xf]  ;;  %v230_v39 = vunpack.c.l.bf16 %v28_v26 }
  0x18   :  { %196 = vmatpush.bf16.msra.mxu0 %v2123_v48  ;;  %221 = vmatpush.bf16.msra.mxu2 %v2143_v53  ;;  %v2259_v33 = vor.u32 %v2941_v30, %v2258_v29  ;;  %v2267_v38 = vor.u32 %v2942_v37, %v2266_v36  ;;  %v2246_v40 = vld [vmem:[%s4497_s1 + $0x60] sm:$0xf]  ;;  %v2938_v41 = vld [vmem:[%s4497_s1 + $0x68] sm:$0xf0]  ;;  %v2937_v42 = vld [vmem:[%s4497_s1 + $0x64] sm:$0xf] }
  0x19   :  { %209 = vmatpush.bf16.msra.mxu1 %v2127_v49  ;;  %449 = vmatpush.bf16.msra.mxu3 %v2271_v22  ;;  %v234_v43 = vunpack.c.l.bf16 %v232_v32  ;;  %v2247_v44 = vor.u32 %v2938_v41, %v2246_v40  ;;  %v2248_v45 = vld [vmem:[%s4497_s1 + $0x6c] sm:$0xf0]  ;;  %v2254_v46 = vld [vmem:[%s4497_s1 + $0x68] sm:$0xf]  ;;  %v2939_v47 = vld [vmem:[%s4497_s1 + $0x70] sm:$0xf0] }
  0x1a   :  { %v2251_v48 = vor.u32 %v2937_v42, %v2248_v45  ;;  %v2255_v49 = vor.u32 %v2939_v47, %v2254_v46  ;;  %v2234_v53 = vld [vmem:[%s4497_s1 + $0x48] sm:$0xf]  ;;  %v2935_v54 = vld [vmem:[%s4497_s1 + $0x50] sm:$0xf0]  ;;  %v2934_v55 = vld [vmem:[%s4497_s1 + $0x4c] sm:$0xf] }
  0x1b   :  { %v2242_v59 = vld [vmem:[%s4497_s1 + $0x50] sm:$0xf]  ;;  %v2936_v60 = vld [vmem:[%s4497_s1 + $0x58] sm:$0xf0]  ;;  %v2224_v6 = vld [vmem:[%s4497_s1 + $0x3c] sm:$0xf0] }
  0x1c   :  { %197 = vmatpush.bf16.msra.mxu0 %v2111_v57  ;;  %222 = vmatpush.bf16.msra.mxu2 %v2131_v62  ;;  %v2235_v57 = vor.u32 %v2935_v54, %v2234_v53  ;;  %v2243_v63 = vor.u32 %v2936_v60, %v2242_v59  ;;  %v2222_v1 = vld [vmem:[%s4497_s1 + $0x30] sm:$0xf]  ;;  %v2230_v7 = vld [vmem:[%s4497_s1 + $0x38] sm:$0xf]  ;;  %v2929_v14 = vld [vmem:[%s4497_s1 + $0x20] sm:$0xf0] }
  0x1d   :  { %210 = vmatpush.bf16.msra.mxu1 %v2115_v58  ;;  %450 = vmatpush.bf16.msra.mxu3 %v2259_v33  ;;  %v2236_v58 = vld [vmem:[%s4497_s1 + $0x54] sm:$0xf0]  ;;  %v2928_v15 = vld [vmem:[%s4497_s1 + $0x1c] sm:$0xf]  ;;  %v2930_v19 = vld [vmem:[%s4497_s1 + $0x28] sm:$0xf0] }
  0x1e   :  { %v2239_v62 = vor.u32 %v2934_v55, %v2236_v58  ;;  %v2210_v13 = vld [vmem:[%s4497_s1 + $0x18] sm:$0xf]  ;;  %v2198_v24 = vld [vmem:[%s4497_s1] sm:$0xf]  ;;  %v2926_v25 = vld [vmem:[%s4497_s1 + $0x8] sm:$0xf0] }
  0x1f   :  { %v2211_v16 = vor.u32 %v2929_v14, %v2210_v13  ;;  %v2925_v26 = vld [vmem:[%s4497_s1 + $0x4] sm:$0xf]  ;;  %v2199_v29 = vor.u32 %v2926_v25, %v2198_v24  ;;  %v2200_v30 = vld [vmem:[%s4497_s1 + $0xc] sm:$0xf0]  ;;  %v2206_v31 = vld [vmem:[%s4497_s1 + $0x8] sm:$0xf] }
  0x20   :  { %198 = vmatpush.bf16.msra.mxu0 %v2099_v2  ;;  %223 = vmatpush.bf16.msra.mxu2 %v2119_v5  ;;  %v2932_v2 = vld [vmem:[%s4497_s1 + $0x38] sm:$0xf0]  ;;  %v2203_v33 = vor.u32 %v2925_v26, %v2200_v30  ;;  %v2927_v34 = vld [vmem:[%s4497_s1 + $0x10] sm:$0xf0]  ;;  %v3501_v40 = vld [vmem:[%s4499_s2] ss:$0 sm:$0xff] }
  0x21   :  { %211 = vmatpush.bf16.msra.mxu1 %v2103_v4  ;;  %451 = vmatpush.bf16.msra.mxu3 %v2247_v44  ;;  %v2931_v4 = vld [vmem:[%s4497_s1 + $0x34] sm:$0xf]  ;;  %v2223_v5 = vor.u32 %v2932_v2, %v2222_v1  ;;  %v29_v46 = vld [vmem:[%s4500_s0 + $0x8] sm:$0xf]  ;;  %v2359_v25 = vld [vmem:[%s4497_s1 + $0x78] sm:$0xf] }
  0x22   :  { %v2965_v26 = vld [vmem:[%s4497_s1 + $0x80] sm:$0xf0]  ;;  %v2361_v30 = vld [vmem:[%s4497_s1 + $0x84] sm:$0xf0] }
  0x23   :  { %199 = vmatmul.bf16.vlgmr.msra.gmra.mxu0 %v30_v8 }
  0x24   :  { %212 = vmatmul.bf16.vlgmr.msra.gmra.mxu1 %v30_v8  ;;  %224 = vmatpush.bf16.msra.mxu2 %v2107_v9  ;;  %v2227_v9 = vor.u32 %v2931_v4, %v2224_v6  ;;  %v2971_v6 = vld [vmem:[%s4497_s1 + $0xb0] sm:$0xf0] }
  0x25   :  { %461 = vmatpush.bf16.msrb.mxu0 %v2287_v17  ;;  %474 = vmatpush.bf16.msrb.mxu1 %v2291_v18  ;;  %v2212_v17 = vld [vmem:[%s4497_s1 + $0x24] sm:$0xf0]  ;;  %v2218_v18 = vld [vmem:[%s4497_s1 + $0x20] sm:$0xf] }
  0x26   :  { %452 = vmatpush.bf16.msra.mxu3 %v2235_v57  ;;  %v2215_v22 = vor.u32 %v2928_v15, %v2212_v17  ;;  %v2219_v23 = vor.u32 %v2930_v19, %v2218_v18  ;;  %v2371_v15 = vld [vmem:[%s4497_s1 + $0x90] sm:$0xf]  ;;  %v2967_v17 = vld [vmem:[%s4497_s1 + $0x94] sm:$0xf]  ;;  %v2373_v19 = vld [vmem:[%s4497_s1 + $0x9c] sm:$0xf0] }
  0x27   :  { %225 = vmatmul.bf16.vlgmr.msra.gmra.mxu2 %v30_v8  ;;  %v2933_v8 = vld [vmem:[%s4497_s1 + $0x40] sm:$0xf0] }
  0x28   :  { %v2231_v10 = vor.u32 %v2933_v8, %v2230_v7  ;;  %v2970_v7 = vld [vmem:[%s4497_s1 + $0xac] sm:$0xf] }
  0x29   :  { %462 = vmatpush.bf16.msrb.mxu0 %v2275_v27  ;;  %475 = vmatpush.bf16.msrb.mxu1 %v2279_v28 }
  0x2a   :  { %453 = vmatpush.bf16.msra.mxu3 %v2223_v5  ;;  %v2194_v5 = vld [vmem:[%s4500_s0 + $0xc] sm:$0xff] }
  0x2d   :  { %463 = vmatpush.bf16.msrb.mxu0 %v2263_v35  ;;  %476 = vmatpush.bf16.msrb.mxu1 %v2267_v38  ;;  %v2207_v35 = vor.u32 %v2927_v34, %v2206_v31  ;;  %v2367_v31 = vld [vmem:[%s4497_s1 + $0x80] sm:$0xf] }
  0x2e   :  { %454 = vmatpush.bf16.msra.mxu3 %v2211_v16  ;;  %v2968_v16 = vld [vmem:[%s4497_s1 + $0x98] sm:$0xf0] }
  0x2f   :  { %v2372_v18 = vor.u32 %v2968_v16, %v2371_v15 }
  0x31   :  { %464 = vmatpush.bf16.msrb.mxu0 %v2251_v48  ;;  %477 = vmatpush.bf16.msrb.mxu1 %v2255_v49 }
  0x32   :  { %455 = vmatpush.bf16.msra.mxu3 %v2199_v29  ;;  %v2360_v29 = vor.u32 %v2965_v26, %v2359_v25  ;;  %v2307_v26 = vld [vmem:[%s4497_s1 + $0x8] sm:$0xf] }
  0x35   :  { %465 = vmatpush.bf16.msrb.mxu0 %v2239_v62  ;;  %478 = vmatpush.bf16.msrb.mxu1 %v2243_v63 }
  0x39   :  { %466 = vmatpush.bf16.msrb.mxu0 %v2227_v9  ;;  %479 = vmatpush.bf16.msrb.mxu1 %v2231_v10  ;;  %v2385_v9 = vld [vmem:[%s4497_s1 + $0xb4] sm:$0xf0]  ;;  %v2391_v10 = vld [vmem:[%s4497_s1 + $0xb0] sm:$0xf] }
  0x3a   :  { %v2388_v13 = vor.u32 %v2970_v7, %v2385_v9  ;;  %v2953_v9 = vld [vmem:[%s4497_s1 + $0x20] sm:$0xf0] }
  0x3c   :  { %719 = vmatpush.bf16.msrb.mxu3 %v2388_v13  ;;  %v2319_v13 = vld [vmem:[%s4497_s1 + $0x20] sm:$0xf] }
  0x3d   :  { %467 = vmatpush.bf16.msrb.mxu0 %v2215_v22  ;;  %480 = vmatpush.bf16.msrb.mxu1 %v2219_v23  ;;  %v2376_v23 = vor.u32 %v2967_v17, %v2373_v19  ;;  %v2299_v19 = vld [vmem:[%s4497_s1] sm:$0xf] }
  0x40   :  { %720 = vmatpush.bf16.msrb.mxu3 %v2376_v23  ;;  %v2301_v23 = vld [vmem:[%s4497_s1 + $0xc] sm:$0xf0] }
  0x41   :  { %468 = vmatpush.bf16.msrb.mxu0 %v2203_v33  ;;  %481 = vmatpush.bf16.msrb.mxu1 %v2207_v35 }
  0xa0   :  { %v200_v50 = vpop.f32.mrf.mxu0 }
  0xa1   :  { %v237_v51 = vadd.f32 %v230_v39, %v200_v50  ;;  %v213_v52 = vpop.f32.mrf.mxu1 }
  0xa2   :  { %v257_v56 = vadd.f32 %v234_v43, %v213_v52 }
  0xa3   :  { %v2192_v61 = vmul.f32 -1.442695, %v237_v51  ;;  %v235_v51 = vunpack.c.l.bf16 %v29_v46 }
  0xa4   :  { %v2193_v0 = vmul.f32 -1.442695, %v257_v56 }
  0xa5   :  { %3094 = vpow2.f32 %v2192_v61 }
  0xa6   :  { %3096 = vpow2.f32 %v2193_v0 }
  0xa8   :  { %v202_v11 = vpop.f32.mrf.mxu0 }
  0xa9   :  { %v215_v12 = vpop.f32.mrf.mxu1  ;;  %v2972_v11 = vld [vmem:[%s4497_s1 + $0xb8] sm:$0xf0] }
  0xaa   :  { %v226_v21 = vpop.f32.mrf.mxu2  ;;  %v489_v12 = vrot.slane %v2194_v5, 4  ;;  %v2392_v14 = vor.u32 %v2972_v11, %v2391_v10  ;;  %v2952_v11 = vld [vmem:[%s4497_s1 + $0x1c] sm:$0xf] }
  0xab   :  { %v3095_v20 = vpop.eup %3094  ;;  %v236_v47 = vadd.f32 %v3501_v40, %v226_v21  ;;  %v2969_v21 = vld [vmem:[%s4497_s1 + $0xa0] sm:$0xf0] }
  0xac   :  { %v3097_v27 = vpop.eup %3096  ;;  %v241_v28 = vadd.f32 1.0, %v3095_v20  ;;  %732 = vmatpush.bf16.msra.mxu0 %v2392_v14  ;;  %v2379_v20 = vld [vmem:[%s4497_s1 + $0x98] sm:$0xf]  ;;  %v491_v22 = vunpack.c.l.bf16 %v489_v12  ;;  %v2313_v12 = vld [vmem:[%s4497_s1 + $0x24] sm:$0xf0] }
  0xad   :  { %v261_v32 = vadd.f32 1.0, %v3097_v27  ;;  %v2380_v24 = vor.u32 %v2969_v21, %v2379_v20  ;;  %v2964_v27 = vld [vmem:[%s4497_s1 + $0x7c] sm:$0xf]  ;;  %v2954_v14 = vld [vmem:[%s4497_s1 + $0x28] sm:$0xf0] }
  0xae   :  { %3098 = vrcp.f32 %v241_v28  ;;  %v253_v43 = vand.u32 2147483648, %v241_v28  ;;  %v251_v45 = vand.u32 2147483647, %v241_v28  ;;  %vm247_vm1 = vweird.f32 %v241_v28  ;;  %v2950_v20 = vld [vmem:[%s4497_s1 + $0x8] sm:$0xf0] }
  0xaf   :  { %3100 = vrcp.f32 %v261_v32  ;;  %vm267_vm4 = vweird.f32 %v261_v32  ;;  %v273_v57 = vand.u32 2147483648, %v261_v32  ;;  %v271_v59 = vand.u32 2147483647, %v261_v32 }
  0xb0   :  { %v254_v50 = vor.u32 1.1754944e-38, %v253_v43  ;;  %vm252_vm3 = vcmp.eq.f32.partialorder %v251_v45, 8.507059e+37  ;;  %733 = vmatpush.bf16.msra.mxu0 %v2380_v24  ;;  %v2364_v35 = vor.u32 %v2964_v27, %v2361_v30  ;;  %v2961_v43 = vld [vmem:[%s4497_s1 + $0x64] sm:$0xf]  ;;  %v2355_v45 = vld [vmem:[%s4497_s1 + $0x68] sm:$0xf]  ;;  %v2320_v21 = vor.u32 %v2954_v14, %v2319_v13 }
  0xb1   :  { %v274_v60 = vor.u32 1.1754944e-38, %v273_v57  ;;  %vm272_vm7 = vcmp.eq.f32.partialorder %v271_v59, 8.507059e+37  ;;  %v2323_v59 = vld [vmem:[%s4497_s1 + $0x30] sm:$0xf]  ;;  %v2951_v27 = vld [vmem:[%s4497_s1 + $0x10] sm:$0xf0] }
  0xb2   :  { %v228_v36 = vpop.f32.mrf.mxu2  ;;  %721 = vmatpush.bf16.msrb.mxu3 %v2364_v35  ;;  %v2474_v13 = vld [vmem:[%s4497_s1 + $0x9c] sm:$0xf0]  ;;  %v2480_v14 = vld [vmem:[%s4497_s1 + $0x98] sm:$0xf] }
  0xb4   :  { %v3099_v37 = vpop.eup %3098 }
  0xb5   :  { %v3101_v38 = vpop.eup %3100  ;;  %v243_v39 = vmul.f32 %v3099_v37, %v241_v28  ;;  %vm248_vm0 = vweird.f32 %v3099_v37 }
  0xb6   :  { %v263_v42 = vmul.f32 %v3101_v38, %v261_v32  ;;  %vm249_vm2 = vmor %vm247_vm1, %vm248_vm0  ;;  %vm268_vm5 = vweird.f32 %v3101_v38  ;;  %v2966_v32 = vld [vmem:[%s4497_s1 + $0x88] sm:$0xf0] }
  0xb7   :  { %v244_v41 = vsub.f32 1.0, %v243_v39  ;;  %vm269_vm6 = vmor %vm267_vm4, %vm268_vm5  ;;  %v2368_v36 = vor.u32 %v2966_v32, %v2367_v31  ;;  %v2347_v39 = vld [vmem:[%s4497_s1 + $0x60] sm:$0xf]  ;;  %v2308_v31 = vor.u32 %v2951_v27, %v2307_v26 }
  0xb8   :  { %v264_v49 = vsub.f32 1.0, %v263_v42 }
  0xb9   :  { %v245_v44 = vmul.f32 %v3099_v37, %v244_v41  ;;  %734 = vmatpush.bf16.msra.mxu0 %v2368_v36  ;;  %v2962_v41 = vld [vmem:[%s4497_s1 + $0x68] sm:$0xf0] }
  0xba   :  { %v265_v55 = vmul.f32 %v3101_v38, %v264_v49  ;;  %v2348_v42 = vor.u32 %v2962_v41, %v2347_v39  ;;  %v2959_v49 = vld [vmem:[%s4497_s1 + $0x50] sm:$0xf0] }
  0xbb   :  { %v246_v48 = vadd.f32 %v3099_v37, %v245_v44  ;;  %v2349_v44 = vld [vmem:[%s4497_s1 + $0x6c] sm:$0xf0] }
  0xbc   :  { %v266_v58 = vadd.f32 %v3101_v38, %v265_v55  ;;  %v2352_v46 = vor.u32 %v2961_v43, %v2349_v44  ;;  %v2343_v55 = vld [vmem:[%s4497_s1 + $0x50] sm:$0xf] }
  0xbd   :  { %v250_v52 = vsel %vm249_vm2, %v3099_v37, %v246_v48  ;;  %v2335_v48 = vld [vmem:[%s4497_s1 + $0x48] sm:$0xf] }
  0xbe   :  { %v255_v53 = vsel %vm252_vm3, %v254_v50, %v250_v52  ;;  %v270_v61 = vsel %vm269_vm6, %v3101_v38, %v266_v58  ;;  %v487_v38 = vunpack.c.l.bf16 %v2194_v5  ;;  %v2336_v52 = vor.u32 %v2959_v49, %v2335_v48  ;;  %722 = vmatpush.bf16.msrb.mxu3 %v2352_v46  ;;  %v2960_v58 = vld [vmem:[%s4497_s1 + $0x58] sm:$0xf0]  ;;  %v2331_v5 = vld [vmem:[%s4497_s1 + $0x38] sm:$0xf] }
  0xbf   :  { %v277_v54 = vmul.f32 %v255_v53, %v236_v47  ;;  %v275_v0 = vsel %vm272_vm7, %v274_v60, %v270_v61  ;;  %v2963_v47 = vld [vmem:[%s4497_s1 + $0x70] sm:$0xf0]  ;;  %v2958_v53 = vld [vmem:[%s4497_s1 + $0x4c] sm:$0xf]  ;;  %v2956_v60 = vld [vmem:[%s4497_s1 + $0x38] sm:$0xf0] }
  0xc1   :  { %v278_v56 = vadd.f32 %v277_v54, %v235_v51  ;;  %v2356_v51 = vor.u32 %v2963_v47, %v2355_v45  ;;  %v2337_v54 = vld [vmem:[%s4497_s1 + $0x54] sm:$0xf0] }
  0xc2   :  { %v2340_v57 = vor.u32 %v2958_v53, %v2337_v54 }
  0xc3   :  { %3102 = vtanh.f32 %v278_v56  ;;  %735 = vmatpush.bf16.msra.mxu0 %v2356_v51 }
  0xc4   :  { %723 = vmatpush.bf16.msrb.mxu3 %v2340_v57 }
  0xc9   :  { %v3103_v62 = vpop.eup %3102 }
  0xca   :  { %v280_v63 = vsub.f32 %v3341_v3, %v3103_v62  ;;  %v2383_v3 = vld [vmem:[%s4497_s1 + $0xa8] sm:$0xf] }
  0xcb   :  { %v2384_v8 = vor.u32 %v2971_v6, %v2383_v3  ;;  %v2957_v3 = vld [vmem:[%s4497_s1 + $0x40] sm:$0xf0]  ;;  %v2324_v6 = vor.u32 %v2956_v60, %v2323_v59 }
  0xcc   :  { %v281_v1 = vmul.f32 %v280_v63, %v275_v0  ;;  %v2955_v63 = vld [vmem:[%s4497_s1 + $0x34] sm:$0xf]  ;;  %v2325_v0 = vld [vmem:[%s4497_s1 + $0x3c] sm:$0xf0]  ;;  %v2332_v10 = vor.u32 %v2957_v3, %v2331_v5  ;;  %v2492_v5 = vld [vmem:[%s4497_s1 + $0xb0] sm:$0xf] }
  0xcd   :  { %706 = vmatpush.bf16.msrb.mxu2 %v2384_v8  ;;  %v2328_v7 = vor.u32 %v2955_v63, %v2325_v0  ;;  %v2311_v8 = vld [vmem:[%s4497_s1 + $0x18] sm:$0xf]  ;;  %v2484_v63 = vld [vmem:[%s4497_s1 + $0xa8] sm:$0xf]  ;;  %v2994_v0 = vld [vmem:[%s4497_s1 + $0xac] sm:$0xf] }
  0xce   :  { %v3508_v2 = vadd.f32 %v3103_v62, %v281_v1  ;;  %v2344_v62 = vor.u32 %v2960_v58, %v2343_v55  ;;  %v2312_v17 = vor.u32 %v2953_v9, %v2311_v8  ;;  %v2996_v3 = vld [vmem:[%s4497_s1 + $0xb8] sm:$0xf0]  ;;  %v2472_v9 = vld [vmem:[%s4497_s1 + $0x90] sm:$0xf] }
  0xcf   :  { %724 = vmatpush.bf16.msrb.mxu3 %v2328_v7  ;;  %v2493_v7 = vor.u32 %v2996_v3, %v2492_v5  ;;  %v2295_v8 = vld [vmem:[%s4500_s0 + $0x18] sm:$0xff]  ;;  %v2977_v5 = vld [vmem:[%s4497_s1 + $0x20] sm:$0xf0] }
  0xd0   :  { %v283_v4 = vpack.c.bf16 %v3508_v2, %v3508_v2  ;;  %736 = vmatpush.bf16.msra.mxu0 %v2344_v62  ;;  %v2976_v3 = vld [vmem:[%s4497_s1 + $0x1c] sm:$0xf] }
  0xd1   :  { %707 = vmatpush.bf16.msrb.mxu2 %v2372_v18  ;;  %v2316_v18 = vor.u32 %v2952_v11, %v2313_v12  ;;  %v2991_v11 = vld [vmem:[%s4497_s1 + $0x94] sm:$0xf] }
  0xd2   :  { %284 = vst [vmem:[%s4501_s4] sm:$0xf] %v283_v4  ;;  %456 = vmatmul.bf16.vlgmr.msra.gmra.mxu3 %v283_v4  ;;  %469 = vmatmul.bf16.vlgmr.msrb.gmra.mxu0 %v283_v4 }
  0xd3   :  { %482 = vmatmul.bf16.vlgmr.msrb.gmra.mxu1 %v283_v4  ;;  %725 = vmatpush.bf16.msrb.mxu3 %v2316_v18  ;;  %v747_v18 = vrot.slane %v2295_v8, 4 }
  0xd4   :  { %737 = vmatpush.bf16.msra.mxu0 %v2332_v10  ;;  %v2992_v10 = vld [vmem:[%s4497_s1 + $0x98] sm:$0xf0] }
  0xd5   :  { %708 = vmatpush.bf16.msrb.mxu2 %v2360_v29  ;;  %v2300_v29 = vor.u32 %v2950_v20, %v2299_v19  ;;  %v2473_v12 = vor.u32 %v2992_v10, %v2472_v9  ;;  %v2460_v19 = vld [vmem:[%s4497_s1 + $0x78] sm:$0xf]  ;;  %v2989_v20 = vld [vmem:[%s4497_s1 + $0x80] sm:$0xf0] }
  0xd8   :  { %738 = vmatpush.bf16.msra.mxu0 %v2320_v21  ;;  %v2988_v21 = vld [vmem:[%s4497_s1 + $0x7c] sm:$0xf] }
  0xd9   :  { %709 = vmatpush.bf16.msrb.mxu2 %v2348_v42  ;;  %v2195_v42 = vld [vmem:[%s4500_s0 + $0x14] sm:$0xf] }
  0xda   :  { %v492_v48 = vunpack.c.l.bf16 %v2195_v42  ;;  %v2436_v42 = vld [vmem:[%s4497_s1 + $0x48] sm:$0xf] }
  0xdc   :  { %739 = vmatpush.bf16.msra.mxu0 %v2308_v31  ;;  %v2448_v31 = vld [vmem:[%s4497_s1 + $0x60] sm:$0xf] }
  0xdd   :  { %710 = vmatpush.bf16.msrb.mxu2 %v2336_v52 }
  0xe1   :  { %711 = vmatpush.bf16.msrb.mxu2 %v2324_v6 }
  0xe5   :  { %712 = vmatpush.bf16.msrb.mxu2 %v2312_v17 }
  0xe9   :  { %713 = vmatpush.bf16.msrb.mxu2 %v2300_v29  ;;  %v745_v29 = vunpack.c.l.bf16 %v2295_v8  ;;  %v2978_v8 = vld [vmem:[%s4497_s1 + $0x28] sm:$0xf0] }
 0x14f   :  { %v470_v28 = vpop.f32.mrf.mxu0 }
 0x150   :  { %v514_v33 = vadd.f32 %v491_v22, %v470_v28  ;;  %v3572_v34 = vpop.f32.mrf.mxu1  ;;  %v2949_v22 = vld [vmem:[%s4497_s1 + $0x4] sm:$0xf] }
 0x151   :  { %v2304_v30 = vor.u32 %v2949_v22, %v2301_v23  ;;  %v493_v46 = vadd.f32 %v3501_v40, %v3572_v34  ;;  %v2461_v22 = vor.u32 %v2989_v20, %v2460_v19  ;;  %v2462_v23 = vld [vmem:[%s4497_s1 + $0x84] sm:$0xf0]  ;;  %v2975_v19 = vld [vmem:[%s4497_s1 + $0x10] sm:$0xf0] }
 0x152   :  { %v2293_v37 = vmul.f32 -1.442695, %v514_v33  ;;  %v2465_v27 = vor.u32 %v2988_v21, %v2462_v23 }
 0x153   :  { %726 = vmatpush.bf16.msrb.mxu3 %v2304_v30  ;;  %v749_v30 = vunpack.c.l.bf16 %v747_v18  ;;  %v2408_v18 = vld [vmem:[%s4497_s1 + $0x8] sm:$0xf] }
 0x154   :  { %3104 = vpow2.f32 %v2293_v37 }
 0x155   :  { %v457_v50 = vpop.f32.mrf.mxu3 }
 0x156   :  { %v494_v56 = vadd.f32 %v487_v38, %v457_v50 }
 0x157   :  { %v472_v61 = vpop.f32.mrf.mxu0  ;;  %990 = vmatpush.bf16.msra.mxu3 %v2493_v7  ;;  %v2420_v7 = vld [vmem:[%s4497_s1 + $0x20] sm:$0xf] }
 0x158   :  { %v2292_v1 = vmul.f32 -1.442695, %v494_v56  ;;  %v485_v4 = vpop.f32.mrf.mxu1 }
 0x159   :  { %v2486_v4 = vld [vmem:[%s4497_s1 + $0xb4] sm:$0xf0] }
 0x15a   :  { %3106 = vpow2.f32 %v2292_v1  ;;  %v3105_v15 = vpop.eup %3104  ;;  %v2489_v6 = vor.u32 %v2994_v0, %v2486_v4  ;;  %v2412_v4 = vld [vmem:[%s4497_s1 + $0x18] sm:$0xf] }
 0x15b   :  { %v518_v25 = vadd.f32 1.0, %v3105_v15  ;;  %v2993_v15 = vld [vmem:[%s4497_s1 + $0xa0] sm:$0xf0] }
 0x15c   :  { %977 = vmatpush.bf16.msra.mxu2 %v2489_v6  ;;  %v2481_v17 = vor.u32 %v2993_v15, %v2480_v14  ;;  %v2414_v6 = vld [vmem:[%s4497_s1 + $0x24] sm:$0xf0]  ;;  %v2400_v14 = vld [vmem:[%s4497_s1] sm:$0xf]  ;;  %v2974_v15 = vld [vmem:[%s4497_s1 + $0x8] sm:$0xf0] }
 0x15d   :  { %v459_v16 = vpop.f32.mrf.mxu3  ;;  %v530_v54 = vand.u32 2147483648, %v518_v25  ;;  %vm524_vm13 = vweird.f32 %v518_v25  ;;  %v528_v55 = vand.u32 2147483647, %v518_v25  ;;  %v2401_v23 = vor.u32 %v2974_v15, %v2400_v14  ;;  %v3013_v14 = vld [vmem:[%s4497_s1 + $0x80] sm:$0xf0] }
 0x15e   :  { %v2477_v16 = vor.u32 %v2991_v11, %v2474_v13  ;;  %991 = vmatpush.bf16.msra.mxu3 %v2481_v17  ;;  %v2413_v11 = vor.u32 %v2977_v5, %v2412_v4  ;;  %v2421_v13 = vor.u32 %v2978_v8, %v2420_v7  ;;  %v2402_v17 = vld [vmem:[%s4497_s1 + $0xc] sm:$0xf0]  ;;  %v3016_v5 = vld [vmem:[%s4497_s1 + $0x98] sm:$0xf0]  ;;  %v2575_v7 = vld [vmem:[%s4497_s1 + $0x9c] sm:$0xf0] }
 0x15f   :  { %v531_v58 = vor.u32 1.1754944e-38, %v530_v54  ;;  %vm529_vm15 = vcmp.eq.f32.partialorder %v528_v55, 8.507059e+37  ;;  %v2424_v54 = vld [vmem:[%s4497_s1 + $0x30] sm:$0xf]  ;;  %v2980_v55 = vld [vmem:[%s4497_s1 + $0x38] sm:$0xf0] }
 0x160   :  { %v3107_v24 = vpop.eup %3106  ;;  %978 = vmatpush.bf16.msra.mxu2 %v2477_v16  ;;  %v2973_v16 = vld [vmem:[%s4497_s1 + $0x4] sm:$0xf]  ;;  %v2573_v4 = vld [vmem:[%s4497_s1 + $0x90] sm:$0xf]  ;;  %v2581_v8 = vld [vmem:[%s4497_s1 + $0x98] sm:$0xf] }
 0x161   :  { %v498_v28 = vadd.f32 1.0, %v3107_v24  ;;  %v2468_v24 = vld [vmem:[%s4497_s1 + $0x80] sm:$0xf]  ;;  %v3012_v15 = vld [vmem:[%s4497_s1 + $0x7c] sm:$0xf] }
 0x163   :  { %3108 = vrcp.f32 %v498_v28  ;;  %v510_v38 = vand.u32 2147483648, %v498_v28  ;;  %v508_v41 = vand.u32 2147483647, %v498_v28  ;;  %vm504_vm9 = vweird.f32 %v498_v28 }
 0x164   :  { %3110 = vrcp.f32 %v518_v25  ;;  %979 = vmatpush.bf16.msra.mxu2 %v2465_v27  ;;  %v2409_v27 = vor.u32 %v2975_v19, %v2408_v18  ;;  %v2569_v18 = vld [vmem:[%s4497_s1 + $0x80] sm:$0xf]  ;;  %v3014_v19 = vld [vmem:[%s4497_s1 + $0x88] sm:$0xf0] }
 0x165   :  { %v511_v45 = vor.u32 1.1754944e-38, %v510_v38  ;;  %vm509_vm11 = vcmp.eq.f32.partialorder %v508_v41, 8.507059e+37  ;;  %v2987_v38 = vld [vmem:[%s4497_s1 + $0x70] sm:$0xf0] }
 0x169   :  { %v3109_v32 = vpop.eup %3108 }
 0x16a   :  { %v3111_v33 = vpop.eup %3110  ;;  %v500_v35 = vmul.f32 %v3109_v32, %v498_v28  ;;  %vm505_vm8 = vweird.f32 %v3109_v32 }
 0x16b   :  { %v520_v37 = vmul.f32 %v3111_v33, %v518_v25  ;;  %vm506_vm10 = vmor %vm504_vm9, %vm505_vm8  ;;  %vm525_vm12 = vweird.f32 %v3111_v33  ;;  %v2990_v25 = vld [vmem:[%s4497_s1 + $0x88] sm:$0xf0] }
 0x16c   :  { %v501_v36 = vsub.f32 1.0, %v500_v35  ;;  %vm526_vm14 = vmor %vm524_vm13, %vm525_vm12  ;;  %v2469_v28 = vor.u32 %v2990_v25, %v2468_v24  ;;  %v2405_v25 = vor.u32 %v2973_v16, %v2402_v17  ;;  %v2563_v17 = vld [vmem:[%s4497_s1 + $0x84] sm:$0xf0] }
 0x16d   :  { %v521_v44 = vsub.f32 1.0, %v520_v37  ;;  %v2456_v37 = vld [vmem:[%s4497_s1 + $0x68] sm:$0xf] }
 0x16e   :  { %v502_v39 = vmul.f32 %v3109_v32, %v501_v36  ;;  %992 = vmatpush.bf16.msra.mxu3 %v2469_v28  ;;  %v2450_v36 = vld [vmem:[%s4497_s1 + $0x6c] sm:$0xf0]  ;;  %v2457_v41 = vor.u32 %v2987_v38, %v2456_v37  ;;  %v2296_v37 = vld [vmem:[%s4500_s0 + $0x20] sm:$0xf] }
 0x16f   :  { %v522_v51 = vmul.f32 %v3111_v33, %v521_v44  ;;  %v2982_v44 = vld [vmem:[%s4497_s1 + $0x4c] sm:$0xf] }
 0x170   :  { %v503_v43 = vadd.f32 %v3109_v32, %v502_v39 }
 0x171   :  { %v523_v53 = vadd.f32 %v3111_v33, %v522_v51 }
 0x172   :  { %v507_v47 = vsel %vm506_vm10, %v3109_v32, %v503_v43  ;;  %v2986_v32 = vld [vmem:[%s4497_s1 + $0x68] sm:$0xf0]  ;;  %v2983_v43 = vld [vmem:[%s4497_s1 + $0x50] sm:$0xf0]  ;;  %993 = vmatpush.bf16.msra.mxu3 %v2457_v41 }
 0x173   :  { %v512_v49 = vsel %vm509_vm11, %v511_v45, %v507_v47  ;;  %v527_v56 = vsel %vm526_vm14, %v3111_v33, %v523_v53  ;;  %v2985_v33 = vld [vmem:[%s4497_s1 + $0x64] sm:$0xf]  ;;  %v2449_v35 = vor.u32 %v2986_v32, %v2448_v31  ;;  %v2437_v47 = vor.u32 %v2983_v43, %v2436_v42 }
 0x174   :  { %v534_v50 = vmul.f32 %v512_v49, %v493_v46  ;;  %v532_v59 = vsel %vm529_vm15, %v531_v58, %v527_v56  ;;  %v2453_v39 = vor.u32 %v2985_v33, %v2450_v36  ;;  %v2444_v49 = vld [vmem:[%s4497_s1 + $0x50] sm:$0xf]  ;;  %v2979_v56 = vld [vmem:[%s4497_s1 + $0x34] sm:$0xf]  ;;  %v2426_v58 = vld [vmem:[%s4497_s1 + $0x3c] sm:$0xf0] }
 0x175   :  { %v2429_v0 = vor.u32 %v2979_v56, %v2426_v58 }
 0x176   :  { %v535_v52 = vadd.f32 %v534_v50, %v492_v48  ;;  %v2438_v48 = vld [vmem:[%s4497_s1 + $0x54] sm:$0xf0]  ;;  %v2984_v50 = vld [vmem:[%s4497_s1 + $0x58] sm:$0xf0]  ;;  %980 = vmatpush.bf16.msra.mxu2 %v2453_v39 }
 0x177   :  { %v2441_v53 = vor.u32 %v2982_v44, %v2438_v48  ;;  %v750_v44 = vunpack.c.l.bf16 %v2296_v37  ;;  %v2537_v37 = vld [vmem:[%s4497_s1 + $0x48] sm:$0xf] }
 0x178   :  { %3112 = vtanh.f32 %v535_v52 }
 0x17a   :  { %981 = vmatpush.bf16.msra.mxu2 %v2441_v53 }
 0x17e   :  { %v3113_v57 = vpop.eup %3112  ;;  %982 = vmatpush.bf16.msra.mxu2 %v2429_v0 }
 0x17f   :  { %v537_v34 = vsub.f32 %v3508_v2, %v3113_v57  ;;  %v2995_v2 = vld [vmem:[%s4497_s1 + $0xb0] sm:$0xf0] }
 0x180   :  { %v2485_v1 = vor.u32 %v2995_v2, %v2484_v63  ;;  %v2425_v2 = vor.u32 %v2980_v55, %v2424_v54 }
 0x181   :  { %v538_v60 = vmul.f32 %v537_v34, %v532_v59  ;;  %v2432_v34 = vld [vmem:[%s4497_s1 + $0x38] sm:$0xf]  ;;  %v2981_v59 = vld [vmem:[%s4497_s1 + $0x40] sm:$0xf0] }
 0x182   :  { %964 = vmatpush.bf16.msra.mxu1 %v2485_v1  ;;  %v2433_v1 = vor.u32 %v2981_v59, %v2432_v34  ;;  %v2585_v34 = vld [vmem:[%s4497_s1 + $0xa8] sm:$0xf]  ;;  %v3018_v59 = vld [vmem:[%s4497_s1 + $0xac] sm:$0xf] }
 0x183   :  { %v3670_v61 = vadd.f32 %v3113_v57, %v538_v60  ;;  %v2445_v57 = vor.u32 %v2984_v50, %v2444_v49 }
 0x185   :  { %v540_v62 = vpack.c.bf16 %v3670_v61, %v3670_v61  ;;  %994 = vmatpush.bf16.msra.mxu3 %v2445_v57 }
 0x186   :  { %965 = vmatpush.bf16.msra.mxu1 %v2473_v12  ;;  %v2417_v12 = vor.u32 %v2976_v3, %v2414_v6  ;;  %v3015_v3 = vld [vmem:[%s4497_s1 + $0x94] sm:$0xf]  ;;  %v2574_v6 = vor.u32 %v3016_v5, %v2573_v4  ;;  %v2521_v4 = vld [vmem:[%s4497_s1 + $0x20] sm:$0xf] }
 0x187   :  { %2294 = vst [vmem:[%s4501_s4 + $0x4] sm:$0xf] %v540_v62  ;;  %714 = vmatmul.bf16.vlgmr.msrb.gmra.mxu2 %v540_v62  ;;  %727 = vmatmul.bf16.vlgmr.msrb.gmra.mxu3 %v540_v62 }
 0x188   :  { %740 = vmatmul.bf16.vlgmr.msra.gmra.mxu0 %v540_v62  ;;  %983 = vmatpush.bf16.msra.mxu2 %v2417_v12  ;;  %v2396_v12 = vld [vmem:[%s4500_s0 + $0x24] sm:$0xff] }
 0x189   :  { %995 = vmatpush.bf16.msra.mxu3 %v2433_v1 }
 0x18a   :  { %966 = vmatpush.bf16.msra.mxu1 %v2461_v22 }
 0x18c   :  { %984 = vmatpush.bf16.msra.mxu2 %v2405_v25  ;;  %v3009_v25 = vld [vmem:[%s4497_s1 + $0x64] sm:$0xf] }
 0x18d   :  { %996 = vmatpush.bf16.msra.mxu3 %v2421_v13  ;;  %v2561_v13 = vld [vmem:[%s4497_s1 + $0x78] sm:$0xf] }
 0x18e   :  { %967 = vmatpush.bf16.msra.mxu1 %v2449_v35  ;;  %v2562_v16 = vor.u32 %v3013_v14, %v2561_v13  ;;  %v2503_v13 = vld [vmem:[%s4497_s1 + $0xc] sm:$0xf0] }
 0x191   :  { %997 = vmatpush.bf16.msra.mxu3 %v2409_v27 }
 0x192   :  { %968 = vmatpush.bf16.msra.mxu1 %v2437_v47 }
 0x196   :  { %969 = vmatpush.bf16.msra.mxu1 %v2425_v2  ;;  %v3020_v2 = vld [vmem:[%s4497_s1 + $0xb8] sm:$0xf0] }
 0x19a   :  { %970 = vmatpush.bf16.msra.mxu1 %v2413_v11 }
 0x19e   :  { %971 = vmatpush.bf16.msra.mxu1 %v2401_v23  ;;  %v2549_v23 = vld [vmem:[%s4497_s1 + $0x60] sm:$0xf] }
 0x205   :  { %v3734_v26 = vpop.f32.mrf.mxu0 }
 0x206   :  { %v751_v42 = vadd.f32 %v3501_v40, %v3734_v26 }
 0x20a   :  { %v715_v45 = vpop.f32.mrf.mxu2  ;;  %v728_v46 = vpop.f32.mrf.mxu3 }
 0x20b   :  { %v752_v51 = vadd.f32 %v745_v29, %v715_v45  ;;  %v772_v52 = vadd.f32 %v749_v30, %v728_v46 }
 0x20d   :  { %v2393_v60 = vmul.f32 -1.442695, %v752_v51  ;;  %v2394_v62 = vmul.f32 -1.442695, %v772_v52  ;;  %v743_v63 = vpop.f32.mrf.mxu0 }
 0x20e   :  { %v2593_v63 = vld [vmem:[%s4497_s1 + $0xb0] sm:$0xf] }
 0x20f   :  { %3114 = vpow2.f32 %v2393_v60  ;;  %v2594_v1 = vor.u32 %v3020_v2, %v2593_v63  ;;  %v3001_v63 = vld [vmem:[%s4497_s1 + $0x20] sm:$0xf0] }
 0x210   :  { %3116 = vpow2.f32 %v2394_v62  ;;  %v2587_v62 = vld [vmem:[%s4497_s1 + $0xb4] sm:$0xf0] }
 0x211   :  { %v2590_v0 = vor.u32 %v3018_v59, %v2587_v62  ;;  %1248 = vmatpush.bf16.msrb.mxu2 %v2594_v1  ;;  %v2513_v62 = vld [vmem:[%s4497_s1 + $0x18] sm:$0xf]  ;;  %v2515_v1 = vld [vmem:[%s4497_s1 + $0x24] sm:$0xf0] }
 0x212   :  { %v717_v9 = vpop.f32.mrf.mxu2  ;;  %v730_v10 = vpop.f32.mrf.mxu3  ;;  %v2514_v2 = vor.u32 %v3001_v63, %v2513_v62  ;;  %v2674_v62 = vld [vmem:[%s4497_s1 + $0x90] sm:$0xf]  ;;  %v3040_v63 = vld [vmem:[%s4497_s1 + $0x98] sm:$0xf0] }
 0x213   :  { %1235 = vmatpush.bf16.msrb.mxu1 %v2590_v0  ;;  %v3017_v9 = vld [vmem:[%s4497_s1 + $0xa0] sm:$0xf0]  ;;  %v2578_v10 = vor.u32 %v3015_v3, %v2575_v7  ;;  %v3000_v0 = vld [vmem:[%s4497_s1 + $0x1c] sm:$0xf]  ;;  %v2501_v7 = vld [vmem:[%s4497_s1] sm:$0xf] }
 0x214   :  { %v2582_v11 = vor.u32 %v3017_v9, %v2581_v8  ;;  %v2518_v3 = vor.u32 %v3000_v0, %v2515_v1  ;;  %v2998_v8 = vld [vmem:[%s4497_s1 + $0x8] sm:$0xf0]  ;;  %v2675_v0 = vor.u32 %v3040_v63, %v2674_v62  ;;  %v2676_v1 = vld [vmem:[%s4497_s1 + $0x9c] sm:$0xf0] }
 0x215   :  { %v3115_v20 = vpop.eup %3114  ;;  %v3026_v62 = vld [vmem:[%s4497_s1 + $0x28] sm:$0xf0] }
 0x216   :  { %v3117_v21 = vpop.eup %3116  ;;  %v756_v22 = vadd.f32 1.0, %v3115_v20  ;;  %1249 = vmatpush.bf16.msrb.mxu2 %v2582_v11  ;;  %v2566_v20 = vor.u32 %v3012_v15, %v2563_v17  ;;  %v2502_v11 = vor.u32 %v2998_v8, %v2501_v7  ;;  %v2509_v15 = vld [vmem:[%s4497_s1 + $0x8] sm:$0xf]  ;;  %v2662_v8 = vld [vmem:[%s4497_s1 + $0x78] sm:$0xf] }
 0x217   :  { %v776_v24 = vadd.f32 1.0, %v3117_v21  ;;  %1236 = vmatpush.bf16.msrb.mxu1 %v2578_v10  ;;  %v2570_v21 = vor.u32 %v3014_v19, %v2569_v18 }
 0x218   :  { %3118 = vrcp.f32 %v756_v22  ;;  %v768_v32 = vand.u32 2147483648, %v756_v22  ;;  %v766_v36 = vand.u32 2147483647, %v756_v22  ;;  %vm762_vm1 = vweird.f32 %v756_v22 }
 0x219   :  { %3120 = vrcp.f32 %v776_v24  ;;  %v788_v50 = vand.u32 2147483648, %v776_v24  ;;  %vm782_vm5 = vweird.f32 %v776_v24  ;;  %v786_v51 = vand.u32 2147483647, %v776_v24 }
 0x21a   :  { %v769_v39 = vor.u32 1.1754944e-38, %v768_v32  ;;  %vm767_vm3 = vcmp.eq.f32.partialorder %v766_v36, 8.507059e+37  ;;  %1250 = vmatpush.bf16.msrb.mxu2 %v2570_v21 }
 0x21b   :  { %v789_v54 = vor.u32 1.1754944e-38, %v788_v50  ;;  %vm787_vm7 = vcmp.eq.f32.partialorder %v786_v51, 8.507059e+37  ;;  %1237 = vmatpush.bf16.msrb.mxu1 %v2566_v20  ;;  %v3004_v50 = vld [vmem:[%s4497_s1 + $0x38] sm:$0xf0]  ;;  %v3003_v51 = vld [vmem:[%s4497_s1 + $0x34] sm:$0xf] }
 0x21e   :  { %v3119_v28 = vpop.eup %3118 }
 0x21f   :  { %v3121_v29 = vpop.eup %3120  ;;  %v758_v30 = vmul.f32 %v3119_v28, %v756_v22  ;;  %vm763_vm0 = vweird.f32 %v3119_v28  ;;  %v1003_v22 = vunpack.c.l.bf16 %v2396_v12 }
 0x220   :  { %v778_v33 = vmul.f32 %v3121_v29, %v776_v24  ;;  %vm764_vm2 = vmor %vm762_vm1, %vm763_vm0  ;;  %vm783_vm4 = vweird.f32 %v3121_v29  ;;  %v3010_v24 = vld [vmem:[%s4497_s1 + $0x68] sm:$0xf0] }
 0x221   :  { %v759_v31 = vsub.f32 1.0, %v758_v30  ;;  %vm784_vm6 = vmor %vm782_vm5, %vm783_vm4  ;;  %v2550_v27 = vor.u32 %v3010_v24, %v2549_v23  ;;  %v3011_v30 = vld [vmem:[%s4497_s1 + $0x70] sm:$0xf0] }
 0x222   :  { %v779_v41 = vsub.f32 1.0, %v778_v33 }
 0x223   :  { %v760_v35 = vmul.f32 %v3119_v28, %v759_v31  ;;  %v1005_v31 = vrot.slane %v2396_v12, 4  ;;  %v2997_v12 = vld [vmem:[%s4497_s1 + $0x4] sm:$0xf] }
 0x224   :  { %v780_v47 = vmul.f32 %v3121_v29, %v779_v41  ;;  %v2506_v14 = vor.u32 %v2997_v12, %v2503_v13  ;;  %v2664_v12 = vld [vmem:[%s4497_s1 + $0x84] sm:$0xf0]  ;;  %v2670_v13 = vld [vmem:[%s4497_s1 + $0x80] sm:$0xf] }
 0x225   :  { %v761_v38 = vadd.f32 %v3119_v28, %v760_v35 }
 0x226   :  { %v781_v49 = vadd.f32 %v3121_v29, %v780_v47 }
 0x227   :  { %v765_v43 = vsel %vm764_vm2, %v3119_v28, %v761_v38  ;;  %v2551_v28 = vld [vmem:[%s4497_s1 + $0x6c] sm:$0xf0]  ;;  %v3007_v38 = vld [vmem:[%s4497_s1 + $0x50] sm:$0xf0] }
 0x228   :  { %v770_v45 = vsel %vm767_vm3, %v769_v39, %v765_v43  ;;  %v785_v52 = vsel %vm784_vm6, %v3121_v29, %v781_v49  ;;  %v2557_v29 = vld [vmem:[%s4497_s1 + $0x68] sm:$0xf]  ;;  %v2554_v32 = vor.u32 %v3009_v25, %v2551_v28  ;;  %v3006_v39 = vld [vmem:[%s4497_s1 + $0x4c] sm:$0xf]  ;;  %v2538_v41 = vor.u32 %v3007_v38, %v2537_v37  ;;  %v2545_v43 = vld [vmem:[%s4497_s1 + $0x50] sm:$0xf] }
 0x229   :  { %v792_v46 = vmul.f32 %v770_v45, %v751_v42  ;;  %v790_v55 = vsel %vm787_vm7, %v789_v54, %v785_v52  ;;  %v2558_v33 = vor.u32 %v3011_v30, %v2557_v29  ;;  %v2539_v42 = vld [vmem:[%s4497_s1 + $0x54] sm:$0xf0]  ;;  %v2525_v49 = vld [vmem:[%s4497_s1 + $0x30] sm:$0xf]  ;;  %v2527_v54 = vld [vmem:[%s4497_s1 + $0x3c] sm:$0xf0] }
 0x22a   :  { %1238 = vmatpush.bf16.msrb.mxu1 %v2554_v32  ;;  %v2542_v47 = vor.u32 %v3006_v39, %v2539_v42 }
 0x22b   :  { %v793_v48 = vadd.f32 %v792_v46, %v750_v44  ;;  %1251 = vmatpush.bf16.msrb.mxu2 %v2558_v33  ;;  %v3008_v44 = vld [vmem:[%s4497_s1 + $0x58] sm:$0xf0]  ;;  %v1007_v46 = vunpack.c.l.bf16 %v1005_v31 }
 0x22d   :  { %3122 = vtanh.f32 %v793_v48  ;;  %v2546_v48 = vor.u32 %v3008_v44, %v2545_v43 }
 0x22e   :  { %1239 = vmatpush.bf16.msrb.mxu1 %v2542_v47 }
 0x22f   :  { %1252 = vmatpush.bf16.msrb.mxu2 %v2546_v48 }
 0x233   :  { %v3123_v53 = vpop.eup %3122 }
 0x234   :  { %v795_v26 = vsub.f32 %v3670_v61, %v3123_v53  ;;  %v3019_v61 = vld [vmem:[%s4497_s1 + $0xb0] sm:$0xf0] }
 0x235   :  { %v2586_v60 = vor.u32 %v3019_v61, %v2585_v34  ;;  %v2530_v34 = vor.u32 %v3003_v51, %v2527_v54  ;;  %v2686_v54 = vld [vmem:[%s4497_s1 + $0xa8] sm:$0xf] }
 0x236   :  { %v796_v56 = vmul.f32 %v795_v26, %v790_v55  ;;  %v2533_v26 = vld [vmem:[%s4497_s1 + $0x38] sm:$0xf]  ;;  %v3005_v55 = vld [vmem:[%s4497_s1 + $0x40] sm:$0xf0] }
 0x237   :  { %1222 = vmatpush.bf16.msrb.mxu0 %v2586_v60  ;;  %v2534_v61 = vor.u32 %v3005_v55, %v2533_v26  ;;  %1240 = vmatpush.bf16.msrb.mxu1 %v2530_v34  ;;  %v3042_v26 = vld [vmem:[%s4497_s1 + $0xac] sm:$0xf]  ;;  %v3044_v34 = vld [vmem:[%s4497_s1 + $0xb8] sm:$0xf0] }
 0x238   :  { %v3832_v57 = vadd.f32 %v3123_v53, %v796_v56  ;;  %v2526_v53 = vor.u32 %v3004_v50, %v2525_v49 }
 0x239   :  { %1253 = vmatpush.bf16.msrb.mxu2 %v2534_v61 }
 0x23a   :  { %v798_v58 = vpack.c.bf16 %v3832_v57, %v3832_v57 }
 0x23b   :  { %1223 = vmatpush.bf16.msrb.mxu0 %v2574_v6  ;;  %v3002_v6 = vld [vmem:[%s4497_s1 + $0x28] sm:$0xf0]  ;;  %1241 = vmatpush.bf16.msrb.mxu1 %v2518_v3 }
 0x23c   :  { %2395 = vst [vmem:[%s4501_s4 + $0x8] sm:$0xf] %v798_v58  ;;  %972 = vmatmul.bf16.vlgmr.msra.gmra.mxu1 %v798_v58  ;;  %985 = vmatmul.bf16.vlgmr.msra.gmra.mxu2 %v798_v58  ;;  %v2522_v10 = vor.u32 %v3002_v6, %v2521_v4  ;;  %v2682_v4 = vld [vmem:[%s4497_s1 + $0x98] sm:$0xf] }
 0x23d   :  { %998 = vmatmul.bf16.vlgmr.msra.gmra.mxu3 %v798_v58 }
 0x23e   :  { %1254 = vmatpush.bf16.msrb.mxu2 %v2522_v10  ;;  %v3036_v10 = vld [vmem:[%s4497_s1 + $0x7c] sm:$0xf] }
 0x23f   :  { %1224 = vmatpush.bf16.msrb.mxu0 %v2562_v16  ;;  %v2999_v16 = vld [vmem:[%s4497_s1 + $0x10] sm:$0xf0]  ;;  %1242 = vmatpush.bf16.msrb.mxu1 %v2506_v14  ;;  %v2667_v14 = vor.u32 %v3036_v10, %v2664_v12 }
 0x240   :  { %v2510_v19 = vor.u32 %v2999_v16, %v2509_v15  ;;  %v3038_v15 = vld [vmem:[%s4497_s1 + $0x88] sm:$0xf0]  ;;  %v3023_v12 = vld [vmem:[%s4497_s1 + $0x10] sm:$0xf0] }
 0x241   :  { %v2671_v16 = vor.u32 %v3038_v15, %v2670_v13 }
 0x242   :  { %1255 = vmatpush.bf16.msrb.mxu2 %v2510_v19  ;;  %v2650_v19 = vld [vmem:[%s4497_s1 + $0x60] sm:$0xf] }
 0x243   :  { %1225 = vmatpush.bf16.msrb.mxu0 %v2550_v27  ;;  %v2397_v27 = vld [vmem:[%s4500_s0 + $0x2c] sm:$0xf] }
 0x244   :  { %v1008_v33 = vunpack.c.l.bf16 %v2397_v27 }
 0x247   :  { %1226 = vmatpush.bf16.msrb.mxu0 %v2538_v41 }
 0x24b   :  { %1227 = vmatpush.bf16.msrb.mxu0 %v2526_v53 }
 0x24f   :  { %1228 = vmatpush.bf16.msrb.mxu0 %v2514_v2  ;;  %v3039_v2 = vld [vmem:[%s4497_s1 + $0x94] sm:$0xf] }
 0x250   :  { %v2679_v3 = vor.u32 %v3039_v2, %v2676_v1  ;;  %v2602_v1 = vld [vmem:[%s4497_s1] sm:$0xf] }
 0x253   :  { %1229 = vmatpush.bf16.msrb.mxu0 %v2502_v11 }
 0x2b9   :  { %v973_v35 = vpop.f32.mrf.mxu1 }
 0x2ba   :  { %v1010_v36 = vadd.f32 %v1003_v22, %v973_v35 }
 0x2bc   :  { %v2494_v45 = vmul.f32 -1.442695, %v1010_v36 }
 0x2be   :  { %3124 = vpow2.f32 %v2494_v45 }
 0x2bf   :  { %v986_v52 = vpop.f32.mrf.mxu2 }
 0x2c0   :  { %v1030_v56 = vadd.f32 %v1007_v46, %v986_v52  ;;  %v999_v58 = vpop.f32.mrf.mxu3 }
 0x2c1   :  { %v975_v59 = vpop.f32.mrf.mxu1  ;;  %v1009_v37 = vadd.f32 %v3501_v40, %v999_v58  ;;  %v2694_v58 = vld [vmem:[%s4497_s1 + $0xb0] sm:$0xf] }
 0x2c2   :  { %v2495_v60 = vmul.f32 -1.442695, %v1030_v56  ;;  %v2688_v56 = vld [vmem:[%s4497_s1 + $0xb4] sm:$0xf0]  ;;  %v2695_v59 = vor.u32 %v3044_v34, %v2694_v58  ;;  %v3025_v58 = vld [vmem:[%s4497_s1 + $0x20] sm:$0xf0] }
 0x2c3   :  { %v2691_v61 = vor.u32 %v3042_v26, %v2688_v56  ;;  %v2614_v56 = vld [vmem:[%s4497_s1 + $0x18] sm:$0xf]  ;;  %v3024_v34 = vld [vmem:[%s4497_s1 + $0x1c] sm:$0xf] }
 0x2c4   :  { %v3125_v5 = vpop.eup %3124  ;;  %3126 = vpow2.f32 %v2495_v60  ;;  %v2497_v60 = vld [vmem:[%s4500_s0 + $0x30] sm:$0xff]  ;;  %1506 = vmatpush.bf16.msra.mxu1 %v2695_v59  ;;  %v2616_v59 = vld [vmem:[%s4497_s1 + $0x24] sm:$0xf0] }
 0x2c5   :  { %v1014_v9 = vadd.f32 1.0, %v3125_v5  ;;  %1493 = vmatpush.bf16.msra.mxu0 %v2691_v61  ;;  %v3041_v5 = vld [vmem:[%s4497_s1 + $0xa0] sm:$0xf0]  ;;  %v1263_v7 = vrot.slane %v2497_v60, 4  ;;  %v2615_v61 = vor.u32 %v3025_v58, %v2614_v56  ;;  %v2619_v2 = vor.u32 %v3024_v34, %v2616_v59  ;;  %v2775_v58 = vld [vmem:[%s4497_s1 + $0x90] sm:$0xf] }
 0x2c6   :  { %v2683_v6 = vor.u32 %v3041_v5, %v2682_v4  ;;  %v3022_v4 = vld [vmem:[%s4497_s1 + $0x8] sm:$0xf0]  ;;  %v3021_v5 = vld [vmem:[%s4497_s1 + $0x4] sm:$0xf]  ;;  %v3064_v34 = vld [vmem:[%s4497_s1 + $0x98] sm:$0xf0] }
 0x2c7   :  { %3128 = vrcp.f32 %v1014_v9  ;;  %v988_v17 = vpop.f32.mrf.mxu2  ;;  %v1026_v25 = vand.u32 2147483648, %v1014_v9  ;;  %v1024_v29 = vand.u32 2147483647, %v1014_v9  ;;  %vm1020_vm9 = vweird.f32 %v1014_v9 }
 0x2c8   :  { %v1001_v18 = vpop.f32.mrf.mxu3  ;;  %1507 = vmatpush.bf16.msra.mxu1 %v2683_v6  ;;  %v1261_v17 = vunpack.c.l.bf16 %v2497_v60  ;;  %v2622_v60 = vld [vmem:[%s4497_s1 + $0x20] sm:$0xf] }
 0x2c9   :  { %v1027_v35 = vor.u32 1.1754944e-38, %v1026_v25  ;;  %vm1025_vm11 = vcmp.eq.f32.partialorder %v1024_v29, 8.507059e+37  ;;  %1494 = vmatpush.bf16.msra.mxu0 %v2679_v3  ;;  %v1265_v18 = vunpack.c.l.bf16 %v1263_v7  ;;  %v3035_v25 = vld [vmem:[%s4497_s1 + $0x70] sm:$0xf0]  ;;  %v2603_v7 = vor.u32 %v3022_v4, %v2602_v1 }
 0x2ca   :  { %v3127_v20 = vpop.eup %3126 }
 0x2cb   :  { %v1034_v21 = vadd.f32 1.0, %v3127_v20  ;;  %v3034_v20 = vld [vmem:[%s4497_s1 + $0x68] sm:$0xf0] }
 0x2cc   :  { %1508 = vmatpush.bf16.msra.mxu1 %v2671_v16 }
 0x2cd   :  { %v3129_v22 = vpop.eup %3128  ;;  %3130 = vrcp.f32 %v1034_v21  ;;  %v1046_v45 = vand.u32 2147483648, %v1034_v21  ;;  %vm1040_vm13 = vweird.f32 %v1034_v21  ;;  %v1044_v46 = vand.u32 2147483647, %v1034_v21  ;;  %1495 = vmatpush.bf16.msra.mxu0 %v2667_v14 }
 0x2ce   :  { %v1016_v23 = vmul.f32 %v3129_v22, %v1014_v9  ;;  %vm1021_vm8 = vweird.f32 %v3129_v22  ;;  %v3037_v9 = vld [vmem:[%s4497_s1 + $0x80] sm:$0xf0] }
 0x2cf   :  { %vm1022_vm10 = vmor %vm1020_vm9, %vm1021_vm8  ;;  %v1047_v49 = vor.u32 1.1754944e-38, %v1046_v45  ;;  %vm1045_vm15 = vcmp.eq.f32.partialorder %v1044_v46, 8.507059e+37  ;;  %v2663_v11 = vor.u32 %v3037_v9, %v2662_v8  ;;  %v2626_v46 = vld [vmem:[%s4497_s1 + $0x30] sm:$0xf]  ;;  %v2610_v9 = vld [vmem:[%s4497_s1 + $0x8] sm:$0xf] }
 0x2d0   :  { %v1017_v24 = vsub.f32 1.0, %v1016_v23  ;;  %v2652_v23 = vld [vmem:[%s4497_s1 + $0x6c] sm:$0xf0]  ;;  %v2611_v14 = vor.u32 %v3023_v12, %v2610_v9  ;;  %v3062_v12 = vld [vmem:[%s4497_s1 + $0x88] sm:$0xf0] }
 0x2d1   :  { %v2604_v8 = vld [vmem:[%s4497_s1 + $0xc] sm:$0xf0] }
 0x2d2   :  { %v1018_v28 = vmul.f32 %v3129_v22, %v1017_v24  ;;  %v2658_v24 = vld [vmem:[%s4497_s1 + $0x68] sm:$0xf] }
 0x2d3   :  { %v3131_v30 = vpop.eup %3130 }
 0x2d4   :  { %v1036_v31 = vmul.f32 %v3131_v30, %v1034_v21  ;;  %v1019_v32 = vadd.f32 %v3129_v22, %v1018_v28  ;;  %vm1041_vm12 = vweird.f32 %v3131_v30  ;;  %v3033_v21 = vld [vmem:[%s4497_s1 + $0x64] sm:$0xf]  ;;  %v2659_v28 = vor.u32 %v3035_v25, %v2658_v24 }
 0x2d5   :  { %vm1042_vm14 = vmor %vm1040_vm13, %vm1041_vm12  ;;  %v2655_v27 = vor.u32 %v3033_v21, %v2652_v23  ;;  %v2498_v23 = vld [vmem:[%s4500_s0 + $0x38] sm:$0xf] }
 0x2d6   :  { %v1037_v36 = vsub.f32 1.0, %v1036_v31  ;;  %v1023_v38 = vsel %vm1022_vm10, %v3129_v22, %v1019_v32  ;;  %v2651_v22 = vor.u32 %v3034_v20, %v2650_v19  ;;  %1509 = vmatpush.bf16.msra.mxu1 %v2659_v28  ;;  %v1266_v28 = vunpack.c.l.bf16 %v2498_v23  ;;  %v3059_v23 = vld [vmem:[%s4497_s1 + $0x70] sm:$0xf0] }
 0x2d7   :  { %v1028_v39 = vsel %vm1025_vm11, %v1027_v35, %v1023_v38  ;;  %1496 = vmatpush.bf16.msra.mxu0 %v2655_v27  ;;  %v3031_v35 = vld [vmem:[%s4497_s1 + $0x50] sm:$0xf0]  ;;  %v2640_v38 = vld [vmem:[%s4497_s1 + $0x54] sm:$0xf0] }
 0x2d8   :  { %v1050_v41 = vmul.f32 %v1028_v39, %v1009_v37  ;;  %v1038_v42 = vmul.f32 %v3131_v30, %v1037_v36  ;;  %v3030_v36 = vld [vmem:[%s4497_s1 + $0x4c] sm:$0xf]  ;;  %v2646_v39 = vld [vmem:[%s4497_s1 + $0x50] sm:$0xf] }
 0x2da   :  { %v1051_v43 = vadd.f32 %v1050_v41, %v1008_v33  ;;  %v1039_v44 = vadd.f32 %v3131_v30, %v1038_v42  ;;  %v2638_v33 = vld [vmem:[%s4497_s1 + $0x48] sm:$0xf]  ;;  %v3032_v41 = vld [vmem:[%s4497_s1 + $0x58] sm:$0xf0] }
 0x2db   :  { %v2639_v37 = vor.u32 %v3031_v35, %v2638_v33  ;;  %v2647_v45 = vor.u32 %v3032_v41, %v2646_v39 }
 0x2dc   :  { %3132 = vtanh.f32 %v1051_v43  ;;  %v1043_v47 = vsel %vm1042_vm14, %v3131_v30, %v1039_v44  ;;  %v2643_v44 = vor.u32 %v3030_v36, %v2640_v38 }
 0x2dd   :  { %v1048_v40 = vsel %vm1045_vm15, %v1047_v49, %v1043_v47  ;;  %v3028_v47 = vld [vmem:[%s4497_s1 + $0x38] sm:$0xf0]  ;;  %1510 = vmatpush.bf16.msra.mxu1 %v2647_v45 }
 0x2de   :  { %1497 = vmatpush.bf16.msra.mxu0 %v2643_v44  ;;  %v2627_v49 = vor.u32 %v3028_v47, %v2626_v46 }
 0x2e2   :  { %v3133_v48 = vpop.eup %3132 }
 0x2e3   :  { %v1053_v50 = vsub.f32 %v3832_v57, %v3133_v48  ;;  %v3043_v57 = vld [vmem:[%s4497_s1 + $0xb0] sm:$0xf0] }
 0x2e4   :  { %v2687_v55 = vor.u32 %v3043_v57, %v2686_v54 }
 0x2e5   :  { %v1054_v51 = vmul.f32 %v1053_v50, %v1048_v40  ;;  %v2628_v50 = vld [vmem:[%s4497_s1 + $0x3c] sm:$0xf0]  ;;  %v2634_v40 = vld [vmem:[%s4497_s1 + $0x38] sm:$0xf] }
 0x2e6   :  { %1480 = vmatpush.bf16.msrb.mxu3 %v2687_v55 }
 0x2e7   :  { %v3991_v52 = vadd.f32 %v3133_v48, %v1054_v51  ;;  %v3027_v48 = vld [vmem:[%s4497_s1 + $0x34] sm:$0xf]  ;;  %v3029_v51 = vld [vmem:[%s4497_s1 + $0x40] sm:$0xf0] }
 0x2e8   :  { %v2631_v54 = vor.u32 %v3027_v48, %v2628_v50  ;;  %v2635_v57 = vor.u32 %v3029_v51, %v2634_v40  ;;  %v2787_v50 = vld [vmem:[%s4497_s1 + $0xa8] sm:$0xf]  ;;  %v3067_v40 = vld [vmem:[%s4497_s1 + $0xb0] sm:$0xf0]  ;;  %v3066_v51 = vld [vmem:[%s4497_s1 + $0xac] sm:$0xf] }
 0x2e9   :  { %v1056_v53 = vpack.c.bf16 %v3991_v52, %v3991_v52 }
 0x2ea   :  { %1481 = vmatpush.bf16.msrb.mxu3 %v2675_v0  ;;  %1498 = vmatpush.bf16.msra.mxu0 %v2631_v54  ;;  %v2623_v0 = vor.u32 %v3026_v62, %v2622_v60  ;;  %v2789_v54 = vld [vmem:[%s4497_s1 + $0xb4] sm:$0xf0]  ;;  %v2776_v60 = vor.u32 %v3064_v34, %v2775_v58  ;;  %v2777_v62 = vld [vmem:[%s4497_s1 + $0x9c] sm:$0xf0]  ;;  %v3050_v58 = vld [vmem:[%s4497_s1 + $0x28] sm:$0xf0] }
 0x2eb   :  { %2496 = vst [vmem:[%s4501_s4 + $0xc] sm:$0xf] %v1056_v53  ;;  %1230 = vmatmul.bf16.vlgmr.msrb.gmra.mxu0 %v1056_v53  ;;  %1243 = vmatmul.bf16.vlgmr.msrb.gmra.mxu1 %v1056_v53 }
 0x2ec   :  { %1256 = vmatmul.bf16.vlgmr.msrb.gmra.mxu2 %v1056_v53  ;;  %1511 = vmatpush.bf16.msra.mxu1 %v2635_v57  ;;  %v2795_v57 = vld [vmem:[%s4497_s1 + $0xb0] sm:$0xf] }
 0x2ee   :  { %1482 = vmatpush.bf16.msrb.mxu3 %v2663_v11  ;;  %1499 = vmatpush.bf16.msra.mxu0 %v2619_v2  ;;  %v2607_v11 = vor.u32 %v3021_v5, %v2604_v8  ;;  %v3065_v2 = vld [vmem:[%s4497_s1 + $0xa0] sm:$0xf0]  ;;  %v2763_v5 = vld [vmem:[%s4497_s1 + $0x78] sm:$0xf] }
 0x2f0   :  { %1512 = vmatpush.bf16.msra.mxu1 %v2623_v0 }
 0x2f2   :  { %1483 = vmatpush.bf16.msrb.mxu3 %v2651_v22  ;;  %1500 = vmatpush.bf16.msra.mxu0 %v2607_v11  ;;  %v2771_v11 = vld [vmem:[%s4497_s1 + $0x80] sm:$0xf] }
 0x2f4   :  { %1513 = vmatpush.bf16.msra.mxu1 %v2611_v14  ;;  %v2772_v14 = vor.u32 %v3062_v12, %v2771_v11 }
 0x2f6   :  { %1484 = vmatpush.bf16.msrb.mxu3 %v2639_v37 }
 0x2fa   :  { %1485 = vmatpush.bf16.msrb.mxu3 %v2627_v49  ;;  %v2598_v49 = vld [vmem:[%s4500_s0 + $0x3c] sm:$0xff] }
 0x2fe   :  { %1486 = vmatpush.bf16.msrb.mxu3 %v2615_v61  ;;  %v3063_v61 = vld [vmem:[%s4497_s1 + $0x94] sm:$0xf] }
 0x2ff   :  { %v2780_v0 = vor.u32 %v3063_v61, %v2777_v62 }
 0x302   :  { %1487 = vmatpush.bf16.msrb.mxu3 %v2603_v7 }
 0x368   :  { %v1231_v29 = vpop.f32.mrf.mxu0  ;;  %v1244_v30 = vpop.f32.mrf.mxu1 }
 0x369   :  { %v1268_v31 = vadd.f32 %v1261_v17, %v1231_v29  ;;  %v1288_v32 = vadd.f32 %v1265_v18, %v1244_v30  ;;  %v4151_v29 = vld [vmem:[%s4499_s2] ss:$0 sm:$0xff] }
 0x36b   :  { %v2595_v42 = vmul.f32 -1.442695, %v1268_v31  ;;  %v2596_v43 = vmul.f32 -1.442695, %v1288_v32 }
 0x36d   :  { %3134 = vpow2.f32 %v2595_v42 }
 0x36e   :  { %3136 = vpow2.f32 %v2596_v43 }
 0x36f   :  { %v1257_v53 = vpop.f32.mrf.mxu2 }
 0x370   :  { %v1233_v26 = vpop.f32.mrf.mxu0  ;;  %v1246_v55 = vpop.f32.mrf.mxu1  ;;  %v1267_v30 = vadd.f32 %v4151_v29, %v1257_v53  ;;  %v2788_v53 = vor.u32 %v3067_v40, %v2787_v50 }
 0x371   :  { %v3068_v26 = vld [vmem:[%s4497_s1 + $0xb8] sm:$0xf0]  ;;  %v2792_v55 = vor.u32 %v3066_v51, %v2789_v54  ;;  %v2715_v54 = vld [vmem:[%s4497_s1 + $0x18] sm:$0xf] }
 0x372   :  { %v2796_v56 = vor.u32 %v3068_v26, %v2795_v57  ;;  %1738 = vmatpush.bf16.msra.mxu2 %v2788_v53  ;;  %v3049_v57 = vld [vmem:[%s4497_s1 + $0x20] sm:$0xf0]  ;;  %v3048_v26 = vld [vmem:[%s4497_s1 + $0x1c] sm:$0xf] }
 0x373   :  { %v3135_v63 = vpop.eup %3134  ;;  %1751 = vmatpush.bf16.msra.mxu3 %v2792_v55  ;;  %v2717_v55 = vld [vmem:[%s4497_s1 + $0x24] sm:$0xf0] }
 0x374   :  { %v3137_v3 = vpop.eup %3136  ;;  %v1272_v6 = vadd.f32 1.0, %v3135_v63  ;;  %1764 = vmatpush.bf16.msrb.mxu0 %v2796_v56  ;;  %v2783_v63 = vld [vmem:[%s4497_s1 + $0x98] sm:$0xf]  ;;  %v2723_v56 = vld [vmem:[%s4497_s1 + $0x20] sm:$0xf] }
 0x375   :  { %v1292_v10 = vadd.f32 1.0, %v3137_v3  ;;  %v2784_v1 = vor.u32 %v3065_v2, %v2783_v63  ;;  %v3061_v3 = vld [vmem:[%s4497_s1 + $0x80] sm:$0xf0]  ;;  %v2724_v62 = vor.u32 %v3050_v58, %v2723_v56  ;;  %v2703_v63 = vld [vmem:[%s4497_s1] sm:$0xf] }
 0x376   :  { %3138 = vrcp.f32 %v1272_v6  ;;  %v1284_v20 = vand.u32 2147483648, %v1272_v6  ;;  %v1282_v22 = vand.u32 2147483647, %v1272_v6  ;;  %vm1278_vm1 = vweird.f32 %v1272_v6  ;;  %1739 = vmatpush.bf16.msra.mxu2 %v2776_v60  ;;  %v3046_v2 = vld [vmem:[%s4497_s1 + $0x8] sm:$0xf0] }
 0x377   :  { %3140 = vrcp.f32 %v1292_v10  ;;  %v1259_v13 = vpop.f32.mrf.mxu2  ;;  %v1304_v38 = vand.u32 2147483648, %v1292_v10  ;;  %vm1298_vm5 = vweird.f32 %v1292_v10  ;;  %v1302_v39 = vand.u32 2147483647, %v1292_v10  ;;  %1752 = vmatpush.bf16.msra.mxu3 %v2780_v0  ;;  %v3045_v0 = vld [vmem:[%s4497_s1 + $0x4] sm:$0xf] }
 0x378   :  { %v1285_v27 = vor.u32 1.1754944e-38, %v1284_v20  ;;  %vm1283_vm3 = vcmp.eq.f32.partialorder %v1282_v22, 8.507059e+37  ;;  %1765 = vmatpush.bf16.msrb.mxu0 %v2784_v1  ;;  %v2764_v9 = vor.u32 %v3061_v3, %v2763_v5  ;;  %v2759_v22 = vld [vmem:[%s4497_s1 + $0x68] sm:$0xf]  ;;  %v2720_v60 = vor.u32 %v3048_v26, %v2717_v55  ;;  %v3047_v3 = vld [vmem:[%s4497_s1 + $0x10] sm:$0xf0] }
 0x379   :  { %v1305_v43 = vor.u32 1.1754944e-38, %v1304_v38  ;;  %vm1303_vm7 = vcmp.eq.f32.partialorder %v1302_v39, 8.507059e+37  ;;  %v2711_v5 = vld [vmem:[%s4497_s1 + $0x8] sm:$0xf]  ;;  %v2878_v55 = vld [vmem:[%s4497_s1 + $0x9c] sm:$0xf0] }
 0x37a   :  { %1740 = vmatpush.bf16.msra.mxu2 %v2764_v9  ;;  %v2884_v56 = vld [vmem:[%s4497_s1 + $0x98] sm:$0xf]  ;;  %v3089_v58 = vld [vmem:[%s4497_s1 + $0xa0] sm:$0xf0] }
 0x37c   :  { %v3139_v15 = vpop.eup %3138  ;;  %1766 = vmatpush.bf16.msrb.mxu0 %v2772_v14 }
 0x37d   :  { %v3141_v16 = vpop.eup %3140  ;;  %v1274_v17 = vmul.f32 %v3139_v15, %v1272_v6  ;;  %vm1279_vm0 = vweird.f32 %v3139_v15  ;;  %v3060_v6 = vld [vmem:[%s4497_s1 + $0x7c] sm:$0xf] }
 0x37e   :  { %v1294_v19 = vmul.f32 %v3141_v16, %v1292_v10  ;;  %vm1280_vm2 = vmor %vm1278_vm1, %vm1279_vm0  ;;  %vm1299_vm4 = vweird.f32 %v3141_v16  ;;  %v2765_v10 = vld [vmem:[%s4497_s1 + $0x84] sm:$0xf0] }
 0x37f   :  { %v1275_v18 = vsub.f32 1.0, %v1274_v17  ;;  %vm1300_vm6 = vmor %vm1298_vm5, %vm1299_vm4  ;;  %v2768_v13 = vor.u32 %v3060_v6, %v2765_v10  ;;  %v2751_v17 = vld [vmem:[%s4497_s1 + $0x60] sm:$0xf]  ;;  %v2712_v10 = vor.u32 %v3047_v3, %v2711_v5  ;;  %v3086_v5 = vld [vmem:[%s4497_s1 + $0x88] sm:$0xf0] }
 0x380   :  { %v1295_v25 = vsub.f32 1.0, %v1294_v19  ;;  %v3057_v19 = vld [vmem:[%s4497_s1 + $0x64] sm:$0xf] }
 0x381   :  { %v1276_v21 = vmul.f32 %v3139_v15, %v1275_v18  ;;  %1753 = vmatpush.bf16.msra.mxu3 %v2768_v13  ;;  %v3058_v18 = vld [vmem:[%s4497_s1 + $0x68] sm:$0xf0] }
 0x382   :  { %v1296_v35 = vmul.f32 %v3141_v16, %v1295_v25  ;;  %v2752_v20 = vor.u32 %v3058_v18, %v2751_v17 }
 0x383   :  { %v1277_v24 = vadd.f32 %v3139_v15, %v1276_v21  ;;  %v2753_v21 = vld [vmem:[%s4497_s1 + $0x6c] sm:$0xf0] }
 0x384   :  { %v1297_v37 = vadd.f32 %v3141_v16, %v1296_v35  ;;  %v2756_v25 = vor.u32 %v3057_v19, %v2753_v21  ;;  %1741 = vmatpush.bf16.msra.mxu2 %v2752_v20  ;;  %v2741_v35 = vld [vmem:[%s4497_s1 + $0x54] sm:$0xf0]  ;;  %v2599_v19 = vld [vmem:[%s4500_s0 + $0x44] sm:$0xf] }
 0x385   :  { %v1281_v31 = vsel %vm1280_vm2, %v3139_v15, %v1277_v24 }
 0x386   :  { %v1286_v32 = vsel %vm1283_vm3, %v1285_v27, %v1281_v31  ;;  %v1301_v41 = vsel %vm1300_vm6, %v3141_v16, %v1297_v37  ;;  %v1519_v16 = vunpack.c.l.bf16 %v2598_v49  ;;  %v2760_v27 = vor.u32 %v3059_v23, %v2759_v22  ;;  %v3054_v31 = vld [vmem:[%s4497_s1 + $0x4c] sm:$0xf]  ;;  %v3056_v37 = vld [vmem:[%s4497_s1 + $0x58] sm:$0xf0]  ;;  %1754 = vmatpush.bf16.msra.mxu3 %v2756_v25 }
 0x387   :  { %v1308_v33 = vmul.f32 %v1286_v32, %v1267_v30  ;;  %v1306_v45 = vsel %vm1303_vm7, %v1305_v43, %v1301_v41  ;;  %v3055_v30 = vld [vmem:[%s4497_s1 + $0x50] sm:$0xf0]  ;;  %v2744_v39 = vor.u32 %v3054_v31, %v2741_v35  ;;  %v3052_v43 = vld [vmem:[%s4497_s1 + $0x38] sm:$0xf0]  ;;  %v1524_v25 = vunpack.c.l.bf16 %v2599_v19 }
 0x388   :  { %1767 = vmatpush.bf16.msrb.mxu0 %v2760_v27 }
 0x389   :  { %v1309_v36 = vadd.f32 %v1308_v33, %v1266_v28  ;;  %v2739_v28 = vld [vmem:[%s4497_s1 + $0x48] sm:$0xf] }
 0x38a   :  { %v2740_v33 = vor.u32 %v3055_v30, %v2739_v28  ;;  %1755 = vmatpush.bf16.msra.mxu3 %v2744_v39 }
 0x38b   :  { %3142 = vtanh.f32 %v1309_v36  ;;  %v2747_v36 = vld [vmem:[%s4497_s1 + $0x50] sm:$0xf] }
 0x38c   :  { %v2748_v41 = vor.u32 %v3056_v37, %v2747_v36  ;;  %1742 = vmatpush.bf16.msra.mxu2 %v2740_v33 }
 0x38e   :  { %1768 = vmatpush.bf16.msrb.mxu0 %v2748_v41 }
 0x391   :  { %v3143_v42 = vpop.eup %3142 }
 0x392   :  { %v1311_v44 = vsub.f32 %v3991_v52, %v3143_v42  ;;  %v1521_v52 = vrot.slane %v2598_v49, 4  ;;  %v2735_v49 = vld [vmem:[%s4497_s1 + $0x38] sm:$0xf] }
 0x394   :  { %v1312_v46 = vmul.f32 %v1311_v44, %v1306_v45  ;;  %v1523_v59 = vunpack.c.l.bf16 %v1521_v52  ;;  %v3051_v44 = vld [vmem:[%s4497_s1 + $0x34] sm:$0xf]  ;;  %v3053_v52 = vld [vmem:[%s4497_s1 + $0x40] sm:$0xf0] }
 0x395   :  { %v2736_v53 = vor.u32 %v3053_v52, %v2735_v49  ;;  %v2896_v49 = vld [vmem:[%s4497_s1 + $0xb0] sm:$0xf]  ;;  %v3092_v52 = vld [vmem:[%s4497_s1 + $0xb8] sm:$0xf0] }
 0x396   :  { %v4155_v47 = vadd.f32 %v3143_v42, %v1312_v46  ;;  %v2727_v42 = vld [vmem:[%s4497_s1 + $0x30] sm:$0xf] }
 0x397   :  { %v2728_v50 = vor.u32 %v3052_v43, %v2727_v42  ;;  %1769 = vmatpush.bf16.msrb.mxu0 %v2736_v53  ;;  %v2876_v53 = vld [vmem:[%s4497_s1 + $0x90] sm:$0xf] }
 0x398   :  { %v1314_v48 = vpack.c.bf16 %v4155_v47, %v4155_v47 }
 0x399   :  { %1743 = vmatpush.bf16.msra.mxu2 %v2728_v50 }
 0x39a   :  { %2597 = vst [vmem:[%s4501_s4 + $0x10] sm:$0xf] %v1314_v48  ;;  %1488 = vmatmul.bf16.vlgmr.msrb.gmra.mxu3 %v1314_v48  ;;  %1501 = vmatmul.bf16.vlgmr.msra.gmra.mxu0 %v1314_v48 }
 0x39b   :  { %1514 = vmatmul.bf16.vlgmr.msra.gmra.mxu1 %v1314_v48  ;;  %v2729_v48 = vld [vmem:[%s4497_s1 + $0x3c] sm:$0xf0]  ;;  %1770 = vmatpush.bf16.msrb.mxu0 %v2724_v62  ;;  %v3085_v62 = vld [vmem:[%s4497_s1 + $0x80] sm:$0xf0] }
 0x39c   :  { %v2732_v51 = vor.u32 %v3051_v44, %v2729_v48  ;;  %v2888_v44 = vld [vmem:[%s4497_s1 + $0xa8] sm:$0xf]  ;;  %v2890_v48 = vld [vmem:[%s4497_s1 + $0xb4] sm:$0xf0] }
 0x39e   :  { %1756 = vmatpush.bf16.msra.mxu3 %v2732_v51  ;;  %v2699_v51 = vld [vmem:[%s4500_s0 + $0x48] sm:$0xff] }
 0x39f   :  { %1771 = vmatpush.bf16.msrb.mxu0 %v2712_v10  ;;  %v2852_v10 = vld [vmem:[%s4497_s1 + $0x60] sm:$0xf] }
 0x3a2   :  { %1757 = vmatpush.bf16.msra.mxu3 %v2720_v60  ;;  %v2864_v60 = vld [vmem:[%s4497_s1 + $0x78] sm:$0xf] }
 0x417   :  { %v1502_v4 = vpop.f32.mrf.mxu0 }
 0x418   :  { %v1546_v7 = vadd.f32 %v1523_v59, %v1502_v4  ;;  %v4210_v8 = vpop.f32.mrf.mxu1  ;;  %v2716_v59 = vor.u32 %v3049_v57, %v2715_v54  ;;  %v2705_v4 = vld [vmem:[%s4497_s1 + $0xc] sm:$0xf0]  ;;  %v3088_v54 = vld [vmem:[%s4497_s1 + $0x98] sm:$0xf0]  ;;  %v3087_v57 = vld [vmem:[%s4497_s1 + $0x94] sm:$0xf] }
 0x419   :  { %v2708_v9 = vor.u32 %v3045_v0, %v2705_v4  ;;  %v1525_v23 = vadd.f32 %v4151_v29, %v4210_v8  ;;  %v2877_v26 = vor.u32 %v3088_v54, %v2876_v53  ;;  %v2865_v0 = vor.u32 %v3085_v62, %v2864_v60  ;;  %v2872_v4 = vld [vmem:[%s4497_s1 + $0x80] sm:$0xf]  ;;  %v2812_v60 = vld [vmem:[%s4497_s1 + $0x8] sm:$0xf]  ;;  %v3071_v62 = vld [vmem:[%s4497_s1 + $0x10] sm:$0xf0] }
 0x41a   :  { %v2697_v15 = vmul.f32 -1.442695, %v1546_v7  ;;  %1744 = vmatpush.bf16.msra.mxu2 %v2716_v59  ;;  %v2704_v7 = vor.u32 %v3046_v2, %v2703_v63  ;;  %v1779_v59 = vrot.slane %v2699_v51, 4  ;;  %v3084_v63 = vld [vmem:[%s4497_s1 + $0x7c] sm:$0xf] }
 0x41b   :  { %1758 = vmatpush.bf16.msra.mxu3 %v2708_v9 }
 0x41c   :  { %3144 = vpow2.f32 %v2697_v15  ;;  %v1781_v9 = vunpack.c.l.bf16 %v1779_v59  ;;  %v2806_v59 = vld [vmem:[%s4497_s1 + $0xc] sm:$0xf0] }
 0x41d   :  { %v1489_v24 = vpop.f32.mrf.mxu3 }
 0x41e   :  { %v1526_v32 = vadd.f32 %v1519_v16, %v1489_v24  ;;  %1745 = vmatpush.bf16.msra.mxu2 %v2704_v7  ;;  %v1777_v7 = vunpack.c.l.bf16 %v2699_v51  ;;  %v3074_v51 = vld [vmem:[%s4497_s1 + $0x28] sm:$0xf0] }
 0x41f   :  { %v1504_v38 = vpop.f32.mrf.mxu0 }
 0x420   :  { %v2696_v45 = vmul.f32 -1.442695, %v1526_v32  ;;  %v1517_v46 = vpop.f32.mrf.mxu1 }
 0x422   :  { %3146 = vpow2.f32 %v2696_v45  ;;  %v3145_v40 = vpop.eup %3144  ;;  %v3090_v45 = vld [vmem:[%s4497_s1 + $0xac] sm:$0xf] }
 0x423   :  { %v1550_v61 = vadd.f32 1.0, %v3145_v40  ;;  %v2893_v50 = vor.u32 %v3090_v45, %v2890_v48  ;;  %v2897_v40 = vor.u32 %v3092_v52, %v2896_v49  ;;  %v2816_v48 = vld [vmem:[%s4497_s1 + $0x18] sm:$0xf]  ;;  %v3073_v49 = vld [vmem:[%s4497_s1 + $0x20] sm:$0xf0] }
 0x424   :  { %v3072_v52 = vld [vmem:[%s4497_s1 + $0x1c] sm:$0xf] }
 0x425   :  { %v1491_v34 = vpop.f32.mrf.mxu3  ;;  %v1562_v33 = vand.u32 2147483648, %v1550_v61  ;;  %vm1556_vm13 = vweird.f32 %v1550_v61  ;;  %v1560_v35 = vand.u32 2147483647, %v1550_v61  ;;  %2009 = vmatpush.bf16.msrb.mxu2 %v2893_v50  ;;  %2022 = vmatpush.bf16.msrb.mxu3 %v2897_v40  ;;  %v2818_v50 = vld [vmem:[%s4497_s1 + $0x24] sm:$0xf0] }
 0x426   :  { %v2881_v34 = vor.u32 %v3087_v57, %v2878_v55  ;;  %v2824_v40 = vld [vmem:[%s4497_s1 + $0x20] sm:$0xf]  ;;  %v2817_v57 = vor.u32 %v3073_v49, %v2816_v48 }
 0x427   :  { %v1563_v38 = vor.u32 1.1754944e-38, %v1562_v33  ;;  %vm1561_vm15 = vcmp.eq.f32.partialorder %v1560_v35, 8.507059e+37  ;;  %v2828_v35 = vld [vmem:[%s4497_s1 + $0x30] sm:$0xf]  ;;  %v2825_v55 = vor.u32 %v3074_v51, %v2824_v40 }
 0x428   :  { %v3147_v1 = vpop.eup %3146 }
 0x429   :  { %v1530_v6 = vadd.f32 1.0, %v3147_v1  ;;  %2010 = vmatpush.bf16.msrb.mxu2 %v2881_v34  ;;  %v2866_v1 = vld [vmem:[%s4497_s1 + $0x84] sm:$0xf0]  ;;  %v3069_v34 = vld [vmem:[%s4497_s1 + $0x4] sm:$0xf] }
 0x42a   :  { %v2869_v3 = vor.u32 %v3084_v63, %v2866_v1 }
 0x42b   :  { %3148 = vrcp.f32 %v1530_v6  ;;  %v1542_v16 = vand.u32 2147483648, %v1530_v6  ;;  %v1540_v18 = vand.u32 2147483647, %v1530_v6  ;;  %vm1536_vm9 = vweird.f32 %v1530_v6 }
 0x42c   :  { %3150 = vrcp.f32 %v1550_v61 }
 0x42d   :  { %v1543_v22 = vor.u32 1.1754944e-38, %v1542_v16  ;;  %vm1541_vm11 = vcmp.eq.f32.partialorder %v1540_v18, 8.507059e+37  ;;  %2011 = vmatpush.bf16.msrb.mxu2 %v2869_v3  ;;  %v3083_v16 = vld [vmem:[%s4497_s1 + $0x70] sm:$0xf0]  ;;  %v2813_v3 = vor.u32 %v3071_v62, %v2812_v60 }
 0x431   :  { %v3149_v11 = vpop.eup %3148 }
 0x432   :  { %v3151_v12 = vpop.eup %3150  ;;  %v1532_v13 = vmul.f32 %v3149_v11, %v1530_v6  ;;  %vm1537_vm8 = vweird.f32 %v3149_v11  ;;  %v2873_v6 = vor.u32 %v3086_v5, %v2872_v4  ;;  %v2809_v5 = vor.u32 %v3069_v34, %v2806_v59  ;;  %v2801_v34 = vld [vmem:[%s4500_s0 + $0x5c] sm:$0xf] }
 0x433   :  { %v1552_v15 = vmul.f32 %v3151_v12, %v1550_v61  ;;  %vm1538_vm10 = vmor %vm1536_vm9, %vm1537_vm8  ;;  %vm1557_vm12 = vweird.f32 %v3151_v12  ;;  %v2885_v61 = vor.u32 %v3089_v58, %v2884_v56  ;;  %v2804_v56 = vld [vmem:[%s4497_s1] sm:$0xf]  ;;  %v3070_v58 = vld [vmem:[%s4497_s1 + $0x8] sm:$0xf0] }
 0x434   :  { %v1533_v14 = vsub.f32 1.0, %v1532_v13  ;;  %vm1558_vm14 = vmor %vm1556_vm13, %vm1557_vm12  ;;  %v2805_v4 = vor.u32 %v3070_v58, %v2804_v56 }
 0x435   :  { %v1553_v21 = vsub.f32 1.0, %v1552_v15  ;;  %2023 = vmatpush.bf16.msrb.mxu3 %v2885_v61  ;;  %v2860_v15 = vld [vmem:[%s4497_s1 + $0x68] sm:$0xf] }
 0x436   :  { %v1534_v17 = vmul.f32 %v3149_v11, %v1533_v14  ;;  %v2854_v14 = vld [vmem:[%s4497_s1 + $0x6c] sm:$0xf0] }
 0x437   :  { %v1554_v30 = vmul.f32 %v3151_v12, %v1553_v21  ;;  %v2840_v21 = vld [vmem:[%s4497_s1 + $0x48] sm:$0xf] }
 0x438   :  { %v1535_v20 = vadd.f32 %v3149_v11, %v1534_v17 }
 0x439   :  { %v1555_v32 = vadd.f32 %v3151_v12, %v1554_v30  ;;  %2024 = vmatpush.bf16.msrb.mxu3 %v2873_v6  ;;  %v2848_v30 = vld [vmem:[%s4497_s1 + $0x50] sm:$0xf] }
 0x43a   :  { %v1539_v24 = vsel %vm1538_vm10, %v3149_v11, %v1535_v20  ;;  %v3082_v11 = vld [vmem:[%s4497_s1 + $0x68] sm:$0xf0]  ;;  %v2861_v20 = vor.u32 %v3083_v16, %v2860_v15  ;;  %v2700_v15 = vld [vmem:[%s4500_s0 + $0x50] sm:$0xf] }
 0x43b   :  { %v1544_v27 = vsel %vm1541_vm11, %v1543_v22, %v1539_v24  ;;  %v1559_v36 = vsel %vm1558_vm14, %v3151_v12, %v1555_v32  ;;  %v3081_v12 = vld [vmem:[%s4497_s1 + $0x64] sm:$0xf]  ;;  %v2853_v13 = vor.u32 %v3082_v11, %v2852_v10  ;;  %v3079_v22 = vld [vmem:[%s4497_s1 + $0x50] sm:$0xf0] }
 0x43c   :  { %v1566_v28 = vmul.f32 %v1544_v27, %v1525_v23  ;;  %v1564_v39 = vsel %vm1561_vm15, %v1563_v38, %v1559_v36  ;;  %v2857_v19 = vor.u32 %v3081_v12, %v2854_v14  ;;  %v3078_v23 = vld [vmem:[%s4497_s1 + $0x4c] sm:$0xf]  ;;  %v2841_v27 = vor.u32 %v3079_v22, %v2840_v21  ;;  %v3076_v36 = vld [vmem:[%s4497_s1 + $0x38] sm:$0xf0] }
 0x43d   :  { %2025 = vmatpush.bf16.msrb.mxu3 %v2861_v20  ;;  %v1782_v21 = vunpack.c.l.bf16 %v2700_v15 }
 0x43e   :  { %v1567_v31 = vadd.f32 %v1566_v28, %v1524_v25  ;;  %v2842_v28 = vld [vmem:[%s4497_s1 + $0x54] sm:$0xf0]  ;;  %2012 = vmatpush.bf16.msrb.mxu2 %v2857_v19 }
 0x43f   :  { %v2845_v32 = vor.u32 %v3078_v23, %v2842_v28 }
 0x440   :  { %3152 = vtanh.f32 %v1567_v31  ;;  %v3080_v31 = vld [vmem:[%s4497_s1 + $0x58] sm:$0xf0] }
 0x441   :  { %v2849_v33 = vor.u32 %v3080_v31, %v2848_v30 }
 0x442   :  { %2013 = vmatpush.bf16.msrb.mxu2 %v2845_v32 }
 0x443   :  { %2026 = vmatpush.bf16.msrb.mxu3 %v2849_v33 }
 0x446   :  { %v3153_v37 = vpop.eup %3152 }
 0x447   :  { %v1569_v8 = vsub.f32 %v4155_v47, %v3153_v37  ;;  %v3091_v47 = vld [vmem:[%s4497_s1 + $0xb0] sm:$0xf0] }
 0x448   :  { %v2889_v46 = vor.u32 %v3091_v47, %v2888_v44  ;;  %v3077_v44 = vld [vmem:[%s4497_s1 + $0x40] sm:$0xf0]  ;;  %v2829_v47 = vor.u32 %v3076_v36, %v2828_v35 }
 0x449   :  { %v1570_v41 = vmul.f32 %v1569_v8, %v1564_v39 }
 0x44a   :  { %1996 = vmatpush.bf16.msrb.mxu1 %v2889_v46 }
 0x44b   :  { %v4317_v42 = vadd.f32 %v3153_v37, %v1570_v41  ;;  %v3075_v37 = vld [vmem:[%s4497_s1 + $0x34] sm:$0xf]  ;;  %v2830_v41 = vld [vmem:[%s4497_s1 + $0x3c] sm:$0xf0] }
 0x44c   :  { %v2833_v45 = vor.u32 %v3075_v37, %v2830_v41 }
 0x44d   :  { %v1572_v43 = vpack.c.bf16 %v4317_v42, %v4317_v42 }
 0x44e   :  { %1997 = vmatpush.bf16.msrb.mxu1 %v2877_v26  ;;  %2014 = vmatpush.bf16.msrb.mxu2 %v2833_v45  ;;  %v2821_v26 = vor.u32 %v3072_v52, %v2818_v50 }
 0x44f   :  { %2698 = vst [vmem:[%s4501_s4 + $0x14] sm:$0xf] %v1572_v43  ;;  %1746 = vmatmul.bf16.vlgmr.msra.gmra.mxu2 %v1572_v43  ;;  %1759 = vmatmul.bf16.vlgmr.msra.gmra.mxu3 %v1572_v43 }
 0x450   :  { %1772 = vmatmul.bf16.vlgmr.msrb.gmra.mxu0 %v1572_v43  ;;  %v2836_v43 = vld [vmem:[%s4497_s1 + $0x38] sm:$0xf] }
 0x451   :  { %v2837_v46 = vor.u32 %v3077_v44, %v2836_v43 }
 0x452   :  { %1998 = vmatpush.bf16.msrb.mxu1 %v2865_v0  ;;  %2015 = vmatpush.bf16.msrb.mxu2 %v2821_v26 }
 0x453   :  { %2027 = vmatpush.bf16.msrb.mxu3 %v2837_v46 }
 0x456   :  { %1999 = vmatpush.bf16.msrb.mxu1 %v2853_v13  ;;  %2016 = vmatpush.bf16.msrb.mxu2 %v2809_v5 }
 0x457   :  { %2028 = vmatpush.bf16.msrb.mxu3 %v2825_v55 }
 0x45a   :  { %2000 = vmatpush.bf16.msrb.mxu1 %v2841_v27 }
 0x45b   :  { %2029 = vmatpush.bf16.msrb.mxu3 %v2813_v3 }
 0x45e   :  { %2001 = vmatpush.bf16.msrb.mxu1 %v2829_v47 }
 0x462   :  { %2002 = vmatpush.bf16.msrb.mxu1 %v2817_v57 }
 0x466   :  { %2003 = vmatpush.bf16.msrb.mxu1 %v2805_v4 }
 0x4cd   :  { %v4372_v2 = vpop.f32.mrf.mxu0 }
 0x4ce   :  { %v1783_v19 = vadd.f32 %v4151_v29, %v4372_v2 }
 0x4d2   :  { %v1747_v17 = vpop.f32.mrf.mxu2  ;;  %v1760_v18 = vpop.f32.mrf.mxu3 }
 0x4d3   :  { %v1784_v24 = vadd.f32 %v1777_v7, %v1747_v17  ;;  %v1804_v25 = vadd.f32 %v1781_v9, %v1760_v18 }
 0x4d5   :  { %v2797_v38 = vmul.f32 -1.442695, %v1784_v24  ;;  %v2798_v8 = vmul.f32 -1.442695, %v1804_v25  ;;  %v1775_v39 = vpop.f32.mrf.mxu0 }
 0x4d7   :  { %3154 = vpow2.f32 %v2797_v38 }
 0x4d8   :  { %3156 = vpow2.f32 %v2798_v8  ;;  %v2800_v8 = vld [vmem:[%s4500_s0 + $0x54] sm:$0xff] }
 0x4d9   :  { %v2035_v39 = vunpack.c.l.bf16 %v2800_v8 }
 0x4da   :  { %v1749_v53 = vpop.f32.mrf.mxu2  ;;  %v1762_v54 = vpop.f32.mrf.mxu3 }
 0x4dd   :  { %v3155_v61 = vpop.eup %3154 }
 0x4de   :  { %v3157_v63 = vpop.eup %3156  ;;  %v1788_v0 = vadd.f32 1.0, %v3155_v61 }
 0x4df   :  { %v1808_v1 = vadd.f32 1.0, %v3157_v63 }
 0x4e0   :  { %3158 = vrcp.f32 %v1788_v0  ;;  %v1800_v11 = vand.u32 2147483648, %v1788_v0  ;;  %v1798_v14 = vand.u32 2147483647, %v1788_v0  ;;  %vm1794_vm1 = vweird.f32 %v1788_v0 }
 0x4e1   :  { %3160 = vrcp.f32 %v1808_v1  ;;  %v1820_v28 = vand.u32 2147483648, %v1808_v1  ;;  %vm1814_vm5 = vweird.f32 %v1808_v1  ;;  %v1818_v30 = vand.u32 2147483647, %v1808_v1 }
 0x4e2   :  { %v1801_v17 = vor.u32 1.1754944e-38, %v1800_v11  ;;  %vm1799_vm3 = vcmp.eq.f32.partialorder %v1798_v14, 8.507059e+37 }
 0x4e3   :  { %v1821_v33 = vor.u32 1.1754944e-38, %v1820_v28  ;;  %vm1819_vm7 = vcmp.eq.f32.partialorder %v1818_v30, 8.507059e+37 }
 0x4e6   :  { %v3159_v6 = vpop.eup %3158 }
 0x4e7   :  { %v3161_v7 = vpop.eup %3160  ;;  %v1790_v9 = vmul.f32 %v3159_v6, %v1788_v0  ;;  %vm1795_vm0 = vweird.f32 %v3159_v6  ;;  %v2040_v0 = vunpack.c.l.bf16 %v2801_v34 }
 0x4e8   :  { %v1810_v12 = vmul.f32 %v3161_v7, %v1808_v1  ;;  %vm1796_vm2 = vmor %vm1794_vm1, %vm1795_vm0  ;;  %vm1815_vm4 = vweird.f32 %v3161_v7 }
 0x4e9   :  { %v1791_v10 = vsub.f32 1.0, %v1790_v9  ;;  %vm1816_vm6 = vmor %vm1814_vm5, %vm1815_vm4 }
 0x4ea   :  { %v1811_v18 = vsub.f32 1.0, %v1810_v12 }
 0x4eb   :  { %v1792_v13 = vmul.f32 %v3159_v6, %v1791_v10 }
 0x4ec   :  { %v1812_v24 = vmul.f32 %v3161_v7, %v1811_v18 }
 0x4ed   :  { %v1793_v16 = vadd.f32 %v3159_v6, %v1792_v13 }
 0x4ee   :  { %v1813_v27 = vadd.f32 %v3161_v7, %v1812_v24 }
 0x4ef   :  { %v1797_v20 = vsel %vm1796_vm2, %v3159_v6, %v1793_v16 }
 0x4f0   :  { %v1802_v22 = vsel %vm1799_vm3, %v1801_v17, %v1797_v20  ;;  %v1817_v31 = vsel %vm1816_vm6, %v3161_v7, %v1813_v27 }
 0x4f1   :  { %v1824_v23 = vmul.f32 %v1802_v22, %v1783_v19  ;;  %v1822_v35 = vsel %vm1819_vm7, %v1821_v33, %v1817_v31 }
 0x4f3   :  { %v1825_v25 = vadd.f32 %v1824_v23, %v1782_v21 }
 0x4f5   :  { %3162 = vtanh.f32 %v1825_v25 }
 0x4fb   :  { %v3163_v32 = vpop.eup %3162 }
 0x4fc   :  { %v1827_v2 = vsub.f32 %v4317_v42, %v3163_v32  ;;  %v2037_v42 = vrot.slane %v2800_v8, 4 }
 0x4fe   :  { %v1828_v36 = vmul.f32 %v1827_v2, %v1822_v35  ;;  %v2039_v47 = vunpack.c.l.bf16 %v2037_v42 }
 0x500   :  { %v4479_v37 = vadd.f32 %v3163_v32, %v1828_v36 }
 0x502   :  { %v1830_v38 = vpack.c.bf16 %v4479_v37, %v4479_v37 }
 0x504   :  { %2799 = vst [vmem:[%s4501_s4 + $0x18] sm:$0xf] %v1830_v38  ;;  %2004 = vmatmul.bf16.vlgmr.msrb.gmra.mxu1 %v1830_v38  ;;  %2017 = vmatmul.bf16.vlgmr.msrb.gmra.mxu2 %v1830_v38 }
 0x505   :  { %2030 = vmatmul.bf16.vlgmr.msrb.gmra.mxu3 %v1830_v38 }
 0x581   :  { %v2005_v41 = vpop.f32.mrf.mxu1 }
 0x582   :  { %v2042_v43 = vadd.f32 %v2035_v39, %v2005_v41 }
 0x584   :  { %v2898_v44 = vmul.f32 -1.442695, %v2042_v43 }
 0x586   :  { %3164 = vpow2.f32 %v2898_v44 }
 0x587   :  { %v2018_v45 = vpop.f32.mrf.mxu2 }
 0x588   :  { %v2062_v46 = vadd.f32 %v2039_v47, %v2018_v45  ;;  %v2031_v48 = vpop.f32.mrf.mxu3 }
 0x589   :  { %v2007_v49 = vpop.f32.mrf.mxu1  ;;  %v2041_v5 = vadd.f32 %v4151_v29, %v2031_v48 }
 0x58a   :  { %v2899_v52 = vmul.f32 -1.442695, %v2062_v46 }
 0x58c   :  { %v3165_v50 = vpop.eup %3164  ;;  %3166 = vpow2.f32 %v2899_v52 }
 0x58d   :  { %v2046_v40 = vadd.f32 1.0, %v3165_v50 }
 0x58f   :  { %3168 = vrcp.f32 %v2046_v40  ;;  %v2020_v51 = vpop.f32.mrf.mxu2  ;;  %v2058_v58 = vand.u32 2147483648, %v2046_v40  ;;  %v2056_v59 = vand.u32 2147483647, %v2046_v40  ;;  %vm2052_vm9 = vweird.f32 %v2046_v40 }
 0x590   :  { %v2033_v53 = vpop.f32.mrf.mxu3 }
 0x591   :  { %v2059_v1 = vor.u32 1.1754944e-38, %v2058_v58  ;;  %vm2057_vm11 = vcmp.eq.f32.partialorder %v2056_v59, 8.507059e+37 }
 0x592   :  { %v3167_v54 = vpop.eup %3166 }
 0x593   :  { %v2066_v57 = vadd.f32 1.0, %v3167_v54 }
 0x595   :  { %v3169_v26 = vpop.eup %3168  ;;  %3170 = vrcp.f32 %v2066_v57  ;;  %v2078_v12 = vand.u32 2147483648, %v2066_v57  ;;  %vm2072_vm13 = vweird.f32 %v2066_v57  ;;  %v2076_v13 = vand.u32 2147483647, %v2066_v57 }
 0x596   :  { %v2048_v55 = vmul.f32 %v3169_v26, %v2046_v40  ;;  %vm2053_vm8 = vweird.f32 %v3169_v26 }
 0x597   :  { %vm2054_vm10 = vmor %vm2052_vm9, %vm2053_vm8  ;;  %v2079_v16 = vor.u32 1.1754944e-38, %v2078_v12  ;;  %vm2077_vm15 = vcmp.eq.f32.partialorder %v2076_v13, 8.507059e+37 }
 0x598   :  { %v2049_v56 = vsub.f32 1.0, %v2048_v55 }
 0x59a   :  { %v2050_v61 = vmul.f32 %v3169_v26, %v2049_v56 }
 0x59b   :  { %v3171_v60 = vpop.eup %3170 }
 0x59c   :  { %v2068_v62 = vmul.f32 %v3171_v60, %v2066_v57  ;;  %v2051_v63 = vadd.f32 %v3169_v26, %v2050_v61  ;;  %vm2073_vm12 = vweird.f32 %v3171_v60 }
 0x59d   :  { %vm2074_vm14 = vmor %vm2072_vm13, %vm2073_vm12 }
 0x59e   :  { %v2069_v4 = vsub.f32 1.0, %v2068_v62  ;;  %v2055_v3 = vsel %vm2054_vm10, %v3169_v26, %v2051_v63 }
 0x59f   :  { %v2060_v6 = vsel %vm2057_vm11, %v2059_v1, %v2055_v3 }
 0x5a0   :  { %v2082_v7 = vmul.f32 %v2060_v6, %v2041_v5  ;;  %v2070_v9 = vmul.f32 %v3171_v60, %v2069_v4 }
 0x5a2   :  { %v2083_v10 = vadd.f32 %v2082_v7, %v2040_v0  ;;  %v2071_v11 = vadd.f32 %v3171_v60, %v2070_v9 }
 0x5a4   :  { %3172 = vtanh.f32 %v2083_v10  ;;  %v2075_v14 = vsel %vm2074_vm14, %v3171_v60, %v2071_v11 }
 0x5a5   :  { %v2080_v29 = vsel %vm2077_vm15, %v2079_v16, %v2075_v14 }
 0x5aa   :  { %v3173_v15 = vpop.eup %3172 }
 0x5ab   :  { %v2085_v17 = vsub.f32 %v4479_v37, %v3173_v15 }
 0x5ad   :  { %v2086_v18 = vmul.f32 %v2085_v17, %v2080_v29 }
 0x5af   :  { %v2087_v19 = vadd.f32 %v3173_v15, %v2086_v18 }
 0x5b1   :  { %v2088_v20 = vpack.c.bf16 %v2087_v19, %v2087_v19 }
 0x5b3   :  { %2900 = vst [vmem:[%s4501_s4 + $0x1c] sm:$0xf] %v2088_v20 }

</bundles_post_ra>
